<compile_context>
chip_gen: v5e
topology: v5e:2x2
jax: 0.10.0
libtpu: 0.0.40
codegen_flags: <defaults>
</compile_context>

<pallas_src>
import functools

import jax
import jax.numpy as jnp
from jax import lax
from jax.experimental import pallas as pl
from jax.experimental.pallas import tpu as pltpu

HIDDEN = 32
PFC_IN = 13
SPACE = HIDDEN // 2      # GravNet space_dimensions = 16
PROP = 8                 # GravNet propagate_dimensions
K_NEIGH = 40
BIG = 1e9                # distance filler for cross-graph pairs
NEG = -1e30              # max-aggregation filler for non-neighbours


def _elu(x):
    # ELU(alpha=1): x if x > 0 else exp(x) - 1  (exp arg clamped for safety)
    return jnp.where(x > 0, x, jnp.exp(jnp.minimum(x, 0.0)) - 1.0)


def _eye(n):
    return (jax.lax.broadcasted_iota(jnp.int32, (n, n), 0) ==
            jax.lax.broadcasted_iota(jnp.int32, (n, n), 1)).astype(jnp.float32)


# ---------------------------------------------------------------------------
# Kernel 1: pfc_encode MLP + GravNet projections, row-tiled.  Every node is
# encoded exactly once; emits both row-major (query side) and lane-dense
# transposed (key side) copies of s / h plus key-side squared norms.
# ---------------------------------------------------------------------------
def encode_kernel(x_ref,
                  w1_ref, b1_ref, w2_ref, b2_ref, w3_ref, b3_ref,
                  ws_ref, bs_ref, wh_ref, bh_ref, wout1_ref, bout2_ref,
                  s_ref, sT_ref, sqn_ref, h_ref, hT_ref, base_ref):
    x = x_ref[...]
    t = _elu(jnp.dot(x, w1_ref[...], preferred_element_type=jnp.float32) + b1_ref[...])
    t = _elu(jnp.dot(t, w2_ref[...], preferred_element_type=jnp.float32) + b2_ref[...])
    enc = jnp.dot(t, w3_ref[...], preferred_element_type=jnp.float32) + b3_ref[...]

    s = jnp.dot(enc, ws_ref[...], preferred_element_type=jnp.float32) + bs_ref[...]
    h = jnp.dot(enc, wh_ref[...], preferred_element_type=jnp.float32) + bh_ref[...]

    s_ref[...] = s
    h_ref[...] = h
    # lin_out1 (no bias) + lin_out2's bias folded in (conv epilogue base).
    base_ref[...] = (jnp.dot(enc, wout1_ref[...], preferred_element_type=jnp.float32)
                     + bout2_ref[...])

    # Lane-dense transposed copies for kernel 2 (avoids per-tile relayouts there).
    # Transpose via tiny identity matmuls on the MXU.
    sT = jax.lax.dot_general(_eye(SPACE), s, (((1,), (1,)), ((), ())),
                             preferred_element_type=jnp.float32)      # [16, tm]
    hT = jax.lax.dot_general(_eye(PROP), h, (((1,), (1,)), ((), ())),
                             preferred_element_type=jnp.float32)      # [8, tm]
    sT_ref[...] = sT
    hT_ref[...] = hT
    sqn_ref[...] = jnp.dot(jnp.ones((1, SPACE), jnp.float32), sT * sT,
                           preferred_element_type=jnp.float32)        # [1, tm]


# ---------------------------------------------------------------------------
# Kernel 2: in-kernel k-NN threshold (bit-pattern bisection) + GravNet
# aggregation (mean & per-feature max over column chunks) + conv epilogue +
# layer_norm + ffn + output head, row-tiled over query nodes.
# ---------------------------------------------------------------------------
def agg_head_kernel(s_q_ref, bcol_ref, base_ref, x_ref,
                    sT_ref, sqn_ref, brow_ref, h_ref, hT_ref,
                    wout2m_ref, wout2x_ref,
                    wf1_ref, bf1_ref, wf2_ref, bf2_ref,
                    wo1a_ref, wo1b_ref, bo1_ref, wo2_ref, bo2_ref,
                    out_ref, d2b_ref, *, k, tk):
    tm = s_q_ref.shape[0]
    n = sT_ref.shape[1]
    n_chunks = n // tk

    s_q = s_q_ref[...]                                               # [tm, 16]
    bcol = bcol_ref[...]                                             # [tm, 1]
    qn = jnp.dot(s_q * s_q, jnp.ones((SPACE, 1), jnp.float32),
                 preferred_element_type=jnp.float32)                 # [tm, 1]

    # ---- Phase 1: same-graph-masked squared distances, written column-chunk by
    #      column-chunk into VMEM scratch as raw f32 bit patterns (never to HBM).
    @pl.loop(0, n_chunks)
    def _(c):
        off = pl.multiple_of(c * tk, tk)
        cross = jnp.dot(s_q, sT_ref[:, pl.ds(off, tk)],
                        preferred_element_type=jnp.float32)          # [tm, tk]
        d2 = jnp.maximum(qn + sqn_ref[:, pl.ds(off, tk)] - 2.0 * cross, 0.0)
        same = bcol == brow_ref[:, pl.ds(off, tk)]
        d2 = jnp.where(same, d2, BIG)
        d2b_ref[:, pl.ds(off, tk)] = pltpu.bitcast(d2, jnp.int32)

    # ---- Phase 2: per-row k-th smallest distance via bisection on the IEEE-754
    #      bit pattern (monotone for non-negative f32) -> exact threshold, fully
    #      in-kernel (replaces the [N,N] HBM round-trip + XLA top_k sort).
    def bisect(_, carry):
        lo, hi = carry
        mid = lo + ((hi - lo) >> 1)
        cnt = jnp.sum((d2b_ref[...] <= mid).astype(jnp.int32),
                      axis=-1, keepdims=True)
        ge = cnt >= k
        return jnp.where(ge, lo, mid), jnp.where(ge, mid, hi)

    lo0 = jnp.full((tm, 1), -1, jnp.int32)
    hi0 = jnp.full((tm, 1), 0x7F800000, jnp.int32)                   # +inf bits
    _, thr = lax.fori_loop(0, 32, bisect, (lo0, hi0))

    # TODO(synk): exact torch knn keeps exactly k neighbours with arbitrary
    # tie-breaking; this threshold admits every tie at the k-th distance, and a
    # graph with < k nodes still uses a 1/k mean divisor (scatter-mean would use
    # the actual neighbour count).

    # ---- Phase 3: mean / per-feature-max aggregation over column chunks with
    #      running accumulators (bounds live temporaries to [tm, tk]).
    def agg(c, carry):
        mean_acc = carry[0]
        maxes = carry[1:]
        off = pl.multiple_of(c * tk, tk)
        d2b_c = d2b_ref[:, pl.ds(off, tk)]                           # [tm, tk] bits
        same = bcol == brow_ref[:, pl.ds(off, tk)]
        nb = jnp.logical_and(same, d2b_c <= thr)
        d2_c = pltpu.bitcast(d2b_c, jnp.float32)
        w = jnp.where(nb, jnp.exp(-10.0 * d2_c), 0.0)                # [tm, tk]
        neg = jnp.where(nb, 0.0, NEG)
        h_c = h_ref[pl.ds(off, tk), :]                               # [tk, 8]
        hT_c = hT_ref[:, pl.ds(off, tk)]                             # [8, tk]
        mean_acc = mean_acc + jnp.dot(w, h_c,
                                      preferred_element_type=jnp.float32)
        new_maxes = []
        for p in range(PROP):
            msg = w * hT_c[p:p + 1, :] + neg                         # [tm, tk]
            new_maxes.append(jnp.maximum(maxes[p],
                                         jnp.max(msg, axis=-1, keepdims=True)))
        return (mean_acc,) + tuple(new_maxes)

    init = ((jnp.zeros((tm, PROP), jnp.float32),) +
            tuple(jnp.full((tm, 1), NEG, jnp.float32) for _ in range(PROP)))
    acc = lax.fori_loop(0, n_chunks, agg, init)

    # conv = lin_out1(enc) + lin_out2([mean, max])   (1/k folded into wout2m)
    conv = base_ref[...] + jnp.dot(acc[0], wout2m_ref[...],
                                   preferred_element_type=jnp.float32)
    wout2x = wout2x_ref[...]
    for p in range(PROP):
        conv = conv + acc[1 + p] * wout2x[p:p + 1, :]

    # ---- layer_norm -> (identity dropout, eval) -> ffn -> cat(x) -> output ----
    # TODO(synk): training-mode dropout has no clean in-kernel equivalent here;
    # eval-mode (identity) semantics are implemented.
    mu = jnp.mean(conv, axis=-1, keepdims=True)
    var = jnp.mean((conv - mu) ** 2, axis=-1, keepdims=True)
    ln = (conv - mu) * jax.lax.rsqrt(var + 1e-5)                     # no affine

    # feats1 == feats2 in eval mode -> cat([f, f]) @ Wf1 == ln @ (wf1a + wf1b)
    t = _elu(jnp.dot(ln, wf1_ref[...], preferred_element_type=jnp.float32) + bf1_ref[...])
    t = jnp.dot(t, wf2_ref[...], preferred_element_type=jnp.float32) + bf2_ref[...]
    x = x_ref[...]
    # cat([t, x]) @ Wo1 == t @ wo1a + x @ wo1b
    g = _elu(jnp.dot(t, wo1a_ref[...], preferred_element_type=jnp.float32)
             + jnp.dot(x, wo1b_ref[...], preferred_element_type=jnp.float32)
             + bo1_ref[...])
    out_ref[...] = jnp.dot(g, wo2_ref[...], preferred_element_type=jnp.float32) + bo2_ref[...]


# ---------------------------------------------------------------------------
# Parameter init (deterministic, PyTorch-default-style uniform(+-1/sqrt(fan_in)))
# ---------------------------------------------------------------------------
def _linear(key, fan_in, fan_out, bias=True):
    kw, kb = jax.random.split(key)
    bound = 1.0 / float(fan_in) ** 0.5
    w = jax.random.uniform(kw, (fan_in, fan_out), jnp.float32, -bound, bound)
    if not bias:
        return w, None
    b = jax.random.uniform(kb, (1, fan_out), jnp.float32, -bound, bound)
    return w, b


def init_params(key):
    keys = jax.random.split(key, 12)
    p = {}
    # pfc_encode
    p["w1"], p["b1"] = _linear(keys[0], PFC_IN, HIDDEN // 2)
    p["w2"], p["b2"] = _linear(keys[1], HIDDEN // 2, HIDDEN)
    p["w3"], p["b3"] = _linear(keys[2], HIDDEN, HIDDEN)
    # GravNetConv
    p["ws"], p["bs"] = _linear(keys[3], HIDDEN, SPACE)            # lin_s
    p["wh"], p["bh"] = _linear(keys[4], HIDDEN, PROP)             # lin_h
    p["wout1"], _ = _linear(keys[5], HIDDEN, HIDDEN, bias=False)  # lin_out1 (no bias)
    wout2, p["bout2"] = _linear(keys[6], 2 * PROP, HIDDEN)        # lin_out2
    p["wout2m"], p["wout2x"] = wout2[:PROP], wout2[PROP:]
    # ffn (feats1 == feats2 in eval mode -> pre-sum the two weight halves)
    wf1, p["bf1"] = _linear(keys[7], 2 * HIDDEN, 16)
    p["wf1"] = wf1[:HIDDEN] + wf1[HIDDEN:]
    p["wf2"], p["bf2"] = _linear(keys[8], 16, 4)
    # output
    wo1, p["bo1"] = _linear(keys[9], 4 + PFC_IN, 4)
    p["wo1a"], p["wo1b"] = wo1[:4], wo1[4:]
    p["wo2"], p["bo2"] = _linear(keys[10], 4, 1)
    return p


# ---------------------------------------------------------------------------
# Tile / VMEM helpers
# ---------------------------------------------------------------------------
def _vmem_limit_bytes():
    # Leave headroom below the physical VMEM (v7x has only 64 MiB per core).
    try:
        cap = int(pltpu.get_tpu_info().vmem_capacity_bytes)
        if cap > 0:
            return min((cap * 3) // 4, 100 * 1024 * 1024)
    except Exception:
        pass
    return 48 * 1024 * 1024


def _pick_tile(n, candidates, byte_budget=None):
    for t in candidates:
        if n % t == 0 and (byte_budget is None or 4 * t * n <= byte_budget):
            return t
    # TODO(synk): for very large N even the smallest tile's [tm, N] distance
    # scratch can exceed the budget; a two-pass column-tiled threshold would be
    # needed there.  Fall back to the smallest dividing candidate.
    for t in reversed(candidates):
        if n % t == 0:
            return t
    return n


# ---------------------------------------------------------------------------
# Forward pass
# ---------------------------------------------------------------------------
@functools.partial(jax.jit, static_argnames=("k",))
def net_forward(params, x_pfc, batch_pfc, k=K_NEIGH):
    n0 = x_pfc.shape[0]
    n = ((n0 + 127) // 128) * 128          # pad rows to the (8,128) lane grid
    k = min(k, n0)

    batch_i = batch_pfc.astype(jnp.int32)
    if n != n0:
        # Padded rows get batch = -1 (their own pseudo-graph) and are sliced away.
        x_in = jnp.pad(x_pfc, ((0, n - n0), (0, 0)))
        batch_i = jnp.concatenate([batch_i, jnp.full((n - n0,), -1, jnp.int32)])
    else:
        x_in = x_pfc

    bcol = batch_i.astype(jnp.float32).reshape(n, 1)
    brow = batch_i.astype(jnp.float32).reshape(1, n)

    vlim = _vmem_limit_bytes()
    cparams = pltpu.CompilerParams(dimension_semantics=("parallel",),
                                   vmem_limit_bytes=vlim)

    rows = lambda shape: pl.BlockSpec(tuple(shape), lambda i: (i, 0))
    cols = lambda shape: pl.BlockSpec(tuple(shape), lambda i: (0, i))
    full = lambda shape: pl.BlockSpec(tuple(shape), lambda i: (0, 0))
    # (Grid-invariant full-array inputs could use pipeline_mode=pl.Buffered(1) to
    #  halve their VMEM footprint; skipped here since they are tiny at these dims.)

    # ---- kernel 1: encode every node once, row-tiled ----
    tm1 = _pick_tile(n, (512, 256, 128))      # transposed outputs need tm1 % 128 == 0
    s, sT, sqn, h, hT, base = pl.pallas_call(
        encode_kernel,
        grid=(n // tm1,),
        out_shape=(jax.ShapeDtypeStruct((n, SPACE), jnp.float32),
                   jax.ShapeDtypeStruct((SPACE, n), jnp.float32),
                   jax.ShapeDtypeStruct((1, n), jnp.float32),
                   jax.ShapeDtypeStruct((n, PROP), jnp.float32),
                   jax.ShapeDtypeStruct((PROP, n), jnp.float32),
                   jax.ShapeDtypeStruct((n, HIDDEN), jnp.float32)),
        in_specs=[rows((tm1, PFC_IN)),
                  full(params["w1"].shape), full(params["b1"].shape),
                  full(params["w2"].shape), full(params["b2"].shape),
                  full(params["w3"].shape), full(params["b3"].shape),
                  full(params["ws"].shape), full(params["bs"].shape),
                  full(params["wh"].shape), full(params["bh"].shape),
                  full(params["wout1"].shape), full(params["bout2"].shape)],
        out_specs=(rows((tm1, SPACE)), cols((SPACE, tm1)), cols((1, tm1)),
                   rows((tm1, PROP)), cols((PROP, tm1)), rows((tm1, HIDDEN))),
        compiler_params=cparams,
        cost_estimate=pl.CostEstimate(flops=int(7200 * n),
                                      transcendentals=int(48 * n),
                                      bytes_accessed=int(400 * n)),
    )(x_in, params["w1"], params["b1"], params["w2"], params["b2"],
      params["w3"], params["b3"], params["ws"], params["bs"],
      params["wh"], params["bh"], params["wout1"], params["bout2"])

    # ---- kernel 2: k-NN threshold + aggregation + head, row-tiled ----
    # Keep >= 2 grid steps (v7x megacore) and bound the [tm, n] distance scratch
    # by a VMEM budget so large N still compiles on 64 MiB parts.
    scratch_budget = min(vlim // 3, 24 * 1024 * 1024)
    tm2 = _pick_tile(n,
                     tuple(t for t in (512, 256, 128, 64) if t <= max(n // 2, 64)),
                     byte_budget=scratch_budget)
    tk = _pick_tile(n, (512, 256, 128))

    wout2m_scaled = params["wout2m"] * (1.0 / k)   # fold the mean's 1/k

    out = pl.pallas_call(
        functools.partial(agg_head_kernel, k=k, tk=tk),
        grid=(n // tm2,),
        out_shape=jax.ShapeDtypeStruct((n, 1), jnp.float32),
        in_specs=[rows((tm2, SPACE)), rows((tm2, 1)), rows((tm2, HIDDEN)),
                  rows((tm2, PFC_IN)),
                  full((SPACE, n)), full((1, n)), full((1, n)),
                  full((n, PROP)), full((PROP, n)),
                  full(wout2m_scaled.shape), full(params["wout2x"].shape),
                  full(params["wf1"].shape), full(params["bf1"].shape),
                  full(params["wf2"].shape), full(params["bf2"].shape),
                  full(params["wo1a"].shape), full(params["wo1b"].shape),
                  full(params["bo1"].shape), full(params["wo2"].shape),
                  full(params["bo2"].shape)],
        out_specs=rows((tm2, 1)),
        scratch_shapes=[pltpu.VMEM((tm2, n), jnp.int32)],
        compiler_params=cparams,
        cost_estimate=pl.CostEstimate(
            flops=int(2 * n * n * (SPACE + PROP) + 400 * n),
            transcendentals=int(n * n),
            bytes_accessed=int(140 * n * (n // tm2) + 300 * n)),
    )(s, bcol, base, x_in, sT, sqn, brow, h, hT,
      wout2m_scaled, params["wout2x"], params["wf1"], params["bf1"],
      params["wf2"], params["bf2"], params["wo1a"], params["wo1b"],
      params["bo1"], params["wo2"], params["bo2"])

    return out[:n0], batch_pfc


if __name__ == "__main__":
    key = jax.random.PRNGKey(0)
    k_x, k_p = jax.random.split(key)

    N = 128  # two graphs of 64 nodes each (>= k=40 neighbours available per node)
    x_pfc = jax.random.normal(k_x, (N, PFC_IN), jnp.float32)
    batch_pfc = jnp.concatenate(
        [jnp.zeros((64,), jnp.int32), jnp.ones((64,), jnp.int32)])

    params = init_params(k_p)
    out, batch_out = net_forward(params, x_pfc, batch_pfc)
    jax.block_until_ready(out)

    assert out.shape == (N, 1) and out.dtype == jnp.float32
    assert batch_out.shape == (N,)
    assert bool(jnp.all(jnp.isfinite(out)))
    print("KERNEL_OK")
</pallas_src>

<mosaic_0001>
module attributes {stable_mosaic.version = 11 : i64} {
  func.func @encode_kernel(%arg0: i32, %arg1: memref<128x13xf32, #tpu.memory_space<vmem>>, %arg2: memref<13x16xf32, #tpu.memory_space<vmem>>, %arg3: memref<1x16xf32, #tpu.memory_space<vmem>>, %arg4: memref<16x32xf32, #tpu.memory_space<vmem>>, %arg5: memref<1x32xf32, #tpu.memory_space<vmem>>, %arg6: memref<32x32xf32, #tpu.memory_space<vmem>>, %arg7: memref<1x32xf32, #tpu.memory_space<vmem>>, %arg8: memref<32x16xf32, #tpu.memory_space<vmem>>, %arg9: memref<1x16xf32, #tpu.memory_space<vmem>>, %arg10: memref<32x8xf32, #tpu.memory_space<vmem>>, %arg11: memref<1x8xf32, #tpu.memory_space<vmem>>, %arg12: memref<32x32xf32, #tpu.memory_space<vmem>>, %arg13: memref<1x32xf32, #tpu.memory_space<vmem>>, %arg14: memref<128x16xf32, #tpu.memory_space<vmem>>, %arg15: memref<16x128xf32, #tpu.memory_space<vmem>>, %arg16: memref<1x128xf32, #tpu.memory_space<vmem>>, %arg17: memref<128x8xf32, #tpu.memory_space<vmem>>, %arg18: memref<8x128xf32, #tpu.memory_space<vmem>>, %arg19: memref<128x32xf32, #tpu.memory_space<vmem>>) attributes {dimension_semantics = [#tpu.dimension_semantics<parallel>], iteration_bounds = array<i64: 1>, scalar_prefetch = 0 : i64, scratch_operands = 0 : i64, tpu.core_type = #tpu.core_type<tc>, window_params = [{transform_indices = @transform_0, window_bounds = array<i64: 128, 13>}, {pipeline_mode = #tpu.pipeline_mode<synchronous>, transform_indices = @transform_1, window_bounds = array<i64: 13, 16>}, {pipeline_mode = #tpu.pipeline_mode<synchronous>, transform_indices = @transform_2, window_bounds = array<i64: 1, 16>}, {pipeline_mode = #tpu.pipeline_mode<synchronous>, transform_indices = @transform_3, window_bounds = array<i64: 16, 32>}, {pipeline_mode = #tpu.pipeline_mode<synchronous>, transform_indices = @transform_4, window_bounds = array<i64: 1, 32>}, {pipeline_mode = #tpu.pipeline_mode<synchronous>, transform_indices = @transform_5, window_bounds = array<i64: 32, 32>}, {pipeline_mode = #tpu.pipeline_mode<synchronous>, transform_indices = @transform_6, window_bounds = array<i64: 1, 32>}, {pipeline_mode = #tpu.pipeline_mode<synchronous>, transform_indices = @transform_7, window_bounds = array<i64: 32, 16>}, {pipeline_mode = #tpu.pipeline_mode<synchronous>, transform_indices = @transform_8, window_bounds = array<i64: 1, 16>}, {pipeline_mode = #tpu.pipeline_mode<synchronous>, transform_indices = @transform_9, window_bounds = array<i64: 32, 8>}, {pipeline_mode = #tpu.pipeline_mode<synchronous>, transform_indices = @transform_10, window_bounds = array<i64: 1, 8>}, {pipeline_mode = #tpu.pipeline_mode<synchronous>, transform_indices = @transform_11, window_bounds = array<i64: 32, 32>}, {pipeline_mode = #tpu.pipeline_mode<synchronous>, transform_indices = @transform_12, window_bounds = array<i64: 1, 32>}, {transform_indices = @transform_13, window_bounds = array<i64: 128, 16>}, {transform_indices = @transform_14, window_bounds = array<i64: 16, 128>}, {transform_indices = @transform_15, window_bounds = array<i64: 1, 128>}, {transform_indices = @transform_16, window_bounds = array<i64: 128, 8>}, {transform_indices = @transform_17, window_bounds = array<i64: 8, 128>}, {transform_indices = @transform_18, window_bounds = array<i64: 128, 32>}]} {
    %c0 = arith.constant 0 : index
    %c0_0 = arith.constant 0 : index
    %0 = vector.load %arg1[%c0, %c0_0] : memref<128x13xf32, #tpu.memory_space<vmem>>, vector<128x13xf32>
    %c0_1 = arith.constant 0 : index
    %c0_2 = arith.constant 0 : index
    %1 = vector.load %arg2[%c0_1, %c0_2] : memref<13x16xf32, #tpu.memory_space<vmem>>, vector<13x16xf32>
    %cst = arith.constant dense<0.000000e+00> : vector<128x16xf32>
    %2 = tpu.matmul %0, %1, %cst {dimension_numbers = #tpu.dot_dimension_numbers<[1], [0], [0], [1], [0, 0, 1, 1], [], []>} : vector<128x13xf32>, vector<13x16xf32>, vector<128x16xf32> -> vector<128x16xf32>
    %c0_3 = arith.constant 0 : index
    %c0_4 = arith.constant 0 : index
    %3 = vector.load %arg3[%c0_3, %c0_4] : memref<1x16xf32, #tpu.memory_space<vmem>>, vector<1x16xf32>
    %4 = vector.broadcast %3 : vector<1x16xf32> to vector<128x16xf32>
    %5 = arith.addf %2, %4 : vector<128x16xf32>
    %cst_5 = arith.constant 0.000000e+00 : f32
    %6 = vector.broadcast %cst_5 : f32 to vector<128x16xf32>
    %7 = arith.cmpf ogt, %5, %6 : vector<128x16xf32>
    %cst_6 = arith.constant 0.000000e+00 : f32
    %8 = vector.broadcast %cst_6 : f32 to vector<128x16xf32>
    %9 = arith.minimumf %5, %8 : vector<128x16xf32>
    %10 = math.exp %9 : vector<128x16xf32>
    %cst_7 = arith.constant 1.000000e+00 : f32
    %11 = vector.broadcast %cst_7 : f32 to vector<128x16xf32>
    %12 = arith.subf %10, %11 : vector<128x16xf32>
    %13 = arith.select %7, %5, %12 : vector<128x16xi1>, vector<128x16xf32>
    %c0_8 = arith.constant 0 : index
    %c0_9 = arith.constant 0 : index
    %14 = vector.load %arg4[%c0_8, %c0_9] : memref<16x32xf32, #tpu.memory_space<vmem>>, vector<16x32xf32>
    %cst_10 = arith.constant dense<0.000000e+00> : vector<128x32xf32>
    %15 = tpu.matmul %13, %14, %cst_10 {dimension_numbers = #tpu.dot_dimension_numbers<[1], [0], [0], [1], [0, 0, 1, 1], [], []>} : vector<128x16xf32>, vector<16x32xf32>, vector<128x32xf32> -> vector<128x32xf32>
    %c0_11 = arith.constant 0 : index
    %c0_12 = arith.constant 0 : index
    %16 = vector.load %arg5[%c0_11, %c0_12] : memref<1x32xf32, #tpu.memory_space<vmem>>, vector<1x32xf32>
    %17 = vector.broadcast %16 : vector<1x32xf32> to vector<128x32xf32>
    %18 = arith.addf %15, %17 : vector<128x32xf32>
    %cst_13 = arith.constant 0.000000e+00 : f32
    %19 = vector.broadcast %cst_13 : f32 to vector<128x32xf32>
    %20 = arith.cmpf ogt, %18, %19 : vector<128x32xf32>
    %cst_14 = arith.constant 0.000000e+00 : f32
    %21 = vector.broadcast %cst_14 : f32 to vector<128x32xf32>
    %22 = arith.minimumf %18, %21 : vector<128x32xf32>
    %23 = math.exp %22 : vector<128x32xf32>
    %cst_15 = arith.constant 1.000000e+00 : f32
    %24 = vector.broadcast %cst_15 : f32 to vector<128x32xf32>
    %25 = arith.subf %23, %24 : vector<128x32xf32>
    %26 = arith.select %20, %18, %25 : vector<128x32xi1>, vector<128x32xf32>
    %c0_16 = arith.constant 0 : index
    %c0_17 = arith.constant 0 : index
    %27 = vector.load %arg6[%c0_16, %c0_17] : memref<32x32xf32, #tpu.memory_space<vmem>>, vector<32x32xf32>
    %cst_18 = arith.constant dense<0.000000e+00> : vector<128x32xf32>
    %28 = tpu.matmul %26, %27, %cst_18 {dimension_numbers = #tpu.dot_dimension_numbers<[1], [0], [0], [1], [0, 0, 1, 1], [], []>} : vector<128x32xf32>, vector<32x32xf32>, vector<128x32xf32> -> vector<128x32xf32>
    %c0_19 = arith.constant 0 : index
    %c0_20 = arith.constant 0 : index
    %29 = vector.load %arg7[%c0_19, %c0_20] : memref<1x32xf32, #tpu.memory_space<vmem>>, vector<1x32xf32>
    %30 = vector.broadcast %29 : vector<1x32xf32> to vector<128x32xf32>
    %31 = arith.addf %28, %30 : vector<128x32xf32>
    %c0_21 = arith.constant 0 : index
    %c0_22 = arith.constant 0 : index
    %32 = vector.load %arg8[%c0_21, %c0_22] : memref<32x16xf32, #tpu.memory_space<vmem>>, vector<32x16xf32>
    %cst_23 = arith.constant dense<0.000000e+00> : vector<128x16xf32>
    %33 = tpu.matmul %31, %32, %cst_23 {dimension_numbers = #tpu.dot_dimension_numbers<[1], [0], [0], [1], [0, 0, 1, 1], [], []>} : vector<128x32xf32>, vector<32x16xf32>, vector<128x16xf32> -> vector<128x16xf32>
    %c0_24 = arith.constant 0 : index
    %c0_25 = arith.constant 0 : index
    %34 = vector.load %arg9[%c0_24, %c0_25] : memref<1x16xf32, #tpu.memory_space<vmem>>, vector<1x16xf32>
    %35 = vector.broadcast %34 : vector<1x16xf32> to vector<128x16xf32>
    %36 = arith.addf %33, %35 : vector<128x16xf32>
    %c0_26 = arith.constant 0 : index
    %c0_27 = arith.constant 0 : index
    %37 = vector.load %arg10[%c0_26, %c0_27] : memref<32x8xf32, #tpu.memory_space<vmem>>, vector<32x8xf32>
    %cst_28 = arith.constant dense<0.000000e+00> : vector<128x8xf32>
    %38 = tpu.matmul %31, %37, %cst_28 {dimension_numbers = #tpu.dot_dimension_numbers<[1], [0], [0], [1], [0, 0, 1, 1], [], []>} : vector<128x32xf32>, vector<32x8xf32>, vector<128x8xf32> -> vector<128x8xf32>
    %c0_29 = arith.constant 0 : index
    %c0_30 = arith.constant 0 : index
    %39 = vector.load %arg11[%c0_29, %c0_30] : memref<1x8xf32, #tpu.memory_space<vmem>>, vector<1x8xf32>
    %40 = vector.broadcast %39 : vector<1x8xf32> to vector<128x8xf32>
    %41 = arith.addf %38, %40 : vector<128x8xf32>
    %c0_31 = arith.constant 0 : index
    %c0_32 = arith.constant 0 : index
    %42 = vector.load %arg14[%c0_31, %c0_32] : memref<128x16xf32, #tpu.memory_space<vmem>>, vector<128x16xf32>
    tpu.vector_store %arg14[%c0_31, %c0_32], %36 {strides = array<i32>} : memref<128x16xf32, #tpu.memory_space<vmem>>, vector<128x16xf32>,
    %c0_33 = arith.constant 0 : index
    %c0_34 = arith.constant 0 : index
    %43 = vector.load %arg17[%c0_33, %c0_34] : memref<128x8xf32, #tpu.memory_space<vmem>>, vector<128x8xf32>
    tpu.vector_store %arg17[%c0_33, %c0_34], %41 {strides = array<i32>} : memref<128x8xf32, #tpu.memory_space<vmem>>, vector<128x8xf32>,
    %c0_35 = arith.constant 0 : index
    %c0_36 = arith.constant 0 : index
    %44 = vector.load %arg12[%c0_35, %c0_36] : memref<32x32xf32, #tpu.memory_space<vmem>>, vector<32x32xf32>
    %cst_37 = arith.constant dense<0.000000e+00> : vector<128x32xf32>
    %45 = tpu.matmul %31, %44, %cst_37 {dimension_numbers = #tpu.dot_dimension_numbers<[1], [0], [0], [1], [0, 0, 1, 1], [], []>} : vector<128x32xf32>, vector<32x32xf32>, vector<128x32xf32> -> vector<128x32xf32>
    %c0_38 = arith.constant 0 : index
    %c0_39 = arith.constant 0 : index
    %46 = vector.load %arg13[%c0_38, %c0_39] : memref<1x32xf32, #tpu.memory_space<vmem>>, vector<1x32xf32>
    %47 = vector.broadcast %46 : vector<1x32xf32> to vector<128x32xf32>
    %48 = arith.addf %45, %47 : vector<128x32xf32>
    %c0_40 = arith.constant 0 : index
    %c0_41 = arith.constant 0 : index
    %49 = vector.load %arg19[%c0_40, %c0_41] : memref<128x32xf32, #tpu.memory_space<vmem>>, vector<128x32xf32>
    tpu.vector_store %arg19[%c0_40, %c0_41], %48 {strides = array<i32>} : memref<128x32xf32, #tpu.memory_space<vmem>>, vector<128x32xf32>,
    %50 = tpu.iota {dimensions = array<i32: 0>} : vector<16x16xi32>
    %51 = tpu.iota {dimensions = array<i32: 1>} : vector<16x16xi32>
    %52 = arith.cmpi eq, %50, %51 : vector<16x16xi32>
    %53 = arith.extui %52 : vector<16x16xi1> to vector<16x16xi32>
    %54 = arith.sitofp %53 : vector<16x16xi32> to vector<16x16xf32>
    %cst_42 = arith.constant dense<0.000000e+00> : vector<16x128xf32>
    %55 = tpu.matmul %54, %36, %cst_42 {dimension_numbers = #tpu.dot_dimension_numbers<[1], [1], [0], [0], [0, 0, 1, 0], [], []>} : vector<16x16xf32>, vector<128x16xf32>, vector<16x128xf32> -> vector<16x128xf32>
    %56 = tpu.iota {dimensions = array<i32: 0>} : vector<8x8xi32>
    %57 = tpu.iota {dimensions = array<i32: 1>} : vector<8x8xi32>
    %58 = arith.cmpi eq, %56, %57 : vector<8x8xi32>
    %59 = arith.extui %58 : vector<8x8xi1> to vector<8x8xi32>
    %60 = arith.sitofp %59 : vector<8x8xi32> to vector<8x8xf32>
    %cst_43 = arith.constant dense<0.000000e+00> : vector<8x128xf32>
    %61 = tpu.matmul %60, %41, %cst_43 {dimension_numbers = #tpu.dot_dimension_numbers<[1], [1], [0], [0], [0, 0, 1, 0], [], []>} : vector<8x8xf32>, vector<128x8xf32>, vector<8x128xf32> -> vector<8x128xf32>
    %c0_44 = arith.constant 0 : index
    %c0_45 = arith.constant 0 : index
    %62 = vector.load %arg15[%c0_44, %c0_45] : memref<16x128xf32, #tpu.memory_space<vmem>>, vector<16x128xf32>
    tpu.vector_store %arg15[%c0_44, %c0_45], %55 {strides = array<i32>} : memref<16x128xf32, #tpu.memory_space<vmem>>, vector<16x128xf32>,
    %c0_46 = arith.constant 0 : index
    %c0_47 = arith.constant 0 : index
    %63 = vector.load %arg18[%c0_46, %c0_47] : memref<8x128xf32, #tpu.memory_space<vmem>>, vector<8x128xf32>
    tpu.vector_store %arg18[%c0_46, %c0_47], %61 {strides = array<i32>} : memref<8x128xf32, #tpu.memory_space<vmem>>, vector<8x128xf32>,
    %cst_48 = arith.constant 1.000000e+00 : f32
    %64 = vector.broadcast %cst_48 : f32 to vector<1x16xf32>
    %65 = arith.mulf %55, %55 : vector<16x128xf32>
    %cst_49 = arith.constant dense<0.000000e+00> : vector<1x128xf32>
    %66 = tpu.matmul %64, %65, %cst_49 {dimension_numbers = #tpu.dot_dimension_numbers<[1], [0], [0], [1], [0, 0, 1, 1], [], []>} : vector<1x16xf32>, vector<16x128xf32>, vector<1x128xf32> -> vector<1x128xf32>
    %c0_50 = arith.constant 0 : index
    %c0_51 = arith.constant 0 : index
    %67 = vector.load %arg16[%c0_50, %c0_51] : memref<1x128xf32, #tpu.memory_space<vmem>>, vector<1x128xf32>
    tpu.vector_store %arg16[%c0_50, %c0_51], %66 {strides = array<i32>} : memref<1x128xf32, #tpu.memory_space<vmem>>, vector<1x128xf32>,
    return
  }
  func.func @transform_0(%arg0: i32) -> (i32, i32) {
    %c0_i32 = arith.constant 0 : i32
    %c0_i32_0 = arith.constant 0 : i32
    return %arg0, %c0_i32 : i32, i32
  }
  func.func @transform_1(%arg0: i32) -> (i32, i32) {
    %c0_i32 = arith.constant 0 : i32
    %c0_i32_0 = arith.constant 0 : i32
    %c0_i32_1 = arith.constant 0 : i32
    return %c0_i32, %c0_i32_0 : i32, i32
  }
  func.func @transform_2(%arg0: i32) -> (i32, i32) {
    %c0_i32 = arith.constant 0 : i32
    %c0_i32_0 = arith.constant 0 : i32
    %c0_i32_1 = arith.constant 0 : i32
    return %c0_i32, %c0_i32_0 : i32, i32
  }
  func.func @transform_3(%arg0: i32) -> (i32, i32) {
    %c0_i32 = arith.constant 0 : i32
    %c0_i32_0 = arith.constant 0 : i32
    %c0_i32_1 = arith.constant 0 : i32
    return %c0_i32, %c0_i32_0 : i32, i32
  }
  func.func @transform_4(%arg0: i32) -> (i32, i32) {
    %c0_i32 = arith.constant 0 : i32
    %c0_i32_0 = arith.constant 0 : i32
    %c0_i32_1 = arith.constant 0 : i32
    return %c0_i32, %c0_i32_0 : i32, i32
  }
  func.func @transform_5(%arg0: i32) -> (i32, i32) {
    %c0_i32 = arith.constant 0 : i32
    %c0_i32_0 = arith.constant 0 : i32
    %c0_i32_1 = arith.constant 0 : i32
    return %c0_i32, %c0_i32_0 : i32, i32
  }
  func.func @transform_6(%arg0: i32) -> (i32, i32) {
    %c0_i32 = arith.constant 0 : i32
    %c0_i32_0 = arith.constant 0 : i32
    %c0_i32_1 = arith.constant 0 : i32
    return %c0_i32, %c0_i32_0 : i32, i32
  }
  func.func @transform_7(%arg0: i32) -> (i32, i32) {
    %c0_i32 = arith.constant 0 : i32
    %c0_i32_0 = arith.constant 0 : i32
    %c0_i32_1 = arith.constant 0 : i32
    return %c0_i32, %c0_i32_0 : i32, i32
  }
  func.func @transform_8(%arg0: i32) -> (i32, i32) {
    %c0_i32 = arith.constant 0 : i32
    %c0_i32_0 = arith.constant 0 : i32
    %c0_i32_1 = arith.constant 0 : i32
    return %c0_i32, %c0_i32_0 : i32, i32
  }
  func.func @transform_9(%arg0: i32) -> (i32, i32) {
    %c0_i32 = arith.constant 0 : i32
    %c0_i32_0 = arith.constant 0 : i32
    %c0_i32_1 = arith.constant 0 : i32
    return %c0_i32, %c0_i32_0 : i32, i32
  }
  func.func @transform_10(%arg0: i32) -> (i32, i32) {
    %c0_i32 = arith.constant 0 : i32
    %c0_i32_0 = arith.constant 0 : i32
    %c0_i32_1 = arith.constant 0 : i32
    return %c0_i32, %c0_i32_0 : i32, i32
  }
  func.func @transform_11(%arg0: i32) -> (i32, i32) {
    %c0_i32 = arith.constant 0 : i32
    %c0_i32_0 = arith.constant 0 : i32
    %c0_i32_1 = arith.constant 0 : i32
    return %c0_i32, %c0_i32_0 : i32, i32
  }
  func.func @transform_12(%arg0: i32) -> (i32, i32) {
    %c0_i32 = arith.constant 0 : i32
    %c0_i32_0 = arith.constant 0 : i32
    %c0_i32_1 = arith.constant 0 : i32
    return %c0_i32, %c0_i32_0 : i32, i32
  }
  func.func @transform_13(%arg0: i32) -> (i32, i32) {
    %c0_i32 = arith.constant 0 : i32
    %c0_i32_0 = arith.constant 0 : i32
    return %arg0, %c0_i32 : i32, i32
  }
  func.func @transform_14(%arg0: i32) -> (i32, i32) {
    %c0_i32 = arith.constant 0 : i32
    %c0_i32_0 = arith.constant 0 : i32
    return %c0_i32, %arg0 : i32, i32
  }
  func.func @transform_15(%arg0: i32) -> (i32, i32) {
    %c0_i32 = arith.constant 0 : i32
    %c0_i32_0 = arith.constant 0 : i32
    return %c0_i32, %arg0 : i32, i32
  }
  func.func @transform_16(%arg0: i32) -> (i32, i32) {
    %c0_i32 = arith.constant 0 : i32
    %c0_i32_0 = arith.constant 0 : i32
    return %arg0, %c0_i32 : i32, i32
  }
  func.func @transform_17(%arg0: i32) -> (i32, i32) {
    %c0_i32 = arith.constant 0 : i32
    %c0_i32_0 = arith.constant 0 : i32
    return %c0_i32, %arg0 : i32, i32
  }
  func.func @transform_18(%arg0: i32) -> (i32, i32) {
    %c0_i32 = arith.constant 0 : i32
    %c0_i32_0 = arith.constant 0 : i32
    return %arg0, %c0_i32 : i32, i32
  }
}

module attributes {stable_mosaic.version = 11 : i64} {
  func.func @agg_head_kernel(%arg0: i32, %arg1: memref<64x16xf32, #tpu.memory_space<vmem>>, %arg2: memref<64x1xf32, #tpu.memory_space<vmem>>, %arg3: memref<64x32xf32, #tpu.memory_space<vmem>>, %arg4: memref<64x13xf32, #tpu.memory_space<vmem>>, %arg5: memref<16x128xf32, #tpu.memory_space<vmem>>, %arg6: memref<1x128xf32, #tpu.memory_space<vmem>>, %arg7: memref<1x128xf32, #tpu.memory_space<vmem>>, %arg8: memref<128x8xf32, #tpu.memory_space<vmem>>, %arg9: memref<8x128xf32, #tpu.memory_space<vmem>>, %arg10: memref<8x32xf32, #tpu.memory_space<vmem>>, %arg11: memref<8x32xf32, #tpu.memory_space<vmem>>, %arg12: memref<32x16xf32, #tpu.memory_space<vmem>>, %arg13: memref<1x16xf32, #tpu.memory_space<vmem>>, %arg14: memref<16x4xf32, #tpu.memory_space<vmem>>, %arg15: memref<1x4xf32, #tpu.memory_space<vmem>>, %arg16: memref<4x4xf32, #tpu.memory_space<vmem>>, %arg17: memref<13x4xf32, #tpu.memory_space<vmem>>, %arg18: memref<1x4xf32, #tpu.memory_space<vmem>>, %arg19: memref<4x1xf32, #tpu.memory_space<vmem>>, %arg20: memref<1x1xf32, #tpu.memory_space<vmem>>, %arg21: memref<64x1xf32, #tpu.memory_space<vmem>>, %arg22: memref<64x128xi32, #tpu.memory_space<vmem>>) attributes {dimension_semantics = [#tpu.dimension_semantics<parallel>], iteration_bounds = array<i64: 2>, scalar_prefetch = 0 : i64, scratch_operands = 1 : i64, tpu.core_type = #tpu.core_type<tc>, window_params = [{transform_indices = @transform_0, window_bounds = array<i64: 64, 16>}, {transform_indices = @transform_1, window_bounds = array<i64: 64, 1>}, {transform_indices = @transform_2, window_bounds = array<i64: 64, 32>}, {transform_indices = @transform_3, window_bounds = array<i64: 64, 13>}, {pipeline_mode = #tpu.pipeline_mode<synchronous>, transform_indices = @transform_4, window_bounds = array<i64: 16, 128>}, {pipeline_mode = #tpu.pipeline_mode<synchronous>, transform_indices = @transform_5, window_bounds = array<i64: 1, 128>}, {pipeline_mode = #tpu.pipeline_mode<synchronous>, transform_indices = @transform_6, window_bounds = array<i64: 1, 128>}, {pipeline_mode = #tpu.pipeline_mode<synchronous>, transform_indices = @transform_7, window_bounds = array<i64: 128, 8>}, {pipeline_mode = #tpu.pipeline_mode<synchronous>, transform_indices = @transform_8, window_bounds = array<i64: 8, 128>}, {pipeline_mode = #tpu.pipeline_mode<synchronous>, transform_indices = @transform_9, window_bounds = array<i64: 8, 32>}, {pipeline_mode = #tpu.pipeline_mode<synchronous>, transform_indices = @transform_10, window_bounds = array<i64: 8, 32>}, {pipeline_mode = #tpu.pipeline_mode<synchronous>, transform_indices = @transform_11, window_bounds = array<i64: 32, 16>}, {pipeline_mode = #tpu.pipeline_mode<synchronous>, transform_indices = @transform_12, window_bounds = array<i64: 1, 16>}, {pipeline_mode = #tpu.pipeline_mode<synchronous>, transform_indices = @transform_13, window_bounds = array<i64: 16, 4>}, {pipeline_mode = #tpu.pipeline_mode<synchronous>, transform_indices = @transform_14, window_bounds = array<i64: 1, 4>}, {pipeline_mode = #tpu.pipeline_mode<synchronous>, transform_indices = @transform_15, window_bounds = array<i64: 4, 4>}, {pipeline_mode = #tpu.pipeline_mode<synchronous>, transform_indices = @transform_16, window_bounds = array<i64: 13, 4>}, {pipeline_mode = #tpu.pipeline_mode<synchronous>, transform_indices = @transform_17, window_bounds = array<i64: 1, 4>}, {pipeline_mode = #tpu.pipeline_mode<synchronous>, transform_indices = @transform_18, window_bounds = array<i64: 4, 1>}, {pipeline_mode = #tpu.pipeline_mode<synchronous>, transform_indices = @transform_19, window_bounds = array<i64: 1, 1>}, {transform_indices = @transform_20, window_bounds = array<i64: 64, 1>}]} {
    %c0 = arith.constant 0 : index
    %c0_0 = arith.constant 0 : index
    %0 = vector.load %arg1[%c0, %c0_0] : memref<64x16xf32, #tpu.memory_space<vmem>>, vector<64x16xf32>
    %c0_1 = arith.constant 0 : index
    %c0_2 = arith.constant 0 : index
    %1 = vector.load %arg2[%c0_1, %c0_2] : memref<64x1xf32, #tpu.memory_space<vmem>>, vector<64x1xf32>
    %2 = arith.mulf %0, %0 : vector<64x16xf32>
    %cst = arith.constant 1.000000e+00 : f32
    %3 = vector.broadcast %cst : f32 to vector<16x1xf32>
    %cst_3 = arith.constant dense<0.000000e+00> : vector<64x1xf32>
    %4 = tpu.matmul %2, %3, %cst_3 {dimension_numbers = #tpu.dot_dimension_numbers<[1], [0], [0], [1], [0, 0, 1, 1], [], []>} : vector<64x16xf32>, vector<16x1xf32>, vector<64x1xf32> -> vector<64x1xf32>
    %c0_i32 = arith.constant 0 : i32
    %c1_i32 = arith.constant 1 : i32
    %5 = arith.muli %c0_i32, %c1_i32 : i32
    %c0_i32_4 = arith.constant 0 : i32
    %6 = arith.addi %c0_i32_4, %5 : i32
    %c128_i32 = arith.constant 128 : i32
    %7 = arith.muli %6, %c128_i32 : i32
    %8 = tpu.assume_multiple %7, 128 : i32
    %c0_5 = arith.constant 0 : index
    %9 = arith.index_cast %8 : i32 to index
    %10 = vector.load %arg5[%c0_5, %9] : memref<16x128xf32, #tpu.memory_space<vmem>>, vector<16x128xf32>
    %cst_6 = arith.constant dense<0.000000e+00> : vector<64x128xf32>
    %11 = tpu.matmul %0, %10, %cst_6 {dimension_numbers = #tpu.dot_dimension_numbers<[1], [0], [0], [1], [0, 0, 1, 1], [], []>} : vector<64x16xf32>, vector<16x128xf32>, vector<64x128xf32> -> vector<64x128xf32>
    %c0_7 = arith.constant 0 : index
    %12 = arith.index_cast %8 : i32 to index
    %13 = vector.load %arg6[%c0_7, %12] : memref<1x128xf32, #tpu.memory_space<vmem>>, vector<1x128xf32>
    %14 = vector.broadcast %4 : vector<64x1xf32> to vector<64x128xf32>
    %15 = vector.broadcast %13 : vector<1x128xf32> to vector<64x128xf32>
    %16 = arith.addf %14, %15 : vector<64x128xf32>
    %cst_8 = arith.constant 2.000000e+00 : f32
    %17 = vector.broadcast %cst_8 : f32 to vector<64x128xf32>
    %18 = arith.mulf %17, %11 : vector<64x128xf32>
    %19 = arith.subf %16, %18 : vector<64x128xf32>
    %cst_9 = arith.constant 0.000000e+00 : f32
    %20 = vector.broadcast %cst_9 : f32 to vector<64x128xf32>
    %21 = arith.maximumf %19, %20 : vector<64x128xf32>
    %c0_10 = arith.constant 0 : index
    %22 = arith.index_cast %8 : i32 to index
    %23 = vector.load %arg7[%c0_10, %22] : memref<1x128xf32, #tpu.memory_space<vmem>>, vector<1x128xf32>
    %24 = vector.broadcast %1 : vector<64x1xf32> to vector<64x128xf32>
    %25 = vector.broadcast %23 : vector<1x128xf32> to vector<64x128xf32>
    %26 = arith.cmpf oeq, %24, %25 : vector<64x128xf32>
    %cst_11 = arith.constant 1.000000e+09 : f32
    %27 = vector.broadcast %cst_11 : f32 to vector<64x128xf32>
    %28 = arith.select %26, %21, %27 : vector<64x128xi1>, vector<64x128xf32>
    %29 = tpu.bitcast %28 : vector<64x128xf32> -> vector<64x128xi32>
    %c0_12 = arith.constant 0 : index
    %30 = arith.index_cast %8 : i32 to index
    %31 = vector.load %arg22[%c0_12, %30] : memref<64x128xi32, #tpu.memory_space<vmem>>, vector<64x128xi32>
    tpu.vector_store %arg22[%c0_12, %30], %29 {strides = array<i32>} : memref<64x128xi32, #tpu.memory_space<vmem>>, vector<64x128xi32>,
    %c1_i32_13 = arith.constant 1 : i32
    %c-1_i32 = arith.constant -1 : i32
    %32 = vector.broadcast %c-1_i32 : i32 to vector<64x1xi32>
    %c2139095040_i32 = arith.constant 2139095040 : i32
    %33 = vector.broadcast %c2139095040_i32 : i32 to vector<64x1xi32>
    %c0_i32_14 = arith.constant 0 : i32
    %c32_i32 = arith.constant 32 : i32
    %34 = arith.addi %c0_i32_14, %c32_i32 : i32
    %c1_i32_15 = arith.constant 1 : i32
    %35:2 = scf.for %arg23 = %c0_i32_14 to %34 step %c1_i32_15 iter_args(%arg24 = %32, %arg25 = %33) -> (vector<64x1xi32>, vector<64x1xi32>)  : i32 {
      %232 = arith.subi %arg25, %arg24 : vector<64x1xi32>
      %c1_i32_90 = arith.constant 1 : i32
      %233 = vector.broadcast %c1_i32_90 : i32 to vector<64x1xi32>
      %234 = arith.shrsi %232, %233 : vector<64x1xi32>
      %235 = arith.addi %arg24, %234 : vector<64x1xi32>
      %c0_91 = arith.constant 0 : index
      %c0_92 = arith.constant 0 : index
      %236 = vector.load %arg22[%c0_91, %c0_92] : memref<64x128xi32, #tpu.memory_space<vmem>>, vector<64x128xi32>
      %237 = vector.broadcast %235 : vector<64x1xi32> to vector<64x128xi32>
      %238 = arith.cmpi sle, %236, %237 : vector<64x128xi32>
      %239 = arith.extui %238 : vector<64x128xi1> to vector<64x128xi32>
      %cst_93 = arith.constant dense<0> : vector<64xi32>
      %240 = vector.multi_reduction <add>, %239, %cst_93 [1] : vector<64x128xi32> to vector<64xi32>
      %241 = vector.shape_cast %240 : vector<64xi32> to vector<64x1xi32>
      %c40_i32 = arith.constant 40 : i32
      %242 = vector.broadcast %c40_i32 : i32 to vector<64x1xi32>
      %243 = arith.cmpi sge, %241, %242 : vector<64x1xi32>
      %244 = arith.select %243, %arg24, %235 : vector<64x1xi1>, vector<64x1xi32>
      %245 = arith.select %243, %235, %arg25 : vector<64x1xi1>, vector<64x1xi32>
      scf.yield %244, %245 : vector<64x1xi32>, vector<64x1xi32>
    }
    %cst_16 = arith.constant 0.000000e+00 : f32
    %36 = vector.broadcast %cst_16 : f32 to vector<64x8xf32>
    %cst_17 = arith.constant -1.000000e+30 : f32
    %37 = vector.broadcast %cst_17 : f32 to vector<64x1xf32>
    %cst_18 = arith.constant -1.000000e+30 : f32
    %38 = vector.broadcast %cst_18 : f32 to vector<64x1xf32>
    %cst_19 = arith.constant -1.000000e+30 : f32
    %39 = vector.broadcast %cst_19 : f32 to vector<64x1xf32>
    %cst_20 = arith.constant -1.000000e+30 : f32
    %40 = vector.broadcast %cst_20 : f32 to vector<64x1xf32>
    %cst_21 = arith.constant -1.000000e+30 : f32
    %41 = vector.broadcast %cst_21 : f32 to vector<64x1xf32>
    %cst_22 = arith.constant -1.000000e+30 : f32
    %42 = vector.broadcast %cst_22 : f32 to vector<64x1xf32>
    %cst_23 = arith.constant -1.000000e+30 : f32
    %43 = vector.broadcast %cst_23 : f32 to vector<64x1xf32>
    %cst_24 = arith.constant -1.000000e+30 : f32
    %44 = vector.broadcast %cst_24 : f32 to vector<64x1xf32>
    %c0_i32_25 = arith.constant 0 : i32
    %c128_i32_26 = arith.constant 128 : i32
    %45 = arith.muli %c0_i32_25, %c128_i32_26 : i32
    %46 = tpu.assume_multiple %45, 128 : i32
    %c0_27 = arith.constant 0 : index
    %47 = arith.index_cast %46 : i32 to index
    %48 = vector.load %arg22[%c0_27, %47] : memref<64x128xi32, #tpu.memory_space<vmem>>, vector<64x128xi32>
    %c0_28 = arith.constant 0 : index
    %49 = arith.index_cast %46 : i32 to index
    %50 = vector.load %arg7[%c0_28, %49] : memref<1x128xf32, #tpu.memory_space<vmem>>, vector<1x128xf32>
    %51 = vector.broadcast %1 : vector<64x1xf32> to vector<64x128xf32>
    %52 = vector.broadcast %50 : vector<1x128xf32> to vector<64x128xf32>
    %53 = arith.cmpf oeq, %51, %52 : vector<64x128xf32>
    %54 = vector.broadcast %35#1 : vector<64x1xi32> to vector<64x128xi32>
    %55 = arith.cmpi sle, %48, %54 : vector<64x128xi32>
    %56 = arith.andi %53, %55 : vector<64x128xi1>
    %57 = tpu.bitcast %48 : vector<64x128xi32> -> vector<64x128xf32>
    %cst_29 = arith.constant -1.000000e+01 : f32
    %58 = vector.broadcast %cst_29 : f32 to vector<64x128xf32>
    %59 = arith.mulf %58, %57 : vector<64x128xf32>
    %60 = math.exp %59 : vector<64x128xf32>
    %cst_30 = arith.constant 0.000000e+00 : f32
    %61 = vector.broadcast %cst_30 : f32 to vector<64x128xf32>
    %62 = arith.select %56, %60, %61 : vector<64x128xi1>, vector<64x128xf32>
    %cst_31 = arith.constant 0.000000e+00 : f32
    %cst_32 = arith.constant -1.000000e+30 : f32
    %63 = vector.broadcast %cst_31 : f32 to vector<64x128xf32>
    %64 = vector.broadcast %cst_32 : f32 to vector<64x128xf32>
    %65 = arith.select %56, %63, %64 : vector<64x128xi1>, vector<64x128xf32>
    %66 = arith.index_cast %46 : i32 to index
    %c0_33 = arith.constant 0 : index
    %67 = vector.load %arg8[%66, %c0_33] : memref<128x8xf32, #tpu.memory_space<vmem>>, vector<128x8xf32>
    %c0_34 = arith.constant 0 : index
    %68 = arith.index_cast %46 : i32 to index
    %69 = vector.load %arg9[%c0_34, %68] : memref<8x128xf32, #tpu.memory_space<vmem>>, vector<8x128xf32>
    %cst_35 = arith.constant dense<0.000000e+00> : vector<64x8xf32>
    %70 = tpu.matmul %62, %67, %cst_35 {dimension_numbers = #tpu.dot_dimension_numbers<[1], [0], [0], [1], [0, 0, 1, 1], [], []>} : vector<64x128xf32>, vector<128x8xf32>, vector<64x8xf32> -> vector<64x8xf32>
    %71 = arith.addf %36, %70 : vector<64x8xf32>
    %72 = vector.extract_strided_slice %69 {offsets = [0, 0], sizes = [1, 128], strides = [1, 1]} : vector<8x128xf32> to vector<1x128xf32>
    %73 = vector.broadcast %72 : vector<1x128xf32> to vector<64x128xf32>
    %74 = arith.mulf %62, %73 : vector<64x128xf32>
    %75 = arith.addf %74, %65 : vector<64x128xf32>
    %cst_36 = arith.constant dense<0xFF800000> : vector<64xf32>
    %76 = vector.multi_reduction <maximumf>, %75, %cst_36 [1] : vector<64x128xf32> to vector<64xf32>
    %77 = vector.shape_cast %76 : vector<64xf32> to vector<64x1xf32>
    %78 = arith.maximumf %37, %77 : vector<64x1xf32>
    %79 = vector.extract_strided_slice %69 {offsets = [1, 0], sizes = [1, 128], strides = [1, 1]} : vector<8x128xf32> to vector<1x128xf32>
    %80 = vector.broadcast %79 : vector<1x128xf32> to vector<64x128xf32>
    %81 = arith.mulf %62, %80 : vector<64x128xf32>
    %82 = arith.addf %81, %65 : vector<64x128xf32>
    %cst_37 = arith.constant dense<0xFF800000> : vector<64xf32>
    %83 = vector.multi_reduction <maximumf>, %82, %cst_37 [1] : vector<64x128xf32> to vector<64xf32>
    %84 = vector.shape_cast %83 : vector<64xf32> to vector<64x1xf32>
    %85 = arith.maximumf %38, %84 : vector<64x1xf32>
    %86 = vector.extract_strided_slice %69 {offsets = [2, 0], sizes = [1, 128], strides = [1, 1]} : vector<8x128xf32> to vector<1x128xf32>
    %87 = vector.broadcast %86 : vector<1x128xf32> to vector<64x128xf32>
    %88 = arith.mulf %62, %87 : vector<64x128xf32>
    %89 = arith.addf %88, %65 : vector<64x128xf32>
    %cst_38 = arith.constant dense<0xFF800000> : vector<64xf32>
    %90 = vector.multi_reduction <maximumf>, %89, %cst_38 [1] : vector<64x128xf32> to vector<64xf32>
    %91 = vector.shape_cast %90 : vector<64xf32> to vector<64x1xf32>
    %92 = arith.maximumf %39, %91 : vector<64x1xf32>
    %93 = vector.extract_strided_slice %69 {offsets = [3, 0], sizes = [1, 128], strides = [1, 1]} : vector<8x128xf32> to vector<1x128xf32>
    %94 = vector.broadcast %93 : vector<1x128xf32> to vector<64x128xf32>
    %95 = arith.mulf %62, %94 : vector<64x128xf32>
    %96 = arith.addf %95, %65 : vector<64x128xf32>
    %cst_39 = arith.constant dense<0xFF800000> : vector<64xf32>
    %97 = vector.multi_reduction <maximumf>, %96, %cst_39 [1] : vector<64x128xf32> to vector<64xf32>
    %98 = vector.shape_cast %97 : vector<64xf32> to vector<64x1xf32>
    %99 = arith.maximumf %40, %98 : vector<64x1xf32>
    %100 = vector.extract_strided_slice %69 {offsets = [4, 0], sizes = [1, 128], strides = [1, 1]} : vector<8x128xf32> to vector<1x128xf32>
    %101 = vector.broadcast %100 : vector<1x128xf32> to vector<64x128xf32>
    %102 = arith.mulf %62, %101 : vector<64x128xf32>
    %103 = arith.addf %102, %65 : vector<64x128xf32>
    %cst_40 = arith.constant dense<0xFF800000> : vector<64xf32>
    %104 = vector.multi_reduction <maximumf>, %103, %cst_40 [1] : vector<64x128xf32> to vector<64xf32>
    %105 = vector.shape_cast %104 : vector<64xf32> to vector<64x1xf32>
    %106 = arith.maximumf %41, %105 : vector<64x1xf32>
    %107 = vector.extract_strided_slice %69 {offsets = [5, 0], sizes = [1, 128], strides = [1, 1]} : vector<8x128xf32> to vector<1x128xf32>
    %108 = vector.broadcast %107 : vector<1x128xf32> to vector<64x128xf32>
    %109 = arith.mulf %62, %108 : vector<64x128xf32>
    %110 = arith.addf %109, %65 : vector<64x128xf32>
    %cst_41 = arith.constant dense<0xFF800000> : vector<64xf32>
    %111 = vector.multi_reduction <maximumf>, %110, %cst_41 [1] : vector<64x128xf32> to vector<64xf32>
    %112 = vector.shape_cast %111 : vector<64xf32> to vector<64x1xf32>
    %113 = arith.maximumf %42, %112 : vector<64x1xf32>
    %114 = vector.extract_strided_slice %69 {offsets = [6, 0], sizes = [1, 128], strides = [1, 1]} : vector<8x128xf32> to vector<1x128xf32>
    %115 = vector.broadcast %114 : vector<1x128xf32> to vector<64x128xf32>
    %116 = arith.mulf %62, %115 : vector<64x128xf32>
    %117 = arith.addf %116, %65 : vector<64x128xf32>
    %cst_42 = arith.constant dense<0xFF800000> : vector<64xf32>
    %118 = vector.multi_reduction <maximumf>, %117, %cst_42 [1] : vector<64x128xf32> to vector<64xf32>
    %119 = vector.shape_cast %118 : vector<64xf32> to vector<64x1xf32>
    %120 = arith.maximumf %43, %119 : vector<64x1xf32>
    %121 = vector.extract_strided_slice %69 {offsets = [7, 0], sizes = [1, 128], strides = [1, 1]} : vector<8x128xf32> to vector<1x128xf32>
    %122 = vector.broadcast %121 : vector<1x128xf32> to vector<64x128xf32>
    %123 = arith.mulf %62, %122 : vector<64x128xf32>
    %124 = arith.addf %123, %65 : vector<64x128xf32>
    %cst_43 = arith.constant dense<0xFF800000> : vector<64xf32>
    %125 = vector.multi_reduction <maximumf>, %124, %cst_43 [1] : vector<64x128xf32> to vector<64xf32>
    %126 = vector.shape_cast %125 : vector<64xf32> to vector<64x1xf32>
    %127 = arith.maximumf %44, %126 : vector<64x1xf32>
    %c1_i32_44 = arith.constant 1 : i32
    %c0_45 = arith.constant 0 : index
    %c0_46 = arith.constant 0 : index
    %128 = vector.load %arg3[%c0_45, %c0_46] : memref<64x32xf32, #tpu.memory_space<vmem>>, vector<64x32xf32>
    %c0_47 = arith.constant 0 : index
    %c0_48 = arith.constant 0 : index
    %129 = vector.load %arg10[%c0_47, %c0_48] : memref<8x32xf32, #tpu.memory_space<vmem>>, vector<8x32xf32>
    %cst_49 = arith.constant dense<0.000000e+00> : vector<64x32xf32>
    %130 = tpu.matmul %71, %129, %cst_49 {dimension_numbers = #tpu.dot_dimension_numbers<[1], [0], [0], [1], [0, 0, 1, 1], [], []>} : vector<64x8xf32>, vector<8x32xf32>, vector<64x32xf32> -> vector<64x32xf32>
    %131 = arith.addf %128, %130 : vector<64x32xf32>
    %c0_50 = arith.constant 0 : index
    %c0_51 = arith.constant 0 : index
    %132 = vector.load %arg11[%c0_50, %c0_51] : memref<8x32xf32, #tpu.memory_space<vmem>>, vector<8x32xf32>
    %133 = vector.extract_strided_slice %132 {offsets = [0, 0], sizes = [1, 32], strides = [1, 1]} : vector<8x32xf32> to vector<1x32xf32>
    %134 = vector.broadcast %78 : vector<64x1xf32> to vector<64x32xf32>
    %135 = vector.broadcast %133 : vector<1x32xf32> to vector<64x32xf32>
    %136 = arith.mulf %134, %135 : vector<64x32xf32>
    %137 = arith.addf %131, %136 : vector<64x32xf32>
    %138 = vector.extract_strided_slice %132 {offsets = [1, 0], sizes = [1, 32], strides = [1, 1]} : vector<8x32xf32> to vector<1x32xf32>
    %139 = vector.broadcast %85 : vector<64x1xf32> to vector<64x32xf32>
    %140 = vector.broadcast %138 : vector<1x32xf32> to vector<64x32xf32>
    %141 = arith.mulf %139, %140 : vector<64x32xf32>
    %142 = arith.addf %137, %141 : vector<64x32xf32>
    %143 = vector.extract_strided_slice %132 {offsets = [2, 0], sizes = [1, 32], strides = [1, 1]} : vector<8x32xf32> to vector<1x32xf32>
    %144 = vector.broadcast %92 : vector<64x1xf32> to vector<64x32xf32>
    %145 = vector.broadcast %143 : vector<1x32xf32> to vector<64x32xf32>
    %146 = arith.mulf %144, %145 : vector<64x32xf32>
    %147 = arith.addf %142, %146 : vector<64x32xf32>
    %148 = vector.extract_strided_slice %132 {offsets = [3, 0], sizes = [1, 32], strides = [1, 1]} : vector<8x32xf32> to vector<1x32xf32>
    %149 = vector.broadcast %99 : vector<64x1xf32> to vector<64x32xf32>
    %150 = vector.broadcast %148 : vector<1x32xf32> to vector<64x32xf32>
    %151 = arith.mulf %149, %150 : vector<64x32xf32>
    %152 = arith.addf %147, %151 : vector<64x32xf32>
    %153 = vector.extract_strided_slice %132 {offsets = [4, 0], sizes = [1, 32], strides = [1, 1]} : vector<8x32xf32> to vector<1x32xf32>
    %154 = vector.broadcast %106 : vector<64x1xf32> to vector<64x32xf32>
    %155 = vector.broadcast %153 : vector<1x32xf32> to vector<64x32xf32>
    %156 = arith.mulf %154, %155 : vector<64x32xf32>
    %157 = arith.addf %152, %156 : vector<64x32xf32>
    %158 = vector.extract_strided_slice %132 {offsets = [5, 0], sizes = [1, 32], strides = [1, 1]} : vector<8x32xf32> to vector<1x32xf32>
    %159 = vector.broadcast %113 : vector<64x1xf32> to vector<64x32xf32>
    %160 = vector.broadcast %158 : vector<1x32xf32> to vector<64x32xf32>
    %161 = arith.mulf %159, %160 : vector<64x32xf32>
    %162 = arith.addf %157, %161 : vector<64x32xf32>
    %163 = vector.extract_strided_slice %132 {offsets = [6, 0], sizes = [1, 32], strides = [1, 1]} : vector<8x32xf32> to vector<1x32xf32>
    %164 = vector.broadcast %120 : vector<64x1xf32> to vector<64x32xf32>
    %165 = vector.broadcast %163 : vector<1x32xf32> to vector<64x32xf32>
    %166 = arith.mulf %164, %165 : vector<64x32xf32>
    %167 = arith.addf %162, %166 : vector<64x32xf32>
    %168 = vector.extract_strided_slice %132 {offsets = [7, 0], sizes = [1, 32], strides = [1, 1]} : vector<8x32xf32> to vector<1x32xf32>
    %169 = vector.broadcast %127 : vector<64x1xf32> to vector<64x32xf32>
    %170 = vector.broadcast %168 : vector<1x32xf32> to vector<64x32xf32>
    %171 = arith.mulf %169, %170 : vector<64x32xf32>
    %172 = arith.addf %167, %171 : vector<64x32xf32>
    %cst_52 = arith.constant dense<0.000000e+00> : vector<64xf32>
    %173 = vector.multi_reduction <add>, %172, %cst_52 [1] : vector<64x32xf32> to vector<64xf32>
    %174 = vector.shape_cast %173 : vector<64xf32> to vector<64x1xf32>
    %cst_53 = arith.constant 3.200000e+01 : f32
    %175 = vector.broadcast %cst_53 : f32 to vector<64x1xf32>
    %176 = arith.divf %174, %175 : vector<64x1xf32>
    %177 = vector.broadcast %176 : vector<64x1xf32> to vector<64x32xf32>
    %178 = arith.subf %172, %177 : vector<64x32xf32>
    %179 = arith.mulf %178, %178 : vector<64x32xf32>
    %cst_54 = arith.constant dense<0.000000e+00> : vector<64xf32>
    %180 = vector.multi_reduction <add>, %179, %cst_54 [1] : vector<64x32xf32> to vector<64xf32>
    %181 = vector.shape_cast %180 : vector<64xf32> to vector<64x1xf32>
    %cst_55 = arith.constant 3.200000e+01 : f32
    %182 = vector.broadcast %cst_55 : f32 to vector<64x1xf32>
    %183 = arith.divf %181, %182 : vector<64x1xf32>
    %184 = vector.broadcast %176 : vector<64x1xf32> to vector<64x32xf32>
    %185 = arith.subf %172, %184 : vector<64x32xf32>
    %cst_56 = arith.constant 9.99999974E-6 : f32
    %186 = vector.broadcast %cst_56 : f32 to vector<64x1xf32>
    %187 = arith.addf %183, %186 : vector<64x1xf32>
    %188 = math.rsqrt %187 : vector<64x1xf32>
    %189 = vector.broadcast %188 : vector<64x1xf32> to vector<64x32xf32>
    %190 = arith.mulf %185, %189 : vector<64x32xf32>
    %c0_57 = arith.constant 0 : index
    %c0_58 = arith.constant 0 : index
    %191 = vector.load %arg12[%c0_57, %c0_58] : memref<32x16xf32, #tpu.memory_space<vmem>>, vector<32x16xf32>
    %cst_59 = arith.constant dense<0.000000e+00> : vector<64x16xf32>
    %192 = tpu.matmul %190, %191, %cst_59 {dimension_numbers = #tpu.dot_dimension_numbers<[1], [0], [0], [1], [0, 0, 1, 1], [], []>} : vector<64x32xf32>, vector<32x16xf32>, vector<64x16xf32> -> vector<64x16xf32>
    %c0_60 = arith.constant 0 : index
    %c0_61 = arith.constant 0 : index
    %193 = vector.load %arg13[%c0_60, %c0_61] : memref<1x16xf32, #tpu.memory_space<vmem>>, vector<1x16xf32>
    %194 = vector.broadcast %193 : vector<1x16xf32> to vector<64x16xf32>
    %195 = arith.addf %192, %194 : vector<64x16xf32>
    %cst_62 = arith.constant 0.000000e+00 : f32
    %196 = vector.broadcast %cst_62 : f32 to vector<64x16xf32>
    %197 = arith.cmpf ogt, %195, %196 : vector<64x16xf32>
    %cst_63 = arith.constant 0.000000e+00 : f32
    %198 = vector.broadcast %cst_63 : f32 to vector<64x16xf32>
    %199 = arith.minimumf %195, %198 : vector<64x16xf32>
    %200 = math.exp %199 : vector<64x16xf32>
    %cst_64 = arith.constant 1.000000e+00 : f32
    %201 = vector.broadcast %cst_64 : f32 to vector<64x16xf32>
    %202 = arith.subf %200, %201 : vector<64x16xf32>
    %203 = arith.select %197, %195, %202 : vector<64x16xi1>, vector<64x16xf32>
    %c0_65 = arith.constant 0 : index
    %c0_66 = arith.constant 0 : index
    %204 = vector.load %arg14[%c0_65, %c0_66] : memref<16x4xf32, #tpu.memory_space<vmem>>, vector<16x4xf32>
    %cst_67 = arith.constant dense<0.000000e+00> : vector<64x4xf32>
    %205 = tpu.matmul %203, %204, %cst_67 {dimension_numbers = #tpu.dot_dimension_numbers<[1], [0], [0], [1], [0, 0, 1, 1], [], []>} : vector<64x16xf32>, vector<16x4xf32>, vector<64x4xf32> -> vector<64x4xf32>
    %c0_68 = arith.constant 0 : index
    %c0_69 = arith.constant 0 : index
    %206 = vector.load %arg15[%c0_68, %c0_69] : memref<1x4xf32, #tpu.memory_space<vmem>>, vector<1x4xf32>
    %207 = vector.broadcast %206 : vector<1x4xf32> to vector<64x4xf32>
    %208 = arith.addf %205, %207 : vector<64x4xf32>
    %c0_70 = arith.constant 0 : index
    %c0_71 = arith.constant 0 : index
    %209 = vector.load %arg4[%c0_70, %c0_71] : memref<64x13xf32, #tpu.memory_space<vmem>>, vector<64x13xf32>
    %c0_72 = arith.constant 0 : index
    %c0_73 = arith.constant 0 : index
    %210 = vector.load %arg16[%c0_72, %c0_73] : memref<4x4xf32, #tpu.memory_space<vmem>>, vector<4x4xf32>
    %cst_74 = arith.constant dense<0.000000e+00> : vector<64x4xf32>
    %211 = tpu.matmul %208, %210, %cst_74 {dimension_numbers = #tpu.dot_dimension_numbers<[1], [0], [0], [1], [0, 0, 1, 1], [], []>} : vector<64x4xf32>, vector<4x4xf32>, vector<64x4xf32> -> vector<64x4xf32>
    %c0_75 = arith.constant 0 : index
    %c0_76 = arith.constant 0 : index
    %212 = vector.load %arg17[%c0_75, %c0_76] : memref<13x4xf32, #tpu.memory_space<vmem>>, vector<13x4xf32>
    %cst_77 = arith.constant dense<0.000000e+00> : vector<64x4xf32>
    %213 = tpu.matmul %209, %212, %cst_77 {dimension_numbers = #tpu.dot_dimension_numbers<[1], [0], [0], [1], [0, 0, 1, 1], [], []>} : vector<64x13xf32>, vector<13x4xf32>, vector<64x4xf32> -> vector<64x4xf32>
    %214 = arith.addf %211, %213 : vector<64x4xf32>
    %c0_78 = arith.constant 0 : index
    %c0_79 = arith.constant 0 : index
    %215 = vector.load %arg18[%c0_78, %c0_79] : memref<1x4xf32, #tpu.memory_space<vmem>>, vector<1x4xf32>
    %216 = vector.broadcast %215 : vector<1x4xf32> to vector<64x4xf32>
    %217 = arith.addf %214, %216 : vector<64x4xf32>
    %cst_80 = arith.constant 0.000000e+00 : f32
    %218 = vector.broadcast %cst_80 : f32 to vector<64x4xf32>
    %219 = arith.cmpf ogt, %217, %218 : vector<64x4xf32>
    %cst_81 = arith.constant 0.000000e+00 : f32
    %220 = vector.broadcast %cst_81 : f32 to vector<64x4xf32>
    %221 = arith.minimumf %217, %220 : vector<64x4xf32>
    %222 = math.exp %221 : vector<64x4xf32>
    %cst_82 = arith.constant 1.000000e+00 : f32
    %223 = vector.broadcast %cst_82 : f32 to vector<64x4xf32>
    %224 = arith.subf %222, %223 : vector<64x4xf32>
    %225 = arith.select %219, %217, %224 : vector<64x4xi1>, vector<64x4xf32>
    %c0_83 = arith.constant 0 : index
    %c0_84 = arith.constant 0 : index
    %226 = vector.load %arg19[%c0_83, %c0_84] : memref<4x1xf32, #tpu.memory_space<vmem>>, vector<4x1xf32>
    %cst_85 = arith.constant dense<0.000000e+00> : vector<64x1xf32>
    %227 = tpu.matmul %225, %226, %cst_85 {dimension_numbers = #tpu.dot_dimension_numbers<[1], [0], [0], [1], [0, 0, 1, 1], [], []>} : vector<64x4xf32>, vector<4x1xf32>, vector<64x1xf32> -> vector<64x1xf32>
    %c0_86 = arith.constant 0 : index
    %c0_87 = arith.constant 0 : index
    %228 = vector.load %arg20[%c0_86, %c0_87] : memref<1x1xf32, #tpu.memory_space<vmem>>, vector<1x1xf32>
    %229 = vector.broadcast %228 : vector<1x1xf32> to vector<64x1xf32>
    %230 = arith.addf %227, %229 : vector<64x1xf32>
    %c0_88 = arith.constant 0 : index
    %c0_89 = arith.constant 0 : index
    %231 = vector.load %arg21[%c0_88, %c0_89] : memref<64x1xf32, #tpu.memory_space<vmem>>, vector<64x1xf32>
    tpu.vector_store %arg21[%c0_88, %c0_89], %230 {strides = array<i32>} : memref<64x1xf32, #tpu.memory_space<vmem>>, vector<64x1xf32>,
    return
  }
  func.func @transform_0(%arg0: i32) -> (i32, i32) {
    %c0_i32 = arith.constant 0 : i32
    %c0_i32_0 = arith.constant 0 : i32
    return %arg0, %c0_i32 : i32, i32
  }
  func.func @transform_1(%arg0: i32) -> (i32, i32) {
    %c0_i32 = arith.constant 0 : i32
    %c0_i32_0 = arith.constant 0 : i32
    return %arg0, %c0_i32 : i32, i32
  }
  func.func @transform_2(%arg0: i32) -> (i32, i32) {
    %c0_i32 = arith.constant 0 : i32
    %c0_i32_0 = arith.constant 0 : i32
    return %arg0, %c0_i32 : i32, i32
  }
  func.func @transform_3(%arg0: i32) -> (i32, i32) {
    %c0_i32 = arith.constant 0 : i32
    %c0_i32_0 = arith.constant 0 : i32
    return %arg0, %c0_i32 : i32, i32
  }
  func.func @transform_4(%arg0: i32) -> (i32, i32) {
    %c0_i32 = arith.constant 0 : i32
    %c0_i32_0 = arith.constant 0 : i32
    %c0_i32_1 = arith.constant 0 : i32
    return %c0_i32, %c0_i32_0 : i32, i32
  }
  func.func @transform_5(%arg0: i32) -> (i32, i32) {
    %c0_i32 = arith.constant 0 : i32
    %c0_i32_0 = arith.constant 0 : i32
    %c0_i32_1 = arith.constant 0 : i32
    return %c0_i32, %c0_i32_0 : i32, i32
  }
  func.func @transform_6(%arg0: i32) -> (i32, i32) {
    %c0_i32 = arith.constant 0 : i32
    %c0_i32_0 = arith.constant 0 : i32
    %c0_i32_1 = arith.constant 0 : i32
    return %c0_i32, %c0_i32_0 : i32, i32
  }
  func.func @transform_7(%arg0: i32) -> (i32, i32) {
    %c0_i32 = arith.constant 0 : i32
    %c0_i32_0 = arith.constant 0 : i32
    %c0_i32_1 = arith.constant 0 : i32
    return %c0_i32, %c0_i32_0 : i32, i32
  }
  func.func @transform_8(%arg0: i32) -> (i32, i32) {
    %c0_i32 = arith.constant 0 : i32
    %c0_i32_0 = arith.constant 0 : i32
    %c0_i32_1 = arith.constant 0 : i32
    return %c0_i32, %c0_i32_0 : i32, i32
  }
  func.func @transform_9(%arg0: i32) -> (i32, i32) {
    %c0_i32 = arith.constant 0 : i32
    %c0_i32_0 = arith.constant 0 : i32
    %c0_i32_1 = arith.constant 0 : i32
    return %c0_i32, %c0_i32_0 : i32, i32
  }
  func.func @transform_10(%arg0: i32) -> (i32, i32) {
    %c0_i32 = arith.constant 0 : i32
    %c0_i32_0 = arith.constant 0 : i32
    %c0_i32_1 = arith.constant 0 : i32
    return %c0_i32, %c0_i32_0 : i32, i32
  }
  func.func @transform_11(%arg0: i32) -> (i32, i32) {
    %c0_i32 = arith.constant 0 : i32
    %c0_i32_0 = arith.constant 0 : i32
    %c0_i32_1 = arith.constant 0 : i32
    return %c0_i32, %c0_i32_0 : i32, i32
  }
  func.func @transform_12(%arg0: i32) -> (i32, i32) {
    %c0_i32 = arith.constant 0 : i32
    %c0_i32_0 = arith.constant 0 : i32
    %c0_i32_1 = arith.constant 0 : i32
    return %c0_i32, %c0_i32_0 : i32, i32
  }
  func.func @transform_13(%arg0: i32) -> (i32, i32) {
    %c0_i32 = arith.constant 0 : i32
    %c0_i32_0 = arith.constant 0 : i32
    %c0_i32_1 = arith.constant 0 : i32
    return %c0_i32, %c0_i32_0 : i32, i32
  }
  func.func @transform_14(%arg0: i32) -> (i32, i32) {
    %c0_i32 = arith.constant 0 : i32
    %c0_i32_0 = arith.constant 0 : i32
    %c0_i32_1 = arith.constant 0 : i32
    return %c0_i32, %c0_i32_0 : i32, i32
  }
  func.func @transform_15(%arg0: i32) -> (i32, i32) {
    %c0_i32 = arith.constant 0 : i32
    %c0_i32_0 = arith.constant 0 : i32
    %c0_i32_1 = arith.constant 0 : i32
    return %c0_i32, %c0_i32_0 : i32, i32
  }
  func.func @transform_16(%arg0: i32) -> (i32, i32) {
    %c0_i32 = arith.constant 0 : i32
    %c0_i32_0 = arith.constant 0 : i32
    %c0_i32_1 = arith.constant 0 : i32
    return %c0_i32, %c0_i32_0 : i32, i32
  }
  func.func @transform_17(%arg0: i32) -> (i32, i32) {
    %c0_i32 = arith.constant 0 : i32
    %c0_i32_0 = arith.constant 0 : i32
    %c0_i32_1 = arith.constant 0 : i32
    return %c0_i32, %c0_i32_0 : i32, i32
  }
  func.func @transform_18(%arg0: i32) -> (i32, i32) {
    %c0_i32 = arith.constant 0 : i32
    %c0_i32_0 = arith.constant 0 : i32
    %c0_i32_1 = arith.constant 0 : i32
    return %c0_i32, %c0_i32_0 : i32, i32
  }
  func.func @transform_19(%arg0: i32) -> (i32, i32) {
    %c0_i32 = arith.constant 0 : i32
    %c0_i32_0 = arith.constant 0 : i32
    %c0_i32_1 = arith.constant 0 : i32
    return %c0_i32, %c0_i32_0 : i32, i32
  }
  func.func @transform_20(%arg0: i32) -> (i32, i32) {
    %c0_i32 = arith.constant 0 : i32
    %c0_i32_0 = arith.constant 0 : i32
    return %arg0, %c0_i32 : i32, i32
  }
}

</mosaic_0001>

<bundles_post_ra>
// kernel: net_forward.2
= control target key start
LH: loop header
LB: loop body
LE: loop exit
PB: predicated region body
PF: predicated region fallthrough
CT: control target
= control target key end

     0   :  { %vm121_vm0 = vcmask 1044480   ;;  %vm72_vm1 = vcmask 105472   ;;  %vm292_vm2 = vcmask 130048   ;;  %s2141_s1 = inlined_call_operand.vmem [shape: f32[13,16], index: 1, kind: input, shape index: {}]   ;;  %s2142_s0 = inlined_call_operand.vmem [shape: f32[128,13], index: 0, kind: input, shape index: {}]   ;;  %s2143_s2 = inlined_call_operand.vmem [shape: f32[1,16], index: 2, kind: input, shape index: {}]   ;;  %s2144_s4 = inlined_call_operand.vmem [shape: f32[1,32], index: 4, kind: input, shape index: {}]   ;;  %s2145_s3 = inlined_call_operand.vmem [shape: f32[16,32], index: 3, kind: input, shape index: {}]   ;;  %s2146_s5 = inlined_call_operand.vmem [shape: f32[32,32], index: 5, kind: input, shape index: {}]   ;;  %s2147_s6 = inlined_call_operand.vmem [shape: f32[1,32], index: 6, kind: input, shape index: {}]   ;;  %s2148_s7 = inlined_call_operand.vmem [shape: f32[32,16], index: 7, kind: input, shape index: {}]   ;;  %s2149_s9 = inlined_call_operand.vmem [shape: f32[32,8], index: 9, kind: input, shape index: {}]   ;;  %s2150_s11 = inlined_call_operand.vmem [shape: f32[32,32], index: 11, kind: input, shape index: {}]   ;;  %s2151_s10 = inlined_call_operand.vmem [shape: f32[1,8], index: 10, kind: input, shape index: {}]   ;;  %s2152_s12 = inlined_call_operand.vmem [shape: f32[1,32], index: 12, kind: input, shape index: {}]   ;;  %s2153_s8 = inlined_call_operand.vmem [shape: f32[1,16], index: 8, kind: input, shape index: {}]   ;;  %s2154_s16 = inlined_call_operand.vmem [shape: f32[128,8], index: 16, kind: output, shape index: {3}]   ;;  %s2155_s18 = inlined_call_operand.vmem [shape: f32[128,32], index: 18, kind: output, shape index: {5}]   ;;  %s2156_s13 = inlined_call_operand.vmem [shape: f32[128,16], index: 13, kind: output, shape index: {0}]   ;;  %s2157_s17 = inlined_call_operand.vmem [shape: f32[8,128], index: 17, kind: output, shape index: {4}]   ;;  %s2158_s14 = inlined_call_operand.vmem [shape: f32[16,128], index: 14, kind: output, shape index: {1}]   ;;  %s2159_s15 = inlined_call_operand.vmem [shape: f32[1,128], index: 15, kind: output, shape index: {2}]  }
   0x1   :  { %2162 = sst [smem:[#allocation2_spill]] %s2141_s1  ;;  %v287_v18 = vld [vmem:[%s2145_s3 + $0x8] sm:$0xff]  ;;  %v286_v19 = vld [vmem:[%s2145_s3] sm:$0xff] }
   0x2   :  { %2163 = sst [smem:[#allocation3_spill]] %s2142_s0  ;;  %355 = vmatpush.msra.mxu1 %v287_v18  ;;  %1320 = vmatpush.msra.mxu3 %v287_v18 }
   0x3   :  { %2164 = sst [smem:[#allocation4_spill]] %s2143_s2 }
   0x4   :  { %s2165_s29 = sld [smem:[#allocation2_spill]]  ;;  %356 = vmatpush.msra.mxu1 %v286_v19  ;;  %1321 = vmatpush.msra.mxu3 %v286_v19 }
   0x5   :  { %s2166_s20 = sld [smem:[#allocation3_spill]] }
   0x6   :  { %s2167_s28 = sld [smem:[#allocation4_spill]] }
   0xa   :  { %v67_v0 = vld [vmem:[%s2165_s29 + $0x8] sm:$0x1f]  ;;  %v66_v1 = vld [vmem:[%s2165_s29] sm:$0xff] }
   0xb   :  { %1151 = vmatpush.msk.msra.mxu0 %vm121_vm0, %v67_v0  ;;  %v50_v2 = vld [vmem:[%s2166_s20] sm:$0xff]  ;;  %1318 = vmatpush.msk.msra.mxu2 %vm121_vm0, %v67_v0  ;;  %v59_v3 = vld [vmem:[%s2166_s20 + $0x48] sm:$0xff]  ;;  %v60_v5 = vld [vmem:[%s2166_s20 + $0x50] sm:$0xff] }
   0xc   :  { %v51_v4 = vld [vmem:[%s2166_s20 + $0x8] sm:$0xff]  ;;  %v52_v6 = vld [vmem:[%s2166_s20 + $0x10] sm:$0xff]  ;;  %v61_v7 = vld [vmem:[%s2166_s20 + $0x58] sm:$0xff] }
   0xd   :  { %140 = vmatpush.msra.mxu0 %v66_v1  ;;  %1319 = vmatpush.msra.mxu2 %v66_v1  ;;  %v53_v8 = vld [vmem:[%s2166_s20 + $0x18] sm:$0xff]  ;;  %v62_v9 = vld [vmem:[%s2166_s20 + $0x60] sm:$0xff]  ;;  %v63_v11 = vld [vmem:[%s2166_s20 + $0x68] sm:$0xff] }
   0xe   :  { %1152 = vmatmul.msk.f32.vlgmr.msra.gmra.mxu0 %vm72_vm1, %v50_v2  ;;  %1161 = vmatmul.msk.f32.vlgmr.msra.gmra.mxu2 %vm72_vm1, %v59_v3  ;;  %v54_v10 = vld [vmem:[%s2166_s20 + $0x20] sm:$0xff]  ;;  %v55_v12 = vld [vmem:[%s2166_s20 + $0x28] sm:$0xff]  ;;  %v64_v13 = vld [vmem:[%s2166_s20 + $0x70] sm:$0xff] }
   0xf   :  { %v56_v14 = vld [vmem:[%s2166_s20 + $0x30] sm:$0xff]  ;;  %v65_v15 = vld [vmem:[%s2166_s20 + $0x78] sm:$0xff]  ;;  %v58_v17 = vld [vmem:[%s2166_s20 + $0x40] sm:$0xff] }
  0x10   :  { %v57_v16 = vld [vmem:[%s2166_s20 + $0x38] sm:$0xff]  ;;  %v1570_v20 = vld [vmem:[%s2167_s28] ss:$0 sm:$0xff] }
  0x16   :  { %1153 = vmatmul.msk.f32.gmra.mxu0 %vm72_vm1, %v51_v4  ;;  %1162 = vmatmul.msk.f32.gmra.mxu2 %vm72_vm1, %v60_v5 }
  0x1e   :  { %1154 = vmatmul.msk.f32.gmra.mxu0 %vm72_vm1, %v52_v6  ;;  %1163 = vmatmul.msk.f32.gmra.mxu2 %vm72_vm1, %v61_v7 }
  0x26   :  { %1155 = vmatmul.msk.f32.gmra.mxu0 %vm72_vm1, %v53_v8  ;;  %1164 = vmatmul.msk.f32.gmra.mxu2 %vm72_vm1, %v62_v9 }
  0x2e   :  { %1156 = vmatmul.msk.f32.gmra.mxu0 %vm72_vm1, %v54_v10  ;;  %1165 = vmatmul.msk.f32.gmra.mxu2 %vm72_vm1, %v63_v11 }
  0x36   :  { %1157 = vmatmul.msk.f32.gmra.mxu0 %vm72_vm1, %v55_v12  ;;  %1166 = vmatmul.msk.f32.gmra.mxu2 %vm72_vm1, %v64_v13 }
  0x3e   :  { %1158 = vmatmul.msk.f32.gmra.mxu0 %vm72_vm1, %v56_v14  ;;  %1167 = vmatmul.msk.f32.gmra.mxu2 %vm72_vm1, %v65_v15 }
  0x46   :  { %1159 = vmatmul.msk.f32.gmra.mxu0 %vm72_vm1, %v57_v16 }
  0x4e   :  { %1160 = vmatmul.msk.f32.gmra.mxu0 %vm72_vm1, %v58_v17 }
  0x8b   :  { %v142_v21 = vpop.f32.mrf.mxu0 }
  0x8c   :  { %v143_v22 = vadd.f32 %v1570_v20, %v142_v21 }
  0x8e   :  { %v206_v23 = vmin.f32 %v143_v22, 0.0  ;;  %vm190_vm3 = vcmp.gt.f32.partialorder %v143_v22, 0.0 }
  0x90   :  { %v222_v24 = vmul.f32 1.442695, %v206_v23 }
  0x91   :  { %v169_v26 = vpop.f32.mrf.mxu2 }
  0x92   :  { %1330 = vpow2.f32 %v222_v24  ;;  %v170_v28 = vadd.f32 %v1570_v20, %v169_v26 }
  0x93   :  { %v145_v25 = vpop.f32.mrf.mxu0 }
  0x94   :  { %v146_v27 = vadd.f32 %v1570_v20, %v145_v25  ;;  %v215_v30 = vmin.f32 %v170_v28, 0.0  ;;  %vm199_vm5 = vcmp.gt.f32.partialorder %v170_v28, 0.0 }
  0x96   :  { %v207_v29 = vmin.f32 %v146_v27, 0.0  ;;  %v240_v33 = vmul.f32 1.442695, %v215_v30  ;;  %vm191_vm4 = vcmp.gt.f32.partialorder %v146_v27, 0.0 }
  0x98   :  { %v1331_v31 = vpop.eup %1330  ;;  %v224_v32 = vmul.f32 1.442695, %v207_v29 }
  0x99   :  { %v1168_v34 = vadd.f32 -1.0, %v1331_v31  ;;  %v172_v37 = vpop.f32.mrf.mxu2 }
  0x9a   :  { %1332 = vpow2.f32 %v224_v32  ;;  %v173_v39 = vadd.f32 %v1570_v20, %v172_v37 }
  0x9b   :  { %v148_v35 = vpop.f32.mrf.mxu0  ;;  %v270_v36 = vsel %vm190_vm3, %v143_v22, %v1168_v34  ;;  %1334 = vpow2.f32 %v240_v33 }
  0x9c   :  { %v149_v38 = vadd.f32 %v1570_v20, %v148_v35  ;;  %1184 = vmatmul.msk.f32.vlgmr.msra.gmra.mxu1 %vm292_vm2, %v270_v36  ;;  %v216_v41 = vmin.f32 %v173_v39, 0.0  ;;  %vm200_vm7 = vcmp.gt.f32.partialorder %v173_v39, 0.0 }
  0x9e   :  { %v208_v40 = vmin.f32 %v149_v38, 0.0  ;;  %v242_v44 = vmul.f32 1.442695, %v216_v41  ;;  %vm192_vm6 = vcmp.gt.f32.partialorder %v149_v38, 0.0 }
  0xa0   :  { %v1333_v42 = vpop.eup %1332  ;;  %v226_v43 = vmul.f32 1.442695, %v208_v40 }
  0xa1   :  { %v1335_v45 = vpop.eup %1334  ;;  %v1169_v46 = vadd.f32 -1.0, %v1333_v42  ;;  %v175_v50 = vpop.f32.mrf.mxu2 }
  0xa2   :  { %1336 = vpow2.f32 %v226_v43  ;;  %v1177_v47 = vadd.f32 -1.0, %v1335_v45  ;;  %v176_v52 = vadd.f32 %v1570_v20, %v175_v50 }
  0xa3   :  { %v151_v48 = vpop.f32.mrf.mxu0  ;;  %v271_v49 = vsel %vm191_vm4, %v146_v27, %v1169_v46  ;;  %1338 = vpow2.f32 %v242_v44  ;;  %vm510_vm4 = vcmask 261120  }
  0xa4   :  { %v152_v51 = vadd.f32 %v1570_v20, %v151_v48  ;;  %1185 = vmatmul.msk.f32.gmra.mxu1 %vm292_vm2, %v271_v49  ;;  %v279_v53 = vsel %vm199_vm5, %v170_v28, %v1177_v47  ;;  %v217_v55 = vmin.f32 %v176_v52, 0.0  ;;  %vm201_vm9 = vcmp.gt.f32.partialorder %v176_v52, 0.0 }
  0xa5   :  { %1193 = vmatmul.msk.f32.vlgmr.msra.gmra.mxu3 %vm292_vm2, %v279_v53 }
  0xa6   :  { %v209_v54 = vmin.f32 %v152_v51, 0.0  ;;  %v244_v58 = vmul.f32 1.442695, %v217_v55  ;;  %vm193_vm8 = vcmp.gt.f32.partialorder %v152_v51, 0.0 }
  0xa8   :  { %v1337_v56 = vpop.eup %1336  ;;  %v228_v57 = vmul.f32 1.442695, %v209_v54 }
  0xa9   :  { %v1339_v59 = vpop.eup %1338  ;;  %v1170_v60 = vadd.f32 -1.0, %v1337_v56  ;;  %v178_v0 = vpop.f32.mrf.mxu2 }
  0xaa   :  { %1340 = vpow2.f32 %v228_v57  ;;  %v1178_v61 = vadd.f32 -1.0, %v1339_v59  ;;  %v179_v2 = vadd.f32 %v1570_v20, %v178_v0 }
  0xab   :  { %v154_v62 = vpop.f32.mrf.mxu0  ;;  %v272_v63 = vsel %vm192_vm6, %v149_v38, %v1170_v60  ;;  %1342 = vpow2.f32 %v244_v58 }
  0xac   :  { %v155_v1 = vadd.f32 %v1570_v20, %v154_v62  ;;  %1186 = vmatmul.msk.f32.gmra.mxu1 %vm292_vm2, %v272_v63  ;;  %v280_v3 = vsel %vm200_vm7, %v173_v39, %v1178_v61  ;;  %v218_v5 = vmin.f32 %v179_v2, 0.0  ;;  %vm202_vm11 = vcmp.gt.f32.partialorder %v179_v2, 0.0 }
  0xad   :  { %1194 = vmatmul.msk.f32.gmra.mxu3 %vm292_vm2, %v280_v3 }
  0xae   :  { %v210_v4 = vmin.f32 %v155_v1, 0.0  ;;  %v246_v8 = vmul.f32 1.442695, %v218_v5  ;;  %vm194_vm10 = vcmp.gt.f32.partialorder %v155_v1, 0.0  ;;  %v505_v5 = vld [vmem:[%s2146_s5 + $0x18] sm:$0xff] }
  0xaf   :  { %571 = vmatpush.msrb.mxu2 %v505_v5 }
  0xb0   :  { %v1341_v6 = vpop.eup %1340  ;;  %v230_v7 = vmul.f32 1.442695, %v210_v4 }
  0xb1   :  { %v1343_v9 = vpop.eup %1342  ;;  %v1171_v10 = vadd.f32 -1.0, %v1341_v6  ;;  %v181_v14 = vpop.f32.mrf.mxu2  ;;  %v504_v6 = vld [vmem:[%s2146_s5 + $0x10] sm:$0xff] }
  0xb2   :  { %1344 = vpow2.f32 %v230_v7  ;;  %v1179_v11 = vadd.f32 -1.0, %v1343_v9  ;;  %v182_v16 = vadd.f32 %v1570_v20, %v181_v14  ;;  %572 = vmatpush.msrb.mxu2 %v504_v6  ;;  %v503_v7 = vld [vmem:[%s2146_s5 + $0x8] sm:$0xff]  ;;  %v1619_v9 = vld [vmem:[%s2144_s4] ss:$0 sm:$0xff] }
  0xb3   :  { %v157_v12 = vpop.f32.mrf.mxu0  ;;  %v273_v13 = vsel %vm193_vm8, %v152_v51, %v1171_v10  ;;  %1346 = vpow2.f32 %v246_v8  ;;  %v502_v8 = vld [vmem:[%s2146_s5] sm:$0xff] }
  0xb4   :  { %v158_v15 = vadd.f32 %v1570_v20, %v157_v12  ;;  %1187 = vmatmul.msk.f32.gmra.mxu1 %vm292_vm2, %v273_v13  ;;  %v281_v17 = vsel %vm201_vm9, %v176_v52, %v1179_v11  ;;  %v219_v19 = vmin.f32 %v182_v16, 0.0  ;;  %vm203_vm12 = vcmp.gt.f32.partialorder %v182_v16, 0.0  ;;  %573 = vmatpush.msrb.mxu2 %v503_v7 }
  0xb5   :  { %1195 = vmatmul.msk.f32.gmra.mxu3 %vm292_vm2, %v281_v17 }
  0xb6   :  { %v211_v18 = vmin.f32 %v158_v15, 0.0  ;;  %v248_v23 = vmul.f32 1.442695, %v219_v19  ;;  %vm195_vm13 = vcmp.gt.f32.partialorder %v158_v15, 0.0  ;;  %574 = vmatpush.msrb.mxu2 %v502_v8 }
  0xb8   :  { %v1345_v21 = vpop.eup %1344  ;;  %v232_v22 = vmul.f32 1.442695, %v211_v18 }
  0xb9   :  { %v1347_v24 = vpop.eup %1346  ;;  %v1172_v25 = vadd.f32 -1.0, %v1345_v21  ;;  %v184_v29 = vpop.f32.mrf.mxu2 }
  0xba   :  { %1348 = vpow2.f32 %v232_v22  ;;  %v1180_v26 = vadd.f32 -1.0, %v1347_v24  ;;  %v185_v31 = vadd.f32 %v1570_v20, %v184_v29 }
  0xbb   :  { %v160_v27 = vpop.f32.mrf.mxu0  ;;  %v274_v28 = vsel %vm194_vm10, %v155_v1, %v1172_v25  ;;  %1350 = vpow2.f32 %v248_v23 }
  0xbc   :  { %v161_v30 = vadd.f32 %v1570_v20, %v160_v27  ;;  %1188 = vmatmul.msk.f32.gmra.mxu1 %vm292_vm2, %v274_v28  ;;  %v282_v32 = vsel %vm202_vm11, %v179_v2, %v1180_v26  ;;  %v220_v34 = vmin.f32 %v185_v31, 0.0  ;;  %vm204_vm14 = vcmp.gt.f32.partialorder %v185_v31, 0.0 }
  0xbd   :  { %1196 = vmatmul.msk.f32.gmra.mxu3 %vm292_vm2, %v282_v32 }
  0xbe   :  { %v212_v33 = vmin.f32 %v161_v30, 0.0  ;;  %v250_v37 = vmul.f32 1.442695, %v220_v34  ;;  %vm196_vm15 = vcmp.gt.f32.partialorder %v161_v30, 0.0 }
  0xc0   :  { %v1349_v35 = vpop.eup %1348  ;;  %v234_v36 = vmul.f32 1.442695, %v212_v33 }
  0xc1   :  { %v1351_v38 = vpop.eup %1350  ;;  %v1173_v39 = vadd.f32 -1.0, %v1349_v35  ;;  %v187_v43 = vpop.f32.mrf.mxu2 }
  0xc2   :  { %1352 = vpow2.f32 %v234_v36  ;;  %v1181_v40 = vadd.f32 -1.0, %v1351_v38  ;;  %v188_v45 = vadd.f32 %v1570_v20, %v187_v43 }
  0xc3   :  { %v163_v41 = vpop.f32.mrf.mxu0  ;;  %v275_v42 = vsel %vm195_vm13, %v158_v15, %v1173_v39  ;;  %1354 = vpow2.f32 %v250_v37 }
  0xc4   :  { %v164_v44 = vadd.f32 %v1570_v20, %v163_v41  ;;  %1189 = vmatmul.msk.f32.gmra.mxu1 %vm292_vm2, %v275_v42  ;;  %v283_v46 = vsel %vm203_vm12, %v182_v16, %v1181_v40  ;;  %v221_v48 = vmin.f32 %v188_v45, 0.0  ;;  %vm205_vm0 = vcmp.gt.f32.partialorder %v188_v45, 0.0 }
  0xc5   :  { %1197 = vmatmul.msk.f32.gmra.mxu3 %vm292_vm2, %v283_v46 }
  0xc6   :  { %v213_v47 = vmin.f32 %v164_v44, 0.0  ;;  %v252_v51 = vmul.f32 1.442695, %v221_v48  ;;  %vm197_vm1 = vcmp.gt.f32.partialorder %v164_v44, 0.0 }
  0xc8   :  { %v1353_v49 = vpop.eup %1352  ;;  %v236_v50 = vmul.f32 1.442695, %v213_v47 }
  0xc9   :  { %v1355_v52 = vpop.eup %1354  ;;  %v1174_v53 = vadd.f32 -1.0, %v1353_v49 }
  0xca   :  { %1356 = vpow2.f32 %v236_v50  ;;  %v1182_v54 = vadd.f32 -1.0, %v1355_v52 }
  0xcb   :  { %v166_v55 = vpop.f32.mrf.mxu0  ;;  %v276_v56 = vsel %vm196_vm15, %v161_v30, %v1174_v53  ;;  %1358 = vpow2.f32 %v252_v51 }
  0xcc   :  { %v167_v57 = vadd.f32 %v1570_v20, %v166_v55  ;;  %1190 = vmatmul.msk.f32.gmra.mxu1 %vm292_vm2, %v276_v56  ;;  %v284_v58 = vsel %vm204_vm14, %v185_v31, %v1182_v54 }
  0xcd   :  { %1198 = vmatmul.msk.f32.gmra.mxu3 %vm292_vm2, %v284_v58 }
  0xce   :  { %v214_v59 = vmin.f32 %v167_v57, 0.0  ;;  %vm198_vm3 = vcmp.gt.f32.partialorder %v167_v57, 0.0 }
  0xd0   :  { %v1357_v60 = vpop.eup %1356  ;;  %v238_v61 = vmul.f32 1.442695, %v214_v59 }
  0xd1   :  { %v1359_v62 = vpop.eup %1358  ;;  %v1175_v63 = vadd.f32 -1.0, %v1357_v60 }
  0xd2   :  { %1360 = vpow2.f32 %v238_v61  ;;  %v1183_v0 = vadd.f32 -1.0, %v1359_v62 }
  0xd3   :  { %v277_v1 = vsel %vm197_vm1, %v164_v44, %v1175_v63 }
  0xd4   :  { %1191 = vmatmul.msk.f32.gmra.mxu1 %vm292_vm2, %v277_v1  ;;  %v285_v2 = vsel %vm205_vm0, %v188_v45, %v1183_v0 }
  0xd5   :  { %1199 = vmatmul.msk.f32.gmra.mxu3 %vm292_vm2, %v285_v2 }
  0xd8   :  { %v1361_v20 = vpop.eup %1360 }
  0xd9   :  { %v1176_v3 = vadd.f32 -1.0, %v1361_v20 }
  0xdb   :  { %v278_v4 = vsel %vm198_vm3, %v167_v57, %v1176_v3 }
  0xdc   :  { %1192 = vmatmul.msk.f32.gmra.mxu1 %vm292_vm2, %v278_v4 }
 0x119   :  { %v358_v10 = vpop.f32.mrf.mxu1 }
 0x11a   :  { %v359_v11 = vadd.f32 %v1619_v9, %v358_v10 }
 0x11c   :  { %v422_v12 = vmin.f32 %v359_v11, 0.0  ;;  %vm406_vm5 = vcmp.gt.f32.partialorder %v359_v11, 0.0 }
 0x11e   :  { %v438_v13 = vmul.f32 1.442695, %v422_v12 }
 0x120   :  { %1362 = vpow2.f32 %v438_v13 }
 0x121   :  { %v361_v14 = vpop.f32.mrf.mxu1 }
 0x122   :  { %v362_v15 = vadd.f32 %v1619_v9, %v361_v14 }
 0x124   :  { %v423_v16 = vmin.f32 %v362_v15, 0.0  ;;  %vm407_vm6 = vcmp.gt.f32.partialorder %v362_v15, 0.0 }
 0x126   :  { %v1363_v17 = vpop.eup %1362  ;;  %v440_v18 = vmul.f32 1.442695, %v423_v16 }
 0x127   :  { %v1200_v19 = vadd.f32 -1.0, %v1363_v17 }
 0x128   :  { %1364 = vpow2.f32 %v440_v18  ;;  %v385_v49 = vpop.f32.mrf.mxu3 }
 0x129   :  { %v364_v21 = vpop.f32.mrf.mxu1  ;;  %v486_v22 = vsel %vm406_vm5, %v359_v11, %v1200_v19  ;;  %v386_v1 = vadd.f32 %v1619_v9, %v385_v49 }
 0x12a   :  { %v365_v23 = vadd.f32 %v1619_v9, %v364_v21  ;;  %1216 = vmatmul.msk.f32.vlgmr.msrb.gmra.mxu2 %vm510_vm4, %v486_v22 }
 0x12b   :  { %v431_v4 = vmin.f32 %v386_v1, 0.0  ;;  %vm415_vm14 = vcmp.gt.f32.partialorder %v386_v1, 0.0 }
 0x12c   :  { %v424_v24 = vmin.f32 %v365_v23, 0.0  ;;  %vm408_vm7 = vcmp.gt.f32.partialorder %v365_v23, 0.0 }
 0x12d   :  { %v456_v11 = vmul.f32 1.442695, %v431_v4 }
 0x12e   :  { %v1365_v25 = vpop.eup %1364  ;;  %v442_v26 = vmul.f32 1.442695, %v424_v24 }
 0x12f   :  { %v1201_v27 = vadd.f32 -1.0, %v1365_v25 }
 0x130   :  { %1366 = vpow2.f32 %v442_v26  ;;  %v388_v60 = vpop.f32.mrf.mxu3 }
 0x131   :  { %v367_v28 = vpop.f32.mrf.mxu1  ;;  %v487_v29 = vsel %vm407_vm6, %v362_v15, %v1201_v27  ;;  %v389_v12 = vadd.f32 %v1619_v9, %v388_v60 }
 0x132   :  { %v368_v30 = vadd.f32 %v1619_v9, %v367_v28  ;;  %1217 = vmatmul.msk.f32.gmra.mxu2 %vm510_vm4, %v487_v29 }
 0x133   :  { %v432_v14 = vmin.f32 %v389_v12, 0.0  ;;  %vm416_vm15 = vcmp.gt.f32.partialorder %v389_v12, 0.0 }
 0x134   :  { %v425_v31 = vmin.f32 %v368_v30, 0.0  ;;  %vm409_vm8 = vcmp.gt.f32.partialorder %v368_v30, 0.0 }
 0x135   :  { %v458_v18 = vmul.f32 1.442695, %v432_v14 }
 0x136   :  { %v1367_v32 = vpop.eup %1366  ;;  %v444_v33 = vmul.f32 1.442695, %v425_v31 }
 0x137   :  { %v1202_v34 = vadd.f32 -1.0, %v1367_v32 }
 0x138   :  { %1368 = vpow2.f32 %v444_v33  ;;  %v391_v6 = vpop.f32.mrf.mxu3 }
 0x139   :  { %v370_v35 = vpop.f32.mrf.mxu1  ;;  %v488_v36 = vsel %vm408_vm7, %v365_v23, %v1202_v34  ;;  %v392_v19 = vadd.f32 %v1619_v9, %v391_v6  ;;  %v1692_v6 = vld [vmem:[%s2147_s6] ss:$0 sm:$0xff]  ;;  %vm834_vm7 = vcmask 64512  }
 0x13a   :  { %v371_v37 = vadd.f32 %v1619_v9, %v370_v35  ;;  %1218 = vmatmul.msk.f32.gmra.mxu2 %vm510_vm4, %v488_v36 }
 0x13b   :  { %v433_v23 = vmin.f32 %v392_v19, 0.0  ;;  %vm417_vm0 = vcmp.gt.f32.partialorder %v392_v19, 0.0 }
 0x13c   :  { %v426_v38 = vmin.f32 %v371_v37, 0.0  ;;  %vm410_vm9 = vcmp.gt.f32.partialorder %v371_v37, 0.0 }
 0x13d   :  { %v460_v25 = vmul.f32 1.442695, %v433_v23 }
 0x13e   :  { %v1369_v39 = vpop.eup %1368  ;;  %v446_v40 = vmul.f32 1.442695, %v426_v38 }
 0x13f   :  { %v1203_v41 = vadd.f32 -1.0, %v1369_v39 }
 0x140   :  { %1370 = vpow2.f32 %v446_v40  ;;  %v394_v16 = vpop.f32.mrf.mxu3 }
 0x141   :  { %v373_v42 = vpop.f32.mrf.mxu1  ;;  %v489_v43 = vsel %vm409_vm8, %v368_v30, %v1203_v41  ;;  %v395_v26 = vadd.f32 %v1619_v9, %v394_v16 }
 0x142   :  { %v374_v44 = vadd.f32 %v1619_v9, %v373_v42  ;;  %1219 = vmatmul.msk.f32.gmra.mxu2 %vm510_vm4, %v489_v43  ;;  %v627_v43 = vld [vmem:[%s2148_s7 + $0x18] sm:$0xff] }
 0x143   :  { %v434_v30 = vmin.f32 %v395_v26, 0.0  ;;  %692 = vmatpush.msrb.mxu3 %v627_v43  ;;  %vm418_vm1 = vcmp.gt.f32.partialorder %v395_v26, 0.0 }
 0x144   :  { %v427_v45 = vmin.f32 %v374_v44, 0.0  ;;  %vm411_vm10 = vcmp.gt.f32.partialorder %v374_v44, 0.0 }
 0x145   :  { %v462_v32 = vmul.f32 1.442695, %v434_v30 }
 0x146   :  { %v1371_v46 = vpop.eup %1370  ;;  %v448_v47 = vmul.f32 1.442695, %v427_v45  ;;  %v854_v45 = vld [vmem:[%s2150_s11 + $0x18] sm:$0xff] }
 0x147   :  { %v1204_v48 = vadd.f32 -1.0, %v1371_v46  ;;  %v626_v46 = vld [vmem:[%s2148_s7 + $0x10] sm:$0xff]  ;;  %871 = vmatpush.msrb.mxu1 %v854_v45 }
 0x148   :  { %1372 = vpow2.f32 %v448_v47  ;;  %v397_v27 = vpop.f32.mrf.mxu3  ;;  %v747_v47 = vld [vmem:[%s2149_s9 + $0x10] sm:$0xff]  ;;  %693 = vmatpush.msrb.mxu3 %v626_v46 }
 0x149   :  { %v376_v50 = vpop.f32.mrf.mxu1  ;;  %v490_v51 = vsel %vm410_vm9, %v371_v37, %v1204_v48  ;;  %v398_v33 = vadd.f32 %v1619_v9, %v397_v27  ;;  %v853_v48 = vld [vmem:[%s2150_s11 + $0x10] sm:$0xff] }
 0x14a   :  { %v377_v52 = vadd.f32 %v1619_v9, %v376_v50  ;;  %1220 = vmatmul.msk.f32.gmra.mxu2 %vm510_vm4, %v490_v51  ;;  %872 = vmatpush.msrb.mxu1 %v853_v48 }
 0x14b   :  { %v435_v37 = vmin.f32 %v398_v33, 0.0  ;;  %vm419_vm3 = vcmp.gt.f32.partialorder %v398_v33, 0.0 }
 0x14c   :  { %v428_v53 = vmin.f32 %v377_v52, 0.0  ;;  %vm412_vm11 = vcmp.gt.f32.partialorder %v377_v52, 0.0 }
 0x14d   :  { %v464_v39 = vmul.f32 1.442695, %v435_v37 }
 0x14e   :  { %v1373_v54 = vpop.eup %1372  ;;  %v450_v55 = vmul.f32 1.442695, %v428_v53 }
 0x14f   :  { %v1205_v56 = vadd.f32 -1.0, %v1373_v54 }
 0x150   :  { %1374 = vpow2.f32 %v450_v55  ;;  %v400_v36 = vpop.f32.mrf.mxu3 }
 0x151   :  { %v379_v57 = vpop.f32.mrf.mxu1  ;;  %v491_v58 = vsel %vm411_vm10, %v374_v44, %v1205_v56  ;;  %v401_v40 = vadd.f32 %v1619_v9, %v400_v36  ;;  %v748_v44 = vld [vmem:[%s2149_s9 + $0x18] sm:$0xff] }
 0x152   :  { %v380_v59 = vadd.f32 %v1619_v9, %v379_v57  ;;  %1221 = vmatmul.msk.f32.gmra.mxu2 %vm510_vm4, %v491_v58  ;;  %765 = vmatpush.msrb.mxu0 %v748_v44  ;;  %v625_v57 = vld [vmem:[%s2148_s7 + $0x8] sm:$0xff] }
 0x153   :  { %v436_v49 = vmin.f32 %v401_v40, 0.0  ;;  %v746_v58 = vld [vmem:[%s2149_s9 + $0x8] sm:$0xff]  ;;  %694 = vmatpush.msrb.mxu3 %v625_v57  ;;  %vm420_vm5 = vcmp.gt.f32.partialorder %v401_v40, 0.0 }
 0x154   :  { %v429_v61 = vmin.f32 %v380_v59, 0.0  ;;  %vm413_vm12 = vcmp.gt.f32.partialorder %v380_v59, 0.0  ;;  %766 = vmatpush.msrb.mxu0 %v747_v47  ;;  %v1780_v47 = vld [vmem:[%s2153_s8] ss:$0 sm:$0xff] }
 0x156   :  { %v1375_v62 = vpop.eup %1374  ;;  %v452_v63 = vmul.f32 1.442695, %v429_v61  ;;  %767 = vmatpush.msrb.mxu0 %v746_v58  ;;  %v745_v61 = vld [vmem:[%s2149_s9] sm:$0xff] }
 0x157   :  { %v1206_v0 = vadd.f32 -1.0, %v1375_v62  ;;  %v851_v62 = vld [vmem:[%s2150_s11] sm:$0xff] }
 0x158   :  { %1376 = vpow2.f32 %v452_v63  ;;  %v403_v50 = vpop.f32.mrf.mxu3  ;;  %768 = vmatpush.msrb.mxu0 %v745_v61 }
 0x159   :  { %v382_v2 = vpop.f32.mrf.mxu1  ;;  %v492_v20 = vsel %vm412_vm11, %v377_v52, %v1206_v0  ;;  %v466_v52 = vmul.f32 1.442695, %v436_v49  ;;  %v404_v53 = vadd.f32 %v1619_v9, %v403_v50 }
 0x15a   :  { %v383_v3 = vadd.f32 %v1619_v9, %v382_v2  ;;  %1222 = vmatmul.msk.f32.gmra.mxu2 %vm510_vm4, %v492_v20  ;;  %v624_v9 = vld [vmem:[%s2148_s7] sm:$0xff] }
 0x15b   :  { %v437_v56 = vmin.f32 %v404_v53, 0.0  ;;  %695 = vmatpush.msrb.mxu3 %v624_v9  ;;  %vm421_vm6 = vcmp.gt.f32.partialorder %v404_v53, 0.0 }
 0x15c   :  { %v430_v5 = vmin.f32 %v383_v3, 0.0  ;;  %vm414_vm13 = vcmp.gt.f32.partialorder %v383_v3, 0.0 }
 0x15d   :  { %v468_v63 = vmul.f32 1.442695, %v437_v56 }
 0x15e   :  { %v1377_v7 = vpop.eup %1376  ;;  %v454_v8 = vmul.f32 1.442695, %v430_v5 }
 0x15f   :  { %v1207_v10 = vadd.f32 -1.0, %v1377_v7 }
 0x160   :  { %1378 = vpow2.f32 %v454_v8 }
 0x161   :  { %v493_v13 = vsel %vm413_vm12, %v380_v59, %v1207_v10  ;;  %1380 = vpow2.f32 %v456_v11  ;;  %v852_v59 = vld [vmem:[%s2150_s11 + $0x8] sm:$0xff] }
 0x162   :  { %1223 = vmatmul.msk.f32.gmra.mxu2 %vm510_vm4, %v493_v13  ;;  %1382 = vpow2.f32 %v458_v18  ;;  %873 = vmatpush.msrb.mxu1 %v852_v59 }
 0x163   :  { %1384 = vpow2.f32 %v460_v25 }
 0x164   :  { %1386 = vpow2.f32 %v462_v32  ;;  %874 = vmatpush.msrb.mxu1 %v851_v62 }
 0x165   :  { %1388 = vpow2.f32 %v464_v39 }
 0x166   :  { %v1379_v15 = vpop.eup %1378  ;;  %1390 = vpow2.f32 %v466_v52 }
 0x167   :  { %v1208_v17 = vadd.f32 -1.0, %v1379_v15  ;;  %v1381_v22 = vpop.eup %1380  ;;  %1392 = vpow2.f32 %v468_v63 }
 0x168   :  { %v1209_v24 = vadd.f32 -1.0, %v1381_v22  ;;  %v1383_v29 = vpop.eup %1382 }
 0x169   :  { %v494_v21 = vsel %vm414_vm13, %v383_v3, %v1208_v17  ;;  %v1210_v31 = vadd.f32 -1.0, %v1383_v29  ;;  %v1385_v35 = vpop.eup %1384 }
 0x16a   :  { %1224 = vmatmul.msk.f32.gmra.mxu2 %vm510_vm4, %v494_v21  ;;  %v495_v28 = vsel %vm415_vm14, %v386_v1, %v1209_v24  ;;  %v1211_v38 = vadd.f32 -1.0, %v1385_v35  ;;  %v1387_v42 = vpop.eup %1386 }
 0x16b   :  { %v496_v34 = vsel %vm416_vm15, %v389_v12, %v1210_v31  ;;  %v1212_v51 = vadd.f32 -1.0, %v1387_v42  ;;  %v1389_v55 = vpop.eup %1388  ;;  %v1766_v42 = vld [vmem:[%s2152_s12] ss:$0 sm:$0xff] }
 0x16c   :  { %v497_v41 = vsel %vm417_vm0, %v392_v19, %v1211_v38  ;;  %v1213_v60 = vadd.f32 -1.0, %v1389_v55  ;;  %v1391_v1 = vpop.eup %1390 }
 0x16d   :  { %v498_v54 = vsel %vm418_vm1, %v395_v26, %v1212_v51  ;;  %v1214_v2 = vadd.f32 -1.0, %v1391_v1  ;;  %v1393_v3 = vpop.eup %1392 }
 0x16e   :  { %v499_v0 = vsel %vm419_vm3, %v398_v33, %v1213_v60  ;;  %v1215_v4 = vadd.f32 -1.0, %v1393_v3 }
 0x16f   :  { %v500_v20 = vsel %vm420_vm5, %v401_v40, %v1214_v2 }
 0x170   :  { %v501_v5 = vsel %vm421_vm6, %v404_v53, %v1215_v4 }
 0x172   :  { %1225 = vmatmul.msk.f32.gmra.mxu2 %vm510_vm4, %v495_v28 }
 0x17a   :  { %1226 = vmatmul.msk.f32.gmra.mxu2 %vm510_vm4, %v496_v34 }
 0x182   :  { %1227 = vmatmul.msk.f32.gmra.mxu2 %vm510_vm4, %v497_v41  ;;  %v1761_v41 = vld [vmem:[%s2151_s10] ss:$0 sm:$0xff] }
 0x18a   :  { %1228 = vmatmul.msk.f32.gmra.mxu2 %vm510_vm4, %v498_v54 }
 0x192   :  { %1229 = vmatmul.msk.f32.gmra.mxu2 %vm510_vm4, %v499_v0 }
 0x19a   :  { %1230 = vmatmul.msk.f32.gmra.mxu2 %vm510_vm4, %v500_v20 }
 0x1a2   :  { %1231 = vmatmul.msk.f32.gmra.mxu2 %vm510_vm4, %v501_v5 }
 0x1ad   :  { %v576_v7 = vpop.f32.mrf.mxu2 }
 0x1ae   :  { %v577_v8 = vadd.f32 %v1692_v6, %v576_v7 }
 0x1b0   :  { %1232 = vmatmul.msk.f32.vlgmr.msrb.gmra.mxu3 %vm510_vm4, %v577_v8  ;;  %1248 = vmatmul.msk.f32.vlgmr.msrb.gmra.mxu0 %vm510_vm4, %v577_v8 }
 0x1b1   :  { %1264 = vmatmul.msk.f32.vlgmr.msrb.gmra.mxu1 %vm510_vm4, %v577_v8 }
 0x1b5   :  { %v579_v10 = vpop.f32.mrf.mxu2 }
 0x1b6   :  { %v580_v11 = vadd.f32 %v1692_v6, %v579_v10 }
 0x1b8   :  { %1233 = vmatmul.msk.f32.gmra.mxu3 %vm510_vm4, %v580_v11  ;;  %1249 = vmatmul.msk.f32.gmra.mxu0 %vm510_vm4, %v580_v11 }
 0x1b9   :  { %1265 = vmatmul.msk.f32.gmra.mxu1 %vm510_vm4, %v580_v11 }
 0x1bd   :  { %v582_v12 = vpop.f32.mrf.mxu2 }
 0x1be   :  { %v583_v13 = vadd.f32 %v1692_v6, %v582_v12 }
 0x1c0   :  { %1234 = vmatmul.msk.f32.gmra.mxu3 %vm510_vm4, %v583_v13  ;;  %1250 = vmatmul.msk.f32.gmra.mxu0 %vm510_vm4, %v583_v13 }
 0x1c1   :  { %1266 = vmatmul.msk.f32.gmra.mxu1 %vm510_vm4, %v583_v13 }
 0x1c5   :  { %v585_v14 = vpop.f32.mrf.mxu2 }
 0x1c6   :  { %v586_v15 = vadd.f32 %v1692_v6, %v585_v14 }
 0x1c8   :  { %1235 = vmatmul.msk.f32.gmra.mxu3 %vm510_vm4, %v586_v15  ;;  %1251 = vmatmul.msk.f32.gmra.mxu0 %vm510_vm4, %v586_v15 }
 0x1c9   :  { %1267 = vmatmul.msk.f32.gmra.mxu1 %vm510_vm4, %v586_v15 }
 0x1cd   :  { %v588_v16 = vpop.f32.mrf.mxu2 }
 0x1ce   :  { %v589_v17 = vadd.f32 %v1692_v6, %v588_v16 }
 0x1d0   :  { %1236 = vmatmul.msk.f32.gmra.mxu3 %vm510_vm4, %v589_v17  ;;  %1252 = vmatmul.msk.f32.gmra.mxu0 %vm510_vm4, %v589_v17 }
 0x1d1   :  { %1268 = vmatmul.msk.f32.gmra.mxu1 %vm510_vm4, %v589_v17 }
 0x1d5   :  { %v591_v18 = vpop.f32.mrf.mxu2 }
 0x1d6   :  { %v592_v19 = vadd.f32 %v1692_v6, %v591_v18 }
 0x1d8   :  { %1237 = vmatmul.msk.f32.gmra.mxu3 %vm510_vm4, %v592_v19  ;;  %1253 = vmatmul.msk.f32.gmra.mxu0 %vm510_vm4, %v592_v19 }
 0x1d9   :  { %1269 = vmatmul.msk.f32.gmra.mxu1 %vm510_vm4, %v592_v19 }
 0x1dd   :  { %v594_v21 = vpop.f32.mrf.mxu2 }
 0x1de   :  { %v595_v22 = vadd.f32 %v1692_v6, %v594_v21 }
 0x1e0   :  { %1238 = vmatmul.msk.f32.gmra.mxu3 %vm510_vm4, %v595_v22  ;;  %1254 = vmatmul.msk.f32.gmra.mxu0 %vm510_vm4, %v595_v22 }
 0x1e1   :  { %1270 = vmatmul.msk.f32.gmra.mxu1 %vm510_vm4, %v595_v22 }
 0x1e5   :  { %v597_v23 = vpop.f32.mrf.mxu2 }
 0x1e6   :  { %v598_v24 = vadd.f32 %v1692_v6, %v597_v23 }
 0x1e8   :  { %1239 = vmatmul.msk.f32.gmra.mxu3 %vm510_vm4, %v598_v24  ;;  %1255 = vmatmul.msk.f32.gmra.mxu0 %vm510_vm4, %v598_v24 }
 0x1e9   :  { %1271 = vmatmul.msk.f32.gmra.mxu1 %vm510_vm4, %v598_v24 }
 0x1ed   :  { %v600_v25 = vpop.f32.mrf.mxu2 }
 0x1ee   :  { %v601_v26 = vadd.f32 %v1692_v6, %v600_v25 }
 0x1f0   :  { %1240 = vmatmul.msk.f32.gmra.mxu3 %vm510_vm4, %v601_v26  ;;  %1256 = vmatmul.msk.f32.gmra.mxu0 %vm510_vm4, %v601_v26 }
 0x1f1   :  { %1272 = vmatmul.msk.f32.gmra.mxu1 %vm510_vm4, %v601_v26 }
 0x1f5   :  { %v603_v27 = vpop.f32.mrf.mxu2 }
 0x1f6   :  { %v604_v28 = vadd.f32 %v1692_v6, %v603_v27 }
 0x1f8   :  { %1241 = vmatmul.msk.f32.gmra.mxu3 %vm510_vm4, %v604_v28  ;;  %1257 = vmatmul.msk.f32.gmra.mxu0 %vm510_vm4, %v604_v28 }
 0x1f9   :  { %1273 = vmatmul.msk.f32.gmra.mxu1 %vm510_vm4, %v604_v28 }
 0x1fd   :  { %v606_v29 = vpop.f32.mrf.mxu2 }
 0x1fe   :  { %v607_v30 = vadd.f32 %v1692_v6, %v606_v29 }
 0x200   :  { %1242 = vmatmul.msk.f32.gmra.mxu3 %vm510_vm4, %v607_v30  ;;  %1258 = vmatmul.msk.f32.gmra.mxu0 %vm510_vm4, %v607_v30 }
 0x201   :  { %1274 = vmatmul.msk.f32.gmra.mxu1 %vm510_vm4, %v607_v30 }
 0x205   :  { %v609_v31 = vpop.f32.mrf.mxu2 }
 0x206   :  { %v610_v32 = vadd.f32 %v1692_v6, %v609_v31 }
 0x208   :  { %1243 = vmatmul.msk.f32.gmra.mxu3 %vm510_vm4, %v610_v32  ;;  %1259 = vmatmul.msk.f32.gmra.mxu0 %vm510_vm4, %v610_v32 }
 0x209   :  { %1275 = vmatmul.msk.f32.gmra.mxu1 %vm510_vm4, %v610_v32 }
 0x20d   :  { %v612_v33 = vpop.f32.mrf.mxu2 }
 0x20e   :  { %v613_v34 = vadd.f32 %v1692_v6, %v612_v33 }
 0x210   :  { %1244 = vmatmul.msk.f32.gmra.mxu3 %vm510_vm4, %v613_v34  ;;  %1260 = vmatmul.msk.f32.gmra.mxu0 %vm510_vm4, %v613_v34 }
 0x211   :  { %1276 = vmatmul.msk.f32.gmra.mxu1 %vm510_vm4, %v613_v34 }
 0x215   :  { %v615_v35 = vpop.f32.mrf.mxu2 }
 0x216   :  { %v616_v36 = vadd.f32 %v1692_v6, %v615_v35 }
 0x218   :  { %1245 = vmatmul.msk.f32.gmra.mxu3 %vm510_vm4, %v616_v36  ;;  %1261 = vmatmul.msk.f32.gmra.mxu0 %vm510_vm4, %v616_v36 }
 0x219   :  { %1277 = vmatmul.msk.f32.gmra.mxu1 %vm510_vm4, %v616_v36 }
 0x21d   :  { %v618_v37 = vpop.f32.mrf.mxu2 }
 0x21e   :  { %v619_v38 = vadd.f32 %v1692_v6, %v618_v37 }
 0x220   :  { %1246 = vmatmul.msk.f32.gmra.mxu3 %vm510_vm4, %v619_v38  ;;  %1262 = vmatmul.msk.f32.gmra.mxu0 %vm510_vm4, %v619_v38 }
 0x221   :  { %1278 = vmatmul.msk.f32.gmra.mxu1 %vm510_vm4, %v619_v38 }
 0x225   :  { %v621_v39 = vpop.f32.mrf.mxu2 }
 0x226   :  { %v622_v40 = vadd.f32 %v1692_v6, %v621_v39 }
 0x228   :  { %1247 = vmatmul.msk.f32.gmra.mxu3 %vm510_vm4, %v622_v40  ;;  %1263 = vmatmul.msk.f32.gmra.mxu0 %vm510_vm4, %v622_v40 }
 0x229   :  { %1279 = vmatmul.msk.f32.gmra.mxu1 %vm510_vm4, %v622_v40 }
 0x22d   :  { %v770_v43 = vpop.f32.mrf.mxu0 }
 0x22e   :  { %v1769_v44 = vadd.f32 %v1761_v41, %v770_v43  ;;  %v876_v45 = vpop.f32.mrf.mxu1 }
 0x22f   :  { %v877_v46 = vadd.f32 %v1766_v42, %v876_v45 }
 0x230   :  { %835 = vst.msk [vmem:[%s2154_s16] sm:$0xff] %vm834_vm7, %v1769_v44 }
 0x231   :  { %924 = vst.msk [vmem:[%s2155_s18] sm:$0xff] %vm510_vm4, %v877_v46 }
 0x233   :  { %v697_v48 = vpop.f32.mrf.mxu3 }
 0x234   :  { %v1787_v49 = vadd.f32 %v1780_v47, %v697_v48 }
 0x235   :  { %v773_v50 = vpop.f32.mrf.mxu0 }
 0x236   :  { %818 = vst.msk [vmem:[%s2156_s13] sm:$0xff] %vm292_vm2, %v1787_v49  ;;  %v1795_v51 = vadd.f32 %v1761_v41, %v773_v50  ;;  %v879_v52 = vpop.f32.mrf.mxu1 }
 0x237   :  { %v880_v53 = vadd.f32 %v1766_v42, %v879_v52 }
 0x238   :  { %836 = vst.msk [vmem:[%s2154_s16 + $0x8] sm:$0xff] %vm834_vm7, %v1795_v51 }
 0x239   :  { %925 = vst.msk [vmem:[%s2155_s18 + $0x8] sm:$0xff] %vm510_vm4, %v880_v53 }
 0x23b   :  { %v700_v54 = vpop.f32.mrf.mxu3 }
 0x23c   :  { %v1808_v55 = vadd.f32 %v1780_v47, %v700_v54 }
 0x23d   :  { %v776_v56 = vpop.f32.mrf.mxu0 }
 0x23e   :  { %819 = vst.msk [vmem:[%s2156_s13 + $0x8] sm:$0xff] %vm292_vm2, %v1808_v55  ;;  %v1816_v57 = vadd.f32 %v1761_v41, %v776_v56  ;;  %v882_v58 = vpop.f32.mrf.mxu1 }
 0x23f   :  { %v883_v59 = vadd.f32 %v1766_v42, %v882_v58 }
 0x240   :  { %837 = vst.msk [vmem:[%s2154_s16 + $0x10] sm:$0xff] %vm834_vm7, %v1816_v57 }
 0x241   :  { %926 = vst.msk [vmem:[%s2155_s18 + $0x10] sm:$0xff] %vm510_vm4, %v883_v59 }
 0x243   :  { %v703_v60 = vpop.f32.mrf.mxu3 }
 0x244   :  { %v1829_v9 = vadd.f32 %v1780_v47, %v703_v60 }
 0x245   :  { %v779_v61 = vpop.f32.mrf.mxu0 }
 0x246   :  { %820 = vst.msk [vmem:[%s2156_s13 + $0x10] sm:$0xff] %vm292_vm2, %v1829_v9  ;;  %v1837_v62 = vadd.f32 %v1761_v41, %v779_v61  ;;  %v885_v63 = vpop.f32.mrf.mxu1 }
 0x247   :  { %v886_v0 = vadd.f32 %v1766_v42, %v885_v63 }
 0x248   :  { %838 = vst.msk [vmem:[%s2154_s16 + $0x18] sm:$0xff] %vm834_vm7, %v1837_v62 }
 0x249   :  { %927 = vst.msk [vmem:[%s2155_s18 + $0x18] sm:$0xff] %vm510_vm4, %v886_v0 }
 0x24b   :  { %v706_v1 = vpop.f32.mrf.mxu3 }
 0x24c   :  { %v1850_v2 = vadd.f32 %v1780_v47, %v706_v1 }
 0x24d   :  { %v782_v20 = vpop.f32.mrf.mxu0 }
 0x24e   :  { %821 = vst.msk [vmem:[%s2156_s13 + $0x18] sm:$0xff] %vm292_vm2, %v1850_v2  ;;  %v1858_v3 = vadd.f32 %v1761_v41, %v782_v20  ;;  %v888_v4 = vpop.f32.mrf.mxu1 }
 0x24f   :  { %v889_v5 = vadd.f32 %v1766_v42, %v888_v4 }
 0x250   :  { %839 = vst.msk [vmem:[%s2154_s16 + $0x20] sm:$0xff] %vm834_vm7, %v1858_v3 }
 0x251   :  { %928 = vst.msk [vmem:[%s2155_s18 + $0x20] sm:$0xff] %vm510_vm4, %v889_v5 }
 0x253   :  { %v709_v6 = vpop.f32.mrf.mxu3 }
 0x254   :  { %v1871_v7 = vadd.f32 %v1780_v47, %v709_v6 }
 0x255   :  { %v785_v8 = vpop.f32.mrf.mxu0 }
 0x256   :  { %822 = vst.msk [vmem:[%s2156_s13 + $0x20] sm:$0xff] %vm292_vm2, %v1871_v7  ;;  %v1879_v10 = vadd.f32 %v1761_v41, %v785_v8  ;;  %v891_v11 = vpop.f32.mrf.mxu1 }
 0x257   :  { %v892_v12 = vadd.f32 %v1766_v42, %v891_v11 }
 0x258   :  { %840 = vst.msk [vmem:[%s2154_s16 + $0x28] sm:$0xff] %vm834_vm7, %v1879_v10 }
 0x259   :  { %929 = vst.msk [vmem:[%s2155_s18 + $0x28] sm:$0xff] %vm510_vm4, %v892_v12 }
 0x25b   :  { %v712_v13 = vpop.f32.mrf.mxu3 }
 0x25c   :  { %v1892_v14 = vadd.f32 %v1780_v47, %v712_v13 }
 0x25d   :  { %v788_v15 = vpop.f32.mrf.mxu0 }
 0x25e   :  { %823 = vst.msk [vmem:[%s2156_s13 + $0x28] sm:$0xff] %vm292_vm2, %v1892_v14  ;;  %v1900_v16 = vadd.f32 %v1761_v41, %v788_v15  ;;  %v894_v17 = vpop.f32.mrf.mxu1 }
 0x25f   :  { %v895_v18 = vadd.f32 %v1766_v42, %v894_v17 }
 0x260   :  { %841 = vst.msk [vmem:[%s2154_s16 + $0x30] sm:$0xff] %vm834_vm7, %v1900_v16 }
 0x261   :  { %930 = vst.msk [vmem:[%s2155_s18 + $0x30] sm:$0xff] %vm510_vm4, %v895_v18 }
 0x263   :  { %v715_v19 = vpop.f32.mrf.mxu3 }
 0x264   :  { %v1913_v21 = vadd.f32 %v1780_v47, %v715_v19 }
 0x265   :  { %v791_v22 = vpop.f32.mrf.mxu0 }
 0x266   :  { %824 = vst.msk [vmem:[%s2156_s13 + $0x30] sm:$0xff] %vm292_vm2, %v1913_v21  ;;  %v1921_v23 = vadd.f32 %v1761_v41, %v791_v22  ;;  %v897_v24 = vpop.f32.mrf.mxu1 }
 0x267   :  { %v898_v25 = vadd.f32 %v1766_v42, %v897_v24 }
 0x268   :  { %842 = vst.msk [vmem:[%s2154_s16 + $0x38] sm:$0xff] %vm834_vm7, %v1921_v23 }
 0x269   :  { %931 = vst.msk [vmem:[%s2155_s18 + $0x38] sm:$0xff] %vm510_vm4, %v898_v25 }
 0x26b   :  { %v718_v26 = vpop.f32.mrf.mxu3 }
 0x26c   :  { %v1934_v27 = vadd.f32 %v1780_v47, %v718_v26 }
 0x26d   :  { %v794_v28 = vpop.f32.mrf.mxu0 }
 0x26e   :  { %825 = vst.msk [vmem:[%s2156_s13 + $0x38] sm:$0xff] %vm292_vm2, %v1934_v27  ;;  %v1942_v29 = vadd.f32 %v1761_v41, %v794_v28  ;;  %v900_v30 = vpop.f32.mrf.mxu1 }
 0x26f   :  { %v901_v31 = vadd.f32 %v1766_v42, %v900_v30 }
 0x270   :  { %843 = vst.msk [vmem:[%s2154_s16 + $0x40] sm:$0xff] %vm834_vm7, %v1942_v29 }
 0x271   :  { %932 = vst.msk [vmem:[%s2155_s18 + $0x40] sm:$0xff] %vm510_vm4, %v901_v31 }
 0x273   :  { %v721_v32 = vpop.f32.mrf.mxu3 }
 0x274   :  { %v1955_v33 = vadd.f32 %v1780_v47, %v721_v32 }
 0x275   :  { %v797_v34 = vpop.f32.mrf.mxu0 }
 0x276   :  { %826 = vst.msk [vmem:[%s2156_s13 + $0x40] sm:$0xff] %vm292_vm2, %v1955_v33  ;;  %v1963_v35 = vadd.f32 %v1761_v41, %v797_v34  ;;  %v903_v36 = vpop.f32.mrf.mxu1 }
 0x277   :  { %v904_v37 = vadd.f32 %v1766_v42, %v903_v36 }
 0x278   :  { %844 = vst.msk [vmem:[%s2154_s16 + $0x48] sm:$0xff] %vm834_vm7, %v1963_v35 }
 0x279   :  { %933 = vst.msk [vmem:[%s2155_s18 + $0x48] sm:$0xff] %vm510_vm4, %v904_v37 }
 0x27b   :  { %v724_v38 = vpop.f32.mrf.mxu3 }
 0x27c   :  { %v1976_v39 = vadd.f32 %v1780_v47, %v724_v38 }
 0x27d   :  { %v800_v40 = vpop.f32.mrf.mxu0 }
 0x27e   :  { %827 = vst.msk [vmem:[%s2156_s13 + $0x48] sm:$0xff] %vm292_vm2, %v1976_v39  ;;  %v801_v43 = vadd.f32 %v1761_v41, %v800_v40  ;;  %v906_v45 = vpop.f32.mrf.mxu1 }
 0x27f   :  { %v907_v46 = vadd.f32 %v1766_v42, %v906_v45 }
 0x280   :  { %845 = vst.msk [vmem:[%s2154_s16 + $0x50] sm:$0xff] %vm834_vm7, %v801_v43 }
 0x281   :  { %934 = vst.msk [vmem:[%s2155_s18 + $0x50] sm:$0xff] %vm510_vm4, %v907_v46 }
 0x283   :  { %v727_v48 = vpop.f32.mrf.mxu3 }
 0x284   :  { %v728_v50 = vadd.f32 %v1780_v47, %v727_v48 }
 0x285   :  { %v803_v52 = vpop.f32.mrf.mxu0 }
 0x286   :  { %828 = vst.msk [vmem:[%s2156_s13 + $0x50] sm:$0xff] %vm292_vm2, %v728_v50  ;;  %v804_v53 = vadd.f32 %v1761_v41, %v803_v52  ;;  %v909_v54 = vpop.f32.mrf.mxu1 }
 0x287   :  { %v910_v56 = vadd.f32 %v1766_v42, %v909_v54 }
 0x288   :  { %846 = vst.msk [vmem:[%s2154_s16 + $0x58] sm:$0xff] %vm834_vm7, %v804_v53 }
 0x289   :  { %935 = vst.msk [vmem:[%s2155_s18 + $0x58] sm:$0xff] %vm510_vm4, %v910_v56 }
 0x28b   :  { %v730_v58 = vpop.f32.mrf.mxu3 }
 0x28c   :  { %v731_v59 = vadd.f32 %v1780_v47, %v730_v58 }
 0x28d   :  { %v806_v60 = vpop.f32.mrf.mxu0 }
 0x28e   :  { %829 = vst.msk [vmem:[%s2156_s13 + $0x58] sm:$0xff] %vm292_vm2, %v731_v59  ;;  %v807_v61 = vadd.f32 %v1761_v41, %v806_v60  ;;  %v912_v63 = vpop.f32.mrf.mxu1 }
 0x28f   :  { %v913_v0 = vadd.f32 %v1766_v42, %v912_v63 }
 0x290   :  { %847 = vst.msk [vmem:[%s2154_s16 + $0x60] sm:$0xff] %vm834_vm7, %v807_v61 }
 0x291   :  { %936 = vst.msk [vmem:[%s2155_s18 + $0x60] sm:$0xff] %vm510_vm4, %v913_v0 }
 0x293   :  { %v733_v1 = vpop.f32.mrf.mxu3 }
 0x294   :  { %v734_v20 = vadd.f32 %v1780_v47, %v733_v1 }
 0x295   :  { %v809_v4 = vpop.f32.mrf.mxu0 }
 0x296   :  { %830 = vst.msk [vmem:[%s2156_s13 + $0x60] sm:$0xff] %vm292_vm2, %v734_v20  ;;  %v810_v5 = vadd.f32 %v1761_v41, %v809_v4  ;;  %v915_v6 = vpop.f32.mrf.mxu1 }
 0x297   :  { %v916_v8 = vadd.f32 %v1766_v42, %v915_v6 }
 0x298   :  { %848 = vst.msk [vmem:[%s2154_s16 + $0x68] sm:$0xff] %vm834_vm7, %v810_v5 }
 0x299   :  { %937 = vst.msk [vmem:[%s2155_s18 + $0x68] sm:$0xff] %vm510_vm4, %v916_v8 }
 0x29b   :  { %v736_v11 = vpop.f32.mrf.mxu3 }
 0x29c   :  { %v737_v12 = vadd.f32 %v1780_v47, %v736_v11 }
 0x29d   :  { %v812_v13 = vpop.f32.mrf.mxu0 }
 0x29e   :  { %831 = vst.msk [vmem:[%s2156_s13 + $0x68] sm:$0xff] %vm292_vm2, %v737_v12  ;;  %v813_v15 = vadd.f32 %v1761_v41, %v812_v13  ;;  %v918_v17 = vpop.f32.mrf.mxu1 }
 0x29f   :  { %v919_v18 = vadd.f32 %v1766_v42, %v918_v17 }
 0x2a0   :  { %849 = vst.msk [vmem:[%s2154_s16 + $0x70] sm:$0xff] %vm834_vm7, %v813_v15 }
 0x2a1   :  { %938 = vst.msk [vmem:[%s2155_s18 + $0x70] sm:$0xff] %vm510_vm4, %v919_v18 }
 0x2a3   :  { %v739_v19 = vpop.f32.mrf.mxu3 }
 0x2a4   :  { %v740_v22 = vadd.f32 %v1780_v47, %v739_v19 }
 0x2a5   :  { %v815_v24 = vpop.f32.mrf.mxu0 }
 0x2a6   :  { %832 = vst.msk [vmem:[%s2156_s13 + $0x70] sm:$0xff] %vm292_vm2, %v740_v22  ;;  %v816_v25 = vadd.f32 %v1761_v41, %v815_v24  ;;  %v921_v26 = vpop.f32.mrf.mxu1  ;;  %v940_v41 = vlaneseq }
 0x2a7   :  { %v922_v28 = vadd.f32 %v1766_v42, %v921_v26 }
 0x2a8   :  { %850 = vst.msk [vmem:[%s2154_s16 + $0x78] sm:$0xff] %vm834_vm7, %v816_v25  ;;  %1300 = vmatpush.xpose.msk.msra.mxu3 %vm834_vm7, %v816_v25  ;;  %v941_v42 = vshrl.u32 %v940_v41, 7 }
 0x2a9   :  { %939 = vst.msk [vmem:[%s2155_s18 + $0x78] sm:$0xff] %vm510_vm4, %v922_v28 }
 0x2ab   :  { %v742_v30 = vpop.f32.mrf.mxu3 }
 0x2ac   :  { %v743_v31 = vadd.f32 %v1780_v47, %v742_v30  ;;  %1301 = vmatpush.xpose.msk.msra.mxu3 %vm834_vm7, %v813_v15  ;;  %v944_v47 = vand.u32 127, %v940_v41 }
 0x2ae   :  { %833 = vst.msk [vmem:[%s2156_s13 + $0x78] sm:$0xff] %vm292_vm2, %v743_v31  ;;  %1282 = vmatpush.xpose.msk.msra.mxu2 %vm292_vm2, %v743_v31  ;;  %vm945_vm4 = vcmp.eq.s32.totalorder %v941_v42, %v944_v47 }
 0x2b0   :  { %1302 = vmatpush.xpose.msk.msra.mxu3 %vm834_vm7, %v810_v5 }
 0x2b2   :  { %1283 = vmatpush.xpose.msk.msra.mxu2 %vm292_vm2, %v740_v22 }
 0x2b4   :  { %1303 = vmatpush.xpose.msk.msra.mxu3 %vm834_vm7, %v807_v61 }
 0x2b6   :  { %1284 = vmatpush.xpose.msk.msra.mxu2 %vm292_vm2, %v737_v12 }
 0x2b8   :  { %1304 = vmatpush.xpose.msk.msra.mxu3 %vm834_vm7, %v804_v53 }
 0x2ba   :  { %1285 = vmatpush.xpose.msk.msra.mxu2 %vm292_vm2, %v734_v20 }
 0x2bc   :  { %1305 = vmatpush.xpose.msk.msra.mxu3 %vm834_vm7, %v801_v43 }
 0x2be   :  { %1286 = vmatpush.xpose.msk.msra.mxu2 %vm292_vm2, %v731_v59 }
 0x2c0   :  { %1306 = vmatpush.xpose.msk.msra.mxu3 %vm834_vm7, %v1963_v35 }
 0x2c2   :  { %1287 = vmatpush.xpose.msk.msra.mxu2 %vm292_vm2, %v728_v50 }
 0x2c4   :  { %1307 = vmatpush.xpose.msk.msra.mxu3 %vm834_vm7, %v1942_v29 }
 0x2c6   :  { %1288 = vmatpush.xpose.msk.msra.mxu2 %vm292_vm2, %v1976_v39 }
 0x2c8   :  { %1308 = vmatpush.xpose.msk.msra.mxu3 %vm834_vm7, %v1921_v23 }
 0x2ca   :  { %1289 = vmatpush.xpose.msk.msra.mxu2 %vm292_vm2, %v1955_v33 }
 0x2cc   :  { %1309 = vmatpush.xpose.msk.msra.mxu3 %vm834_vm7, %v1900_v16 }
 0x2ce   :  { %1290 = vmatpush.xpose.msk.msra.mxu2 %vm292_vm2, %v1934_v27 }
 0x2d0   :  { %1310 = vmatpush.xpose.msk.msra.mxu3 %vm834_vm7, %v1879_v10 }
 0x2d2   :  { %1291 = vmatpush.xpose.msk.msra.mxu2 %vm292_vm2, %v1913_v21 }
 0x2d4   :  { %1311 = vmatpush.xpose.msk.msra.mxu3 %vm834_vm7, %v1858_v3 }
 0x2d6   :  { %1292 = vmatpush.xpose.msk.msra.mxu2 %vm292_vm2, %v1892_v14 }
 0x2d8   :  { %1312 = vmatpush.xpose.msk.msra.mxu3 %vm834_vm7, %v1837_v62  ;;  %v1394_v62 = vmov 0.0  }
 0x2da   :  { %1293 = vmatpush.xpose.msk.msra.mxu2 %vm292_vm2, %v1871_v7  ;;  %v1395_v7 = vmov 1.0  }
 0x2dc   :  { %1313 = vmatpush.xpose.msk.msra.mxu3 %vm834_vm7, %v1816_v57  ;;  %v1280_v57 = vsel %vm945_vm4, 1.0, %v1394_v62 }
 0x2de   :  { %1294 = vmatpush.xpose.msk.msra.mxu2 %vm292_vm2, %v1850_v2  ;;  %v942_v2 = vadd.s32 8, %v941_v42 }
 0x2e0   :  { %1314 = vmatpush.xpose.msk.msra.mxu3 %vm834_vm7, %v1795_v51  ;;  %vm946_vm8 = vcmp.eq.s32.totalorder %v942_v2, %v944_v47 }
 0x2e1   :  { %v1281_v51 = vsel %vm946_vm8, 1.0, %v1394_v62 }
 0x2e2   :  { %1295 = vmatpush.xpose.msk.msra.mxu2 %vm292_vm2, %v1829_v9 }
 0x2e4   :  { %1315 = vmatpush.xpose.msk.msra.mxu3 %vm834_vm7, %v1769_v44 }
 0x2e6   :  { %1296 = vmatpush.xpose.msk.msra.mxu2 %vm292_vm2, %v1808_v55 }
 0x2e7   :  { %1316 = vmatmul.msk.f32.vlgmr.msra.gmra.mxu3 %vm834_vm7, %v1280_v57 }
 0x2ea   :  { %1297 = vmatpush.xpose.msk.msra.mxu2 %vm292_vm2, %v1787_v49 }
 0x2ed   :  { %1298 = vmatmul.msk.f32.vlgmr.msra.gmra.mxu2 %vm292_vm2, %v1280_v57 }
 0x2f5   :  { %1299 = vmatmul.msk.f32.gmra.mxu2 %vm292_vm2, %v1281_v51 }
 0x36a   :  { %v1095_v9 = vpop.f32.mrf.mxu3 }
 0x36b   :  { %1100 = vst [vmem:[%s2157_s17] sm:$0xff] %v1095_v9 }
 0x370   :  { %v1022_v44 = vpop.f32.mrf.mxu2 }
 0x371   :  { %1098 = vst [vmem:[%s2158_s14] sm:$0xff] %v1022_v44  ;;  %v1101_v3 = vmul.f32 %v1022_v44, %v1022_v44 }
 0x378   :  { %v1025_v55 = vpop.f32.mrf.mxu2 }
 0x379   :  { %1099 = vst [vmem:[%s2158_s14 + $0x8] sm:$0xff] %v1025_v55  ;;  %v1102_v49 = vmul.f32 %v1025_v55, %v1025_v55 }
 0x37b   :  { %1120 = vmatpush.msrb.mxu3 %v1102_v49 }
 0x37d   :  { %1121 = vmatpush.msrb.mxu3 %v1101_v3 }
 0x37e   :  { %1317 = vmatmul.msk.f32.vlgmr.msrb.gmra.mxu3 %vm292_vm2, %v1395_v7 }
 0x401   :  { %v1123_v10 = vpop.f32.mrf.mxu3 }
 0x402   :  { %1126 = vst [vmem:[%s2159_s15] sm:$0x1] %v1123_v10 }

// kernel: net_forward.3
= control target key start
LH: loop header
LB: loop body
LE: loop exit
PB: predicated region body
PF: predicated region fallthrough
CT: control target
= control target key end

     0   :  { %s3297_s23 = smov 0   ;;  %s4514_s0 = inlined_call_operand.vmem [shape: f32[128,16], index: 0, kind: input, shape index: {}]   ;;  %s4515_s1 = inlined_call_operand.vmem [shape: f32[128,1], index: 1, kind: input, shape index: {}]   ;;  %s4516_s2 = inlined_call_operand.vmem [shape: f32[128,32], index: 2, kind: input, shape index: {}]   ;;  %s4517_s3 = inlined_call_operand.vmem [shape: f32[128,13], index: 3, kind: input, shape index: {}]   ;;  %s4518_s4 = inlined_call_operand.vmem [shape: f32[16,128], index: 4, kind: input, shape index: {}]   ;;  %s4519_s5 = inlined_call_operand.vmem [shape: f32[1,128], index: 5, kind: input, shape index: {}]   ;;  %s4520_s6 = inlined_call_operand.vmem [shape: f32[1,128], index: 6, kind: input, shape index: {}]   ;;  %s4521_s7 = inlined_call_operand.vmem [shape: f32[128,8], index: 7, kind: input, shape index: {}]   ;;  %s4522_s8 = inlined_call_operand.vmem [shape: f32[8,128], index: 8, kind: input, shape index: {}]   ;;  %s4523_s9 = inlined_call_operand.vmem [shape: f32[8,32], index: 9, kind: input, shape index: {}]   ;;  %s4524_s10 = inlined_call_operand.vmem [shape: f32[8,32], index: 10, kind: input, shape index: {}]   ;;  %s4525_s11 = inlined_call_operand.vmem [shape: f32[32,16], index: 11, kind: input, shape index: {}]   ;;  %s4526_s12 = inlined_call_operand.vmem [shape: f32[1,16], index: 12, kind: input, shape index: {}]   ;;  %s4527_s13 = inlined_call_operand.vmem [shape: f32[16,4], index: 13, kind: input, shape index: {}]   ;;  %s4528_s14 = inlined_call_operand.vmem [shape: f32[1,4], index: 14, kind: input, shape index: {}]   ;;  %s4529_s15 = inlined_call_operand.vmem [shape: f32[4,4], index: 15, kind: input, shape index: {}]   ;;  %s4530_s16 = inlined_call_operand.vmem [shape: f32[13,4], index: 16, kind: input, shape index: {}]   ;;  %s4531_s17 = inlined_call_operand.vmem [shape: f32[1,4], index: 17, kind: input, shape index: {}]   ;;  %s4532_s18 = inlined_call_operand.vmem [shape: f32[4,1], index: 18, kind: input, shape index: {}]   ;;  %s4533_s19 = inlined_call_operand.<no memory space> [shape: f32[1,1], index: 19, kind: input, shape index: {}]   ;;  %s4534_s20 = inlined_call_operand.vmem [shape: f32[128,1], index: 20, kind: output, shape index: {}]  }
   0x1   :  { %4536 = sst [smem:[#allocation4_spill]] %s4514_s0  ;;  %v25_v0 = vstv %s4533_s19 }
   0x2   :  { %4537 = sst [smem:[#allocation5_spill]] %s4515_s1  ;;  %26 = vst [vmem:[#allocation3] sm:$0x1] %v25_v0 }
   0x3   :  { %4538 = sst [smem:[#allocation6_spill]] %s4516_s2 }
   0x4   :  { %4539 = sst [smem:[#allocation7_spill]] %s4517_s3 }
   0x5   :  { %4540 = sst [smem:[#allocation8_spill]] %s4518_s4 }
   0x6 LB: > { %s2704_s24 = sadd.s32 4294967295, %s3114_s23   ;;  %p2708_p0 = scmp.ge.s32.totalorder %s3114_s23, 1  ;;  %s3114_s23 = sphi %s3297_s23, %s32_s23  }
   0x7   : > { %p598_p1 = scmp.lt.s32.totalorder %s3114_s23, 3 }
   0x9   : > { %p599_p2 = pnand %p2708_p0, %p598_p1 }
   0xa   : > { %s2709_s2 = sshll.u32 (!%p599_p2), %s2704_s24, 3  ;;  %s4541_s26 = sld [smem:[#allocation4_spill]] (!%p599_p2) }
   0xb   : > { %602 = sbr.rel (%p599_p2) target bundleno = 1733 (0x6c5), region = 100  ;;  %p672_p3 = scmp.lt.s32.totalorder (!%p599_p2), %s2709_s2, 15 }
   0xc   : > { %s4542_s29 = sld [smem:[#allocation6_spill]] (!%p599_p2) }
   0xd   : > { %s4543_s1 = sld [smem:[#allocation7_spill]] (!%p599_p2) }
   0xe   : > { %s4544_s28 = sld [smem:[#allocation8_spill]] (!%p599_p2) }
  0x10   : > { %v3184_v1 = vmov 1.0   ;;  %s4580_s2 = smov (!%p672_p3, %s2709_s2), 15  ;;  %vm725_vm0 = vcmask 130048   ;;  %v3185_v18 = vmov 0   ;;  %v2968_v46 = vld [vmem:[%s4519_s5] ss:$0 sm:$0xff] }
  0x11   : > { %764 = vmatpush.msra.mxu0 %v3184_v1  ;;  %2812 = vmatpush.msra.mxu1 %v3184_v1  ;;  %s2710_s19 = sshll.u32 %s4580_s2, 3  ;;  %v3384_v54 = vld [vmem:[%s4520_s6] ss:$0 sm:$0xff] }
  0x12   : > { %s3308_s27 = scalar_lea.vmem %s4541_s26, %s2710_s19  ;;  %s3313_s30 = scalar_lea.vmem %s4542_s29, %s2710_s19  ;;  %2965 = vset.pattern.permute.xlu0 %v3185_v18  ;;  %2966 = vset.pattern.permute.xlu1 %v3185_v18 }
  0x13   : > { %765 = vmatpush.msra.mxu0 %v3184_v1  ;;  %2813 = vmatpush.msra.mxu1 %v3184_v1  ;;  %s3318_s22 = scalar_lea.vmem %s4543_s1, %s2710_s19  ;;  %s3323_s25 = scalar_lea.vmem %s4534_s20, %s2710_s19  ;;  %v701_v2 = vld [vmem:[%s3308_s27] sm:$0xff]  ;;  %v707_v3 = vld [vmem:[%s3308_s27 + $0x30] sm:$0xff]  ;;  %v702_v6 = vld [vmem:[%s3308_s27 + $0x8] sm:$0xff] }
  0x14   : > { %v717_v4 = vmul.f32 %v701_v2, %v701_v2  ;;  %v723_v5 = vmul.f32 %v707_v3, %v707_v3  ;;  %v708_v7 = vld [vmem:[%s3308_s27 + $0x38] sm:$0xff]  ;;  %v718_v8 = vmul.f32 %v702_v6, %v702_v6  ;;  %v792_v10 = vld [vmem:[%s4544_s28 + $0x8] sm:$0xff]  ;;  %v791_v11 = vld [vmem:[%s4544_s28] sm:$0xff]  ;;  %s4545_s1 = sld [smem:[#allocation5_spill]]  ;;  %2964 = vset.pattern.permute.xlu2 %v3185_v18  ;;  %s3440_s26 = smov 0  }
  0x15   : > { %v724_v9 = vmul.f32 %v708_v7, %v708_v7  ;;  %v703_v12 = vld [vmem:[%s3308_s27 + $0x10] sm:$0xff]  ;;  %831 = vmatpush.msrb.mxu1 %v792_v10  ;;  %v704_v14 = vld [vmem:[%s3308_s27 + $0x18] sm:$0xff]  ;;  %v705_v17 = vld [vmem:[%s3308_s27 + $0x20] sm:$0xff] }
  0x16   : > { %2719 = vmatmul.msk.f32.vlgmr.msra.gmra.mxu0 %vm725_vm0, %v717_v4  ;;  %2725 = vmatmul.msk.f32.vlgmr.msra.gmra.mxu1 %vm725_vm0, %v723_v5  ;;  %v719_v13 = vmul.f32 %v703_v12, %v703_v12  ;;  %v720_v15 = vmul.f32 %v704_v14, %v704_v14  ;;  %v721_v19 = vmul.f32 %v705_v17, %v705_v17  ;;  %v706_v21 = vld [vmem:[%s3308_s27 + $0x28] sm:$0xff] }
  0x17   : > { %832 = vmatpush.msrb.mxu1 %v791_v11  ;;  %v722_v22 = vmul.f32 %v706_v21, %v706_v21 }
  0x1a   : > { %s3346_s24 = scalar_lea.vmem %s4545_s1, %s2710_s19 }
  0x1b   : > { %v710_v16 = vld [vmem:[%s3346_s24 + $0x8] sm:$0xff]  ;;  %v713_v20 = vld [vmem:[%s3346_s24 + $0x20] sm:$0xff]  ;;  %v711_v23 = vld [vmem:[%s3346_s24 + $0x10] sm:$0xff] }
  0x1c   : > { %942 = vperm.xlu0 %2965, %v710_v16   ;;  %947 = vperm.xlu1 %2966, %v711_v23   ;;  %v709_v24 = vld [vmem:[%s3346_s24] sm:$0xff]  ;;  %v712_v25 = vld [vmem:[%s3346_s24 + $0x18] sm:$0xff]  ;;  %v714_v33 = vld [vmem:[%s3346_s24 + $0x28] sm:$0xff] }
  0x1d   : > { %937 = vperm.xlu2 %2964, %v709_v24   ;;  %v716_v31 = vld [vmem:[%s3346_s24 + $0x38] sm:$0xff]  ;;  %v715_v36 = vld [vmem:[%s3346_s24 + $0x30] sm:$0xff] }
  0x1e   : > { %2720 = vmatmul.msk.f32.gmra.mxu0 %vm725_vm0, %v718_v8  ;;  %2726 = vmatmul.msk.f32.gmra.mxu1 %vm725_vm0, %v724_v9 }
  0x24   : > { %957 = vperm.xlu0 %2965, %v713_v20  }
  0x25   : > { %952 = vperm.xlu2 %2964, %v712_v25  }
  0x26   : > { %2721 = vmatmul.msk.f32.gmra.mxu0 %vm725_vm0, %v719_v13  ;;  %2727 = vmatmul.msk.f32.vlgmr.msrb.gmra.mxu1 %vm725_vm0, %v701_v2 }
  0x2e   : > { %2722 = vmatmul.msk.f32.gmra.mxu0 %vm725_vm0, %v720_v15  ;;  %2728 = vmatmul.msk.f32.gmra.mxu1 %vm725_vm0, %v702_v6 }
  0x36   : > { %2723 = vmatmul.msk.f32.gmra.mxu0 %vm725_vm0, %v721_v19  ;;  %2729 = vmatmul.msk.f32.gmra.mxu1 %vm725_vm0, %v703_v12 }
  0x3e   : > { %2724 = vmatmul.msk.f32.gmra.mxu0 %vm725_vm0, %v722_v22  ;;  %2730 = vmatmul.msk.f32.gmra.mxu1 %vm725_vm0, %v704_v14 }
  0x46   : > { %2731 = vmatmul.msk.f32.gmra.mxu1 %vm725_vm0, %v705_v17 }
  0x4e   : > { %2732 = vmatmul.msk.f32.gmra.mxu1 %vm725_vm0, %v706_v21 }
  0x56   : > { %2733 = vmatmul.msk.f32.gmra.mxu1 %vm725_vm0, %v707_v3 }
  0x5e   : > { %2734 = vmatmul.msk.f32.gmra.mxu1 %vm725_vm0, %v708_v7 }
  0x77   : > { %v3370_v43 = vpop.permute.xlu2 %937 }
  0x78   : > { %vm978_vm1 = vcmp.eq.f32.partialorder %v3370_v43, %v3384_v54 }
  0x7f   : > { %v3379_v48 = vpop.permute.xlu2 %952 }
  0x80   : > { %vm981_vm7 = vcmp.eq.f32.partialorder %v3379_v48, %v3384_v54 }
  0x8e   : > { %v3368_v41 = vpop.permute.xlu0 %942  ;;  %v3377_v47 = vpop.permute.xlu1 %947 }
  0x8f   : > { %vm979_vm3 = vcmp.eq.f32.partialorder %v3368_v41, %v3384_v54  ;;  %vm980_vm4 = vcmp.eq.f32.partialorder %v3377_v47, %v3384_v54 }
  0x93   : > { %v767_v26 = vpop.f32.mrf.mxu0  ;;  %v785_v27 = vpop.f32.mrf.mxu1 }
  0x94   : > { %861 = vperm.xlu0 %2965, %v767_v26  }
  0x96   : > { %v3372_v44 = vpop.permute.xlu0 %957 }
  0x97   : > { %vm982_vm2 = vcmp.eq.f32.partialorder %v3372_v44, %v3384_v54 }
  0x9b   : > { %v770_v28 = vpop.f32.mrf.mxu0  ;;  %v788_v29 = vpop.f32.mrf.mxu1 }
  0x9c   : > { %896 = vperm.xlu1 %2966, %v788_v29   ;;  %891 = vperm.xlu0 %2965, %v785_v27  }
  0xa3   : > { %v773_v30 = vpop.f32.mrf.mxu0  ;;  %v834_v37 = vpop.f32.mrf.mxu1 }
  0xa4   : > { %866 = vperm.xlu0 %2965, %v770_v28   ;;  %871 = vperm.xlu1 %2966, %v773_v30   ;;  %v910_v50 = vmul.f32 2.0, %v834_v37 }
  0xab   : > { %v776_v32 = vpop.f32.mrf.mxu0  ;;  %v837_v38 = vpop.f32.mrf.mxu1 }
  0xac   : > { %972 = vperm.xlu0 %2965, %v716_v31   ;;  %876 = vperm.xlu1 %2966, %v776_v32   ;;  %v911_v1 = vmul.f32 2.0, %v837_v38 }
  0xb3   : > { %v779_v34 = vpop.f32.mrf.mxu0  ;;  %v840_v39 = vpop.f32.mrf.mxu1 }
  0xb4   : > { %962 = vperm.xlu1 %2966, %v714_v33   ;;  %881 = vperm.xlu2 %2964, %v779_v34   ;;  %v912_v2 = vmul.f32 2.0, %v840_v39  ;;  %v3408_v39 = vmov 2139095040  }
  0xbb   : > { %v782_v35 = vpop.f32.mrf.mxu0  ;;  %v843_v40 = vpop.f32.mrf.mxu1 }
  0xbc   : > { %886 = vperm.xlu2 %2964, %v782_v35   ;;  %v913_v25 = vmul.f32 2.0, %v843_v40  ;;  %v3410_v40 = vmov 2139095040  }
  0xc3   : > { %v846_v42 = vpop.f32.mrf.mxu1 }
  0xc4   : > { %967 = vperm.xlu2 %2964, %v715_v36   ;;  %v914_v60 = vmul.f32 2.0, %v846_v42  ;;  %v3412_v42 = vmov 2139095040  }
  0xcb   : > { %v849_v45 = vpop.f32.mrf.mxu1 }
  0xcc   : > { %v915_v29 = vmul.f32 2.0, %v849_v45  ;;  %v3414_v45 = vmov 2139095040  }
  0xd3   : > { %v852_v52 = vpop.f32.mrf.mxu1 }
  0xd4   : > { %v916_v8 = vmul.f32 2.0, %v852_v52  ;;  %v3424_v52 = vmov 4294967295  }
  0xdb   : > { %v855_v63 = vpop.f32.mrf.mxu1 }
  0xdc   : > { %v917_v4 = vmul.f32 2.0, %v855_v63 }
 0x106   : > { %v862_v49 = vpop.permute.xlu0 %861 }
 0x107   : > { %v902_v51 = vadd.f32 %v2968_v46, %v862_v49  ;;  %v3418_v49 = vmov 2139095040  }
 0x109   : > { %v918_v53 = vsub.f32 %v902_v51, %v910_v50  ;;  %v3420_v50 = vmov 2139095040   ;;  %v3422_v51 = vmov 2139095040  }
 0x10b   : > { %v926_v55 = vmax.f32 %v918_v53, 0.0  ;;  %v3426_v53 = vmov 4294967295  }
 0x10d   : > { %v986_v56 = vsel %vm978_vm1, %v926_v55, 1e+09  ;;  %v3430_v55 = vmov 4294967295  }
 0x10e   : > { %1002 = vst [vmem:[#allocation2 + $0x30] sm:$0xff] %v986_v56  ;;  %v897_v57 = vpop.permute.xlu1 %896  ;;  %v892_v58 = vpop.permute.xlu0 %891  ;;  %v3432_v56 = vmov 4294967295  }
 0x10f   : > { %v882_v59 = vpop.permute.xlu2 %881  ;;  %v909_v3 = vadd.f32 %v2968_v46, %v897_v57  ;;  %v908_v9 = vadd.f32 %v2968_v46, %v892_v58  ;;  %v3434_v57 = vmov 4294967295   ;;  %v3436_v58 = vmov 4294967295  }
 0x110   : > { %v906_v61 = vadd.f32 %v2968_v46, %v882_v59  ;;  %v3438_v59 = vmov 4294967295  }
 0x111   : > { %v925_v15 = vsub.f32 %v909_v3, %v917_v4  ;;  %v924_v16 = vsub.f32 %v908_v9, %v916_v8 }
 0x112   : > { %v922_v62 = vsub.f32 %v906_v61, %v914_v60 }
 0x113   : > { %v933_v21 = vmax.f32 %v925_v15, 0.0  ;;  %v932_v26 = vmax.f32 %v924_v16, 0.0 }
 0x114   : > { %v930_v0 = vmax.f32 %v922_v62, 0.0 }
 0x116   : > { %v990_v5 = vsel %vm982_vm2, %v930_v0, 1e+09  ;;  %v867_v6 = vpop.permute.xlu0 %866  ;;  %v872_v7 = vpop.permute.xlu1 %871 }
 0x117   : > { %1006 = vst [vmem:[#allocation2 + $0x8] sm:$0xff] %v990_v5  ;;  %v903_v10 = vadd.f32 %v2968_v46, %v867_v6  ;;  %v904_v11 = vadd.f32 %v2968_v46, %v872_v7  ;;  %v887_v12 = vpop.permute.xlu2 %886 }
 0x118   : > { %v907_v22 = vadd.f32 %v2968_v46, %v887_v12 }
 0x119   : > { %v919_v13 = vsub.f32 %v903_v10, %v911_v1  ;;  %v920_v14 = vsub.f32 %v904_v11, %v912_v2 }
 0x11a   : > { %v923_v33 = vsub.f32 %v907_v22, %v915_v29 }
 0x11b   : > { %v927_v17 = vmax.f32 %v919_v13, 0.0  ;;  %v928_v18 = vmax.f32 %v920_v14, 0.0 }
 0x11c   : > { %v931_v36 = vmax.f32 %v923_v33, 0.0 }
 0x11d   : > { %v987_v19 = vsel %vm979_vm3, %v927_v17, 1e+09  ;;  %v988_v20 = vsel %vm980_vm4, %v928_v18, 1e+09 }
 0x11e   : > { %1003 = vst [vmem:[#allocation2] sm:$0xff] %v987_v19  ;;  %v3394_v23 = vpop.permute.xlu0 %972  ;;  %v877_v24 = vpop.permute.xlu1 %876 }
 0x11f   : > { %1004 = vst [vmem:[#allocation2 + $0x18] sm:$0xff] %v988_v20  ;;  %vm985_vm5 = vcmp.eq.f32.partialorder %v3394_v23, %v3384_v54  ;;  %v905_v27 = vadd.f32 %v2968_v46, %v877_v24  ;;  %v3398_v28 = vpop.permute.xlu2 %967  ;;  %v3416_v46 = vmov 2139095040  }
 0x120   : > { %v993_v30 = vsel %vm985_vm5, %v933_v21, 1e+09  ;;  %vm984_vm6 = vcmp.eq.f32.partialorder %v3398_v28, %v3384_v54 }
 0x121   : > { %1009 = vst [vmem:[#allocation2 + $0x38] sm:$0xff] %v993_v30  ;;  %v921_v31 = vsub.f32 %v905_v27, %v913_v25  ;;  %v992_v32 = vsel %vm984_vm6, %v932_v26, 1e+09 }
 0x122   : > { %1008 = vst [vmem:[#allocation2 + $0x28] sm:$0xff] %v992_v32 }
 0x123   : > { %v929_v34 = vmax.f32 %v921_v31, 0.0 }
 0x125   : > { %v989_v35 = vsel %vm981_vm7, %v929_v34, 1e+09 }
 0x126   : > { %1005 = vst [vmem:[#allocation2 + $0x10] sm:$0xff] %v989_v35  ;;  %v3404_v37 = vpop.permute.xlu1 %962 }
 0x127   : > { %vm983_vm8 = vcmp.eq.f32.partialorder %v3404_v37, %v3384_v54  ;;  %v3428_v54 = vmov 4294967295  }
 0x128   : > { %v991_v38 = vsel %vm983_vm8, %v931_v36, 1e+09 }
 0x129   : > { %1007 = vst [vmem:[#allocation2 + $0x20] sm:$0xff] %v991_v38 }
 0x12a LB: >> { %v1032_v60 = vsub.s32 %v3146_v51, %v3178_v59  ;;  %v1034_v61 = vsub.s32 %v3138_v49, %v3170_v57  ;;  %v1036_v63 = vsub.s32 %v3130_v45, %v3162_v55  ;;  %v1056_v0 = vld [vmem:[#allocation2 + $0x30] sm:$0xff]  ;;  %v1058_v3 = vld [vmem:[#allocation2 + $0x18] sm:$0xff]  ;;  %v1033_v5 = vsub.s32 %v3142_v50, %v3174_v58  ;;  %v1060_v7 = vld [vmem:[#allocation2 + $0x8] sm:$0xff]  ;;  %s1015_s26 = sadd.s32 1, %s3182_s26   ;;  %s3182_s26 = sphi %s3440_s26, %s1015_s26   ;;  %v3178_v59 = vphi %v3438_v59, %v3547_v59   ;;  %v3174_v58 = vphi %v3436_v58, %v1185_v58   ;;  %v3170_v57 = vphi %v3434_v57, %v1186_v57   ;;  %v3166_v56 = vphi %v3432_v56, %v1187_v56   ;;  %v3162_v55 = vphi %v3430_v55, %v1188_v55   ;;  %v3158_v54 = vphi %v3428_v54, %v1189_v54   ;;  %v3154_v53 = vphi %v3426_v53, %v1190_v53   ;;  %v3150_v52 = vphi %v3424_v52, %v1191_v52   ;;  %v3146_v51 = vphi %v3422_v51, %v4562_v51   ;;  %v3142_v50 = vphi %v3420_v50, %v4561_v50   ;;  %v3138_v49 = vphi %v3418_v49, %v4560_v49   ;;  %v3134_v46 = vphi %v3416_v46, %v4559_v46   ;;  %v3130_v45 = vphi %v3414_v45, %v4558_v45   ;;  %v3126_v42 = vphi %v3412_v42, %v4557_v42   ;;  %v3122_v40 = vphi %v3410_v40, %v4556_v40   ;;  %v3118_v39 = vphi %v3408_v39, %v4555_v39  }
 0x12b   : >> { %v1035_v10 = vsub.s32 %v3134_v46, %v3166_v56  ;;  %v3186_v11 = vmov 0   ;;  %v1057_v13 = vld [vmem:[#allocation2] sm:$0xff]  ;;  %v1037_v20 = vsub.s32 %v3126_v42, %v3158_v54  ;;  %v1038_v36 = vsub.s32 %v3122_v40, %v3154_v53  ;;  %p3596_p4 = scmp.ge.s32.totalorder %s1015_s26, 32  }
 0x12c   : >> { %v1040_v62 = vshra.s32 %v1032_v60, 1  ;;  %v1042_v1 = vshra.s32 %v1034_v61, 1  ;;  %v1044_v4 = vshra.s32 %v1036_v63, 1  ;;  %v1041_v9 = vshra.s32 %v1033_v5, 1 }
 0x12d   : >> { %v1043_v19 = vshra.s32 %v1035_v10, 1  ;;  %v1059_v24 = vld [vmem:[#allocation2 + $0x10] sm:$0xff]  ;;  %v1045_v29 = vshra.s32 %v1037_v20, 1  ;;  %v1046_v63 = vshra.s32 %v1038_v36, 1 }
 0x12e   : >> { %v3500_v2 = vadd.s32 %v3178_v59, %v1040_v62  ;;  %v3505_v6 = vadd.s32 %v3170_v57, %v1042_v1  ;;  %v3509_v8 = vadd.s32 %v3162_v55, %v1044_v4  ;;  %v3516_v16 = vadd.s32 %v3174_v58, %v1041_v9  ;;  %v1062_v1 = vld [vmem:[#allocation2 + $0x28] sm:$0xff] }
 0x12f   : >> { %v3525_v27 = vadd.s32 %v3166_v56, %v1043_v19  ;;  %v3529_v33 = vadd.s32 %v3158_v54, %v1045_v29  ;;  %v3537_v4 = vadd.s32 %v3154_v53, %v1046_v63 }
 0x130   : >> { %vm1064_vm9 = vcmp.le.s32.totalorder %v1056_v0, %v3500_v2  ;;  %vm1066_vm10 = vcmp.le.s32.totalorder %v1058_v3, %v3505_v6  ;;  %vm1068_vm11 = vcmp.le.s32.totalorder %v1060_v7, %v3509_v8  ;;  %vm1065_vm12 = vcmp.le.s32.totalorder %v1057_v13, %v3516_v16  ;;  %v1061_v32 = vld [vmem:[#allocation2 + $0x20] sm:$0xff]  ;;  %v1063_v7 = vld [vmem:[#allocation2 + $0x38] sm:$0xff] }
 0x131   : >> { %v1072_v12 = vsel %vm1064_vm9, 1, %v3186_v11  ;;  %v1074_v15 = vsel %vm1066_vm10, 1, %v3186_v11  ;;  %v3518_v18 = vsel %vm1068_vm11, 1, %v3186_v11  ;;  %v1073_v26 = vsel %vm1065_vm12, 1, %v3186_v11 }
 0x132   : >> { %v1081_v14 = vshrl.u32 %v1072_v12, 16  ;;  %v1105_v17 = vshrl.u32 %v1074_v15, 16  ;;  %v1129_v22 = vshrl.u32 %v3518_v18, 16  ;;  %v1093_v31 = vshrl.u32 %v1073_v26, 16 }
 0x133   : >> { %vm1067_vm13 = vcmp.le.s32.totalorder %v1059_v24, %v3525_v27  ;;  %vm1069_vm14 = vcmp.le.s32.totalorder %v1061_v32, %v3529_v33  ;;  %v1039_v0 = vsub.s32 %v3118_v39, %v3150_v52  ;;  %vm1070_vm15 = vcmp.le.s32.totalorder %v1062_v1, %v3537_v4 }
 0x134   : >> { %v1083_v21 = vcvt.s32.f32 %v1081_v14  ;;  %v1107_v25 = vcvt.s32.f32 %v1105_v17  ;;  %v1131_v30 = vcvt.s32.f32 %v1129_v22  ;;  %v1075_v34 = vsel %vm1067_vm13, 1, %v3186_v11 }
 0x135   : >> { %v1117_v35 = vshrl.u32 %v1075_v34, 16  ;;  %v1095_v38 = vcvt.s32.f32 %v1093_v31  ;;  %v1077_v60 = vsel %vm1069_vm14, 1, %v3186_v11  ;;  %v1047_v5 = vshra.s32 %v1039_v0, 1 }
 0x136   : >> { %1086 = vadd.xlane.f32.xlu0 %v1083_v21  ;;  %1110 = vadd.xlane.f32.xlu1 %v1107_v25  ;;  %v1141_v62 = vshrl.u32 %v1077_v60, 16  ;;  %v1080_v10 = vand.u32 65535, %v1072_v12  ;;  %v1078_v13 = vsel %vm1070_vm15, 1, %v3186_v11  ;;  %v1092_v24 = vand.u32 65535, %v1073_v26 }
 0x137   : >> { %1134 = vadd.xlane.f32.xlu2 %v1131_v30  ;;  %v1119_v61 = vcvt.s32.f32 %v1117_v35  ;;  %v3541_v9 = vadd.s32 %v3150_v52, %v1047_v5  ;;  %v1153_v14 = vshrl.u32 %v1078_v13, 16  ;;  %v1104_v25 = vand.u32 65535, %v1074_v15 }
 0x138   : >> { %v1143_v3 = vcvt.s32.f32 %v1141_v62  ;;  %v1082_v21 = vcvt.s32.f32 %v1080_v10  ;;  %v1116_v29 = vand.u32 65535, %v1075_v34  ;;  %v1094_v30 = vcvt.s32.f32 %v1092_v24 }
 0x139   : >> { %vm1071_vm1 = vcmp.le.s32.totalorder %v1063_v7, %v3541_v9  ;;  %v1155_v19 = vcvt.s32.f32 %v1153_v14  ;;  %v1106_v31 = vcvt.s32.f32 %v1104_v25  ;;  %v1128_v12 = vand.u32 65535, %v3518_v18 }
 0x13a   : >> { %v1079_v17 = vsel %vm1071_vm1, 1, %v3186_v11  ;;  %v1118_v32 = vcvt.s32.f32 %v1116_v29  ;;  %v1140_v35 = vand.u32 65535, %v1077_v60  ;;  %v1152_v11 = vand.u32 65535, %v1078_v13 }
 0x13b   : >> { %v1165_v20 = vshrl.u32 %v1079_v17, 16  ;;  %v1130_v36 = vcvt.s32.f32 %v1128_v12  ;;  %v1164_v62 = vand.u32 65535, %v1079_v17 }
 0x13d   : >> { %v1167_v22 = vcvt.s32.f32 %v1165_v20  ;;  %v1166_v15 = vcvt.s32.f32 %v1164_v62 }
 0x13e   : >> { %1098 = vadd.xlane.f32.xlu0 %v1095_v38  ;;  %1122 = vadd.xlane.f32.xlu1 %v1119_v61  ;;  %v1142_v38 = vcvt.s32.f32 %v1140_v35  ;;  %v1154_v61 = vcvt.s32.f32 %v1152_v11 }
 0x13f   : >> { %1146 = vadd.xlane.f32.xlu2 %v1143_v3 }
 0x146   : >> { %1158 = vadd.xlane.f32.xlu0 %v1155_v19  ;;  %1170 = vadd.xlane.f32.xlu1 %v1167_v22 }
 0x147   : >> { %1084 = vadd.xlane.f32.xlu2 %v1082_v21 }
 0x14e   : >> { %1096 = vadd.xlane.f32.xlu0 %v1094_v30  ;;  %1108 = vadd.xlane.f32.xlu1 %v1106_v31 }
 0x14f   : >> { %1120 = vadd.xlane.f32.xlu2 %v1118_v32 }
 0x156   : >> { %1132 = vadd.xlane.f32.xlu0 %v1130_v36  ;;  %1144 = vadd.xlane.f32.xlu1 %v1142_v38 }
 0x157   : >> { %1156 = vadd.xlane.f32.xlu2 %v1154_v61 }
 0x15e   : >> { %1168 = vadd.xlane.f32.xlu0 %v1166_v15 }
 0x1a9   : >> { %v1087_v26 = vpop.xlane.xlu0 %1086  ;;  %v1111_v34 = vpop.xlane.xlu1 %1110 }
 0x1aa   : >> { %v1135_v63 = vpop.xlane.xlu2 %1134  ;;  %v1089_v18 = vcvt.f32.s32 %v1087_v26  ;;  %v1113_v20 = vcvt.f32.s32 %v1111_v34 }
 0x1ab   : >> { %v1137_v38 = vcvt.f32.s32 %v1135_v63 }
 0x1ac   : >> { %v1090_v10 = vshll.u32 %v1089_v18, 16  ;;  %v1114_v30 = vshll.u32 %v1113_v20, 16  ;;  %v1288_v20 = vld [vmem:[%s4521_s7 + $0x20] sm:$0xff] (%p3596_p4) }
 0x1b1   : >> { %v1099_v0 = vpop.xlane.xlu0 %1098  ;;  %v1123_v1 = vpop.xlane.xlu1 %1122 }
 0x1b2   : >> { %v1147_v3 = vpop.xlane.xlu2 %1146  ;;  %v1101_v14 = vcvt.f32.s32 %v1099_v0  ;;  %v1125_v17 = vcvt.f32.s32 %v1123_v1 }
 0x1b3   : >> { %v1149_v62 = vcvt.f32.s32 %v1147_v3 }
 0x1b4   : >> { %v1102_v24 = vshll.u32 %v1101_v14, 16  ;;  %v1126_v12 = vshll.u32 %v1125_v17, 16  ;;  %v1201_v17 = vld [vmem:[#allocation2] sm:$0xff] (%p3596_p4) }
 0x1b5   : >> { %v1150_v0 = vshll.u32 %v1149_v62, 16  ;;  %v1203_v62 = vld [vmem:[#allocation2 + $0x10] sm:$0xff] (%p3596_p4) }
 0x1b9   : >> { %v1159_v5 = vpop.xlane.xlu0 %1158  ;;  %v1171_v60 = vpop.xlane.xlu1 %1170 }
 0x1ba   : >> { %v1085_v7 = vpop.xlane.xlu2 %1084 }
 0x1bb   : >> { %v1088_v13 = vcvt.f32.s32 %v1085_v7 }
 0x1bd   : >> { %v1091_v19 = vadd.s32 %v1090_v10, %v1088_v13 }
 0x1bf   : >> { %vm1176_vm2 = vcmp.ge.s32.totalorder %v1091_v19, 40  ;;  %v1297_v19 = vld [vmem:[%s4521_s7 + $0x68] sm:$0xff] (%p3596_p4) }
 0x1c0   : >> { %v3547_v59 = vsel %vm1176_vm2, %v3178_v59, %v3500_v2   ;;  %v3551_v51 = vsel %vm1176_vm2, %v3500_v2, %v3146_v51  }
 0x1c1   : >> { %v4546_v21 = vmov %v3551_v51  ;;  %v1097_v22 = vpop.xlane.xlu0 %1096  ;;  %v1109_v29 = vpop.xlane.xlu1 %1108  ;;  %v1161_v51 = vcvt.f32.s32 %v1159_v5  ;;  %v1296_v59 = vld [vmem:[%s4521_s7 + $0x60] sm:$0xff] (%p3596_p4) }
 0x1c2   : >> { %v1100_v25 = vcvt.f32.s32 %v1097_v22  ;;  %v1121_v31 = vpop.xlane.xlu2 %1120  ;;  %v1112_v32 = vcvt.f32.s32 %v1109_v29  ;;  %v1287_v22 = vld [vmem:[%s4521_s7 + $0x18] sm:$0xff] (%p3596_p4)  ;;  %v1286_v29 = vld [vmem:[%s4521_s7 + $0x10] sm:$0xff] (%p3596_p4) }
 0x1c3   : >> { %v1124_v35 = vcvt.f32.s32 %v1121_v31  ;;  %v1162_v18 = vshll.u32 %v1161_v51, 16  ;;  %v4562_v51 = vmov %v4546_v21 }
 0x1c4   : >> { %v1103_v11 = vadd.s32 %v1102_v24, %v1100_v25  ;;  %v1115_v36 = vadd.s32 %v1114_v30, %v1112_v32  ;;  %v3687_v24 = vld [vmem:[%s4520_s6] ss:$0 sm:$0xff] (%p3596_p4)  ;;  %v1245_v25 = vmul.f32 (%p3596_p4), -10.0, %v1201_v17  ;;  %v1285_v30 = vld [vmem:[%s4521_s7 + $0x8] sm:$0xff] (%p3596_p4) }
 0x1c5   : >> { %v1127_v61 = vadd.s32 %v1126_v12, %v1124_v35  ;;  %vm1212_vm10 = vcmp.eq.f32.partialorder (%p3596_p4), %v3370_v43, %v3687_v24  ;;  %v1284_v32 = vld [vmem:[%s4521_s7] sm:$0xff] (%p3596_p4)  ;;  %v1202_v12 = vld [vmem:[#allocation2 + $0x18] sm:$0xff] (%p3596_p4)  ;;  %vm1213_vm13 = vcmp.eq.f32.partialorder (%p3596_p4), %v3368_v41, %v3687_v24  ;;  %vm1217_vm15 = vcmp.eq.f32.partialorder (%p3596_p4), %v3404_v37, %v3687_v24  ;;  %v1206_v51 = vld [vmem:[#allocation2 + $0x28] sm:$0xff] (%p3596_p4) }
 0x1c6   : >> { %vm1177_vm3 = vcmp.ge.s32.totalorder %v1103_v11, 40  ;;  %vm1178_vm4 = vcmp.ge.s32.totalorder %v1115_v36, 40  ;;  %v1254_v31 = vmul.f32 (%p3596_p4), 1.442695, %v1245_v25  ;;  %v1205_v35 = vld [vmem:[#allocation2 + $0x20] sm:$0xff] (%p3596_p4)  ;;  %v1246_v43 = vmul.f32 (%p3596_p4), -10.0, %v1202_v12 }
 0x1c7   : >> { %v1185_v58 = vsel %vm1177_vm3, %v3174_v58, %v3516_v16   ;;  %v3557_v50 = vsel %vm1177_vm3, %v3516_v16, %v3142_v50   ;;  %vm1179_vm5 = vcmp.ge.s32.totalorder %v1127_v61, 40  ;;  %v1186_v57 = vsel %vm1178_vm4, %v3170_v57, %v3505_v6  }
 0x1c8   : >> { %v4547_v2 = vmov %v3557_v50  ;;  %v3563_v49 = vsel %vm1178_vm4, %v3505_v6, %v3138_v49   ;;  %v1187_v56 = vsel %vm1179_vm5, %v3166_v56, %v3525_v27   ;;  %v3569_v46 = vsel %vm1179_vm5, %v3525_v27, %v3134_v46   ;;  %v1289_v57 = vld [vmem:[%s4521_s7 + $0x28] sm:$0xff] (%p3596_p4) }
 0x1c9   : >> { %v4548_v15 = vmov %v3563_v49  ;;  %v4549_v26 = vmov %v3569_v46  ;;  %v1133_v34 = vpop.xlane.xlu0 %1132  ;;  %v1138_v16 = vshll.u32 %v1137_v38, 16  ;;  %v1145_v63 = vpop.xlane.xlu1 %1144  ;;  %v1173_v6 = vcvt.f32.s32 %v1171_v60  ;;  %v1290_v56 = vld [vmem:[%s4521_s7 + $0x30] sm:$0xff] (%p3596_p4) }
 0x1ca   : >> { %v1136_v50 = vcvt.f32.s32 %v1133_v34  ;;  %v1157_v1 = vpop.xlane.xlu2 %1156  ;;  %v1148_v3 = vcvt.f32.s32 %v1145_v63  ;;  %v1249_v38 = vmul.f32 (%p3596_p4), -10.0, %v1205_v35  ;;  %vm1221_vm14 = vcmp.le.s32.totalorder (%p3596_p4), %v1201_v17, %v4547_v2 }
 0x1cb   : >> { %v1160_v7 = vcvt.f32.s32 %v1157_v1  ;;  %v1174_v14 = vshll.u32 %v1173_v6, 16  ;;  %vm3713_vm2 = vmand (%p3596_p4), %vm1213_vm13, %vm1221_vm14  ;;  %v1247_v41 = vmul.f32 (%p3596_p4), -10.0, %v1203_v62  ;;  %vm1214_vm4 = vcmp.eq.f32.partialorder (%p3596_p4), %v3377_v47, %v3687_v24  ;;  %v1204_v6 = vld [vmem:[#allocation2 + $0x8] sm:$0xff] (%p3596_p4) }
 0x1cc   : >> { %v1139_v5 = vadd.s32 %v1138_v16, %v1136_v50  ;;  %v1151_v10 = vadd.s32 %v1150_v0, %v1148_v3  ;;  %v4561_v50 = vmov %v4547_v2  ;;  %v1262_v61 = vmul.f32 (%p3596_p4), 1.442695, %v1249_v38  ;;  %v3737_v3 = vld [vmem:[%s4522_s8] sm:$0xff] (%p3596_p4) }
 0x1cd   : >> { %v1163_v49 = vadd.s32 %v1162_v18, %v1160_v7  ;;  %v1250_v50 = vmul.f32 (%p3596_p4), -10.0, %v1206_v51  ;;  %vm1222_vm5 = vcmp.le.s32.totalorder (%p3596_p4), %v1202_v12, %v4548_v15  ;;  %v3743_v18 = vperm.slane (%p3596_p4), %v3737_v3, 0 }
 0x1ce   : >> { %vm1180_vm6 = vcmp.ge.s32.totalorder %v1139_v5, 40  ;;  %vm1181_vm7 = vcmp.ge.s32.totalorder %v1151_v10, 40  ;;  %v3187_v5 = vmov (%p3596_p4), -1e+30   ;;  %v1258_v10 = vmul.f32 (%p3596_p4), 1.442695, %v1247_v41 }
 0x1cf   : >> { %v1188_v55 = vsel %vm1180_vm6, %v3162_v55, %v3509_v8   ;;  %v3575_v45 = vsel %vm1180_vm6, %v3509_v8, %v3130_v45   ;;  %vm1182_vm8 = vcmp.ge.s32.totalorder %v1163_v49, 40  ;;  %v1189_v54 = vsel %vm1181_vm7, %v3158_v54, %v3529_v33  }
 0x1d0   : >> { %v4550_v27 = vmov %v3575_v45  ;;  %v3581_v42 = vsel %vm1181_vm7, %v3529_v33, %v3126_v42   ;;  %v1190_v53 = vsel %vm1182_vm8, %v3154_v53, %v3537_v4   ;;  %v3587_v40 = vsel %vm1182_vm8, %v3537_v4, %v3122_v40   ;;  %v1299_v4 = vld [vmem:[%s4521_s7 + $0x78] sm:$0xff] (%p3596_p4)  ;;  %vm3755_vm8 = vmand (%p3596_p4), %vm1214_vm4, %vm1222_vm5 }
 0x1d1   : >> { %v4551_v13 = vmov %v3581_v42  ;;  %v4552_v60 = vmov %v3587_v40  ;;  %v1169_v46 = vpop.xlane.xlu0 %1168  ;;  %v4560_v49 = vmov %v4548_v15  ;;  %1301 = vmatpush.msra.mxu2 (%p3596_p4), %v1299_v4  ;;  %v1200_v53 = vld [vmem:[#allocation2 + $0x30] sm:$0xff] (%p3596_p4)  ;;  %v1291_v54 = vld [vmem:[%s4521_s7 + $0x38] sm:$0xff] (%p3596_p4)  ;;  %v1264_v0 = vmul.f32 (%p3596_p4), 1.442695, %v1250_v50 }
 0x1d2   : >> { %v1172_v8 = vcvt.f32.s32 %v1169_v46  ;;  %v4556_v40 = vmov %v4552_v60  ;;  %v4557_v42 = vmov %v4551_v13  ;;  %v4559_v46 = vmov %v4549_v26 }
 0x1d3   : > { %v1294_v40 = vld [vmem:[%s4521_s7 + $0x50] sm:$0xff] (%p3596_p4)  ;;  %v1293_v42 = vld [vmem:[%s4521_s7 + $0x48] sm:$0xff] (%p3596_p4)  ;;  %v1244_v55 = vmul.f32 (%p3596_p4), -10.0, %v1200_v53  ;;  %vm1220_vm11 = vcmp.le.s32.totalorder (%p3596_p4), %v1200_v53, %v4546_v21  ;;  %v1256_v21 = vmul.f32 (%p3596_p4), 1.442695, %v1246_v43  ;;  %vm1225_vm1 = vcmp.le.s32.totalorder (%p3596_p4), %v1205_v35, %v4551_v13 }
 0x1d4   : >> { %v1175_v45 = vadd.s32 %v1174_v14, %v1172_v8  ;;  %vm3701_vm12 = vmand (%p3596_p4), %vm1212_vm10, %vm1220_vm11  ;;  %vm1218_vm6 = vcmp.eq.f32.partialorder (%p3596_p4), %v3398_v28, %v3687_v24  ;;  %vm1226_vm7 = vcmp.le.s32.totalorder (%p3596_p4), %v1206_v51, %v4552_v60  ;;  %v1248_v28 = vmul.f32 (%p3596_p4), -10.0, %v1204_v6  ;;  %v1207_v51 = vld [vmem:[#allocation2 + $0x38] sm:$0xff] (%p3596_p4) }
 0x1d5   : > { %1014 = sbr.rel (!%p3596_p4) target bundleno = 298 (0x12a), region = 146  ;;  %v1252_v58 = vmul.f32 (%p3596_p4), 1.442695, %v1244_v55  ;;  %vm3719_vm3 = vmand (%p3596_p4), %vm1217_vm15, %vm1225_vm1  ;;  %v3748_v7 = vsel (%p3596_p4), %vm3701_vm12, 0.0, %v3187_v5  ;;  %v3781_v4 = vperm.slane (%p3596_p4), %v3737_v3, 2  ;;  %vm1215_vm10 = vcmp.eq.f32.partialorder (%p3596_p4), %v3379_v48, %v3687_v24 }
 0x1d6   : >> { %vm1183_vm9 = vcmp.ge.s32.totalorder %v1175_v45, 40  ;;  %v4558_v45 = vmov %v4550_v27  ;;  %vm1223_vm11 = vcmp.le.s32.totalorder (%p3596_p4), %v1203_v62, %v4549_v26  ;;  %v1260_v53 = vmul.f32 (%p3596_p4), 1.442695, %v1248_v28 }
 0x1d7   : >> { %v1191_v52 = vsel %vm1183_vm9, %v3150_v52, %v3541_v9   ;;  %v3593_v39 = vsel %vm1183_vm9, %v3541_v9, %v3118_v39   ;;  %v1298_v9 = vld [vmem:[%s4521_s7 + $0x70] sm:$0xff] (%p3596_p4)  ;;  %2974 = vpow2.f32 (%p3596_p4), %v1252_v58  ;;  %vm3766_vm9 = vmand (%p3596_p4), %vm1218_vm6, %vm1226_vm7  ;;  %v3778_v45 = vperm.slane (%p3596_p4), %v3737_v3, 1 }
 0x1d8   : >> { %v4553_v33 = vmov %v3593_v39  ;;  %1302 = vmatpush.msra.mxu2 (%p3596_p4), %v1298_v9  ;;  %v1292_v52 = vld [vmem:[%s4521_s7 + $0x40] sm:$0xff] (%p3596_p4)  ;;  %2976 = vpow2.f32 (%p3596_p4), %v1254_v31  ;;  %vm1216_vm13 = vcmp.eq.f32.partialorder (%p3596_p4), %v3372_v44, %v3687_v24  ;;  %vm1224_vm14 = vcmp.le.s32.totalorder (%p3596_p4), %v1204_v6, %v4550_v27 }
 0x1d9   : >> { %v4555_v39 = vmov %v4553_v33  ;;  %2978 = vpow2.f32 (%p3596_p4), %v1262_v61  ;;  %vm3837_vm15 = vmand (%p3596_p4), %vm1216_vm13, %vm1224_vm14  ;;  %v3850_v35 = vperm.slane (%p3596_p4), %v3737_v3, 7  ;;  %v1251_v16 = vmul.f32 (%p3596_p4), -10.0, %v1207_v51 }
 0x1da   : > { %1303 = vmatpush.msra.mxu2 %v1297_v19  ;;  %v1295_v39 = vld [vmem:[%s4521_s7 + $0x58] sm:$0xff]  ;;  %2980 = vpow2.f32 %v1256_v21  ;;  %v3788_v19 = vsel %vm3713_vm2, 0.0, %v3187_v5  ;;  %vm1219_vm1 = vcmp.eq.f32.partialorder %v3394_v23, %v3687_v24  ;;  %vm1890_vm5 = vcmask 261120  }
 0x1db   : > { %2982 = vpow2.f32 %v1264_v0  ;;  %v1266_v41 = vmul.f32 1.442695, %v1251_v16 }
 0x1dc   : > { %1304 = vmatpush.msra.mxu2 %v1296_v59  ;;  %2984 = vpow2.f32 %v1258_v10  ;;  %v3794_v59 = vperm.slane %v3737_v3, 4 }
 0x1dd   : > { %v2975_v11 = vpop.eup %2974  ;;  %2986 = vpow2.f32 %v1260_v53 }
 0x1de   : > { %1305 = vmatpush.msra.mxu2 %v1295_v39  ;;  %v2977_v34 = vpop.eup %2976  ;;  %v3732_v1 = vsel %vm3701_vm12, %v2975_v11, 0.0  ;;  %2988 = vpow2.f32 %v1266_v41 }
 0x1df   : > { %v3717_v63 = vpop.eup %2978  ;;  %v1343_v47 = vmul.f32 %v3743_v18, %v3732_v1  ;;  %v3764_v14 = vsel %vm3713_vm2, %v2977_v34, 0.0  ;;  %v1384_v39 = vmul.f32 %v3778_v45, %v3732_v1  ;;  %v1507_v26 = vmul.f32 %v3794_v59, %v3732_v1 }
 0x1e0   : > { %1306 = vmatpush.msra.mxu2 %v1294_v40  ;;  %v3728_v37 = vsel %vm3719_vm3, %v3717_v63, 0.0  ;;  %v2981_v15 = vpop.eup %2980  ;;  %v1344_v9 = vmul.f32 %v3743_v18, %v3764_v14  ;;  %v1425_v40 = vmul.f32 %v3781_v4, %v3732_v1  ;;  %v1385_v58 = vmul.f32 %v3778_v45, %v3764_v14 }
 0x1e1   : > { %v1351_v13 = vadd.f32 %v1343_v47, %v3748_v7  ;;  %v3760_v46 = vpop.eup %2982  ;;  %v1630_v38 = vmul.f32 %v3850_v35, %v3732_v1  ;;  %v3858_v43 = vsel %vm3755_vm8, %v2981_v15, 0.0  ;;  %v1348_v41 = vmul.f32 %v3743_v18, %v3728_v37 }
 0x1e2   : > { %1307 = vmatpush.msra.mxu2 %v1293_v42  ;;  %v3775_v8 = vsel %vm3766_vm9, %v3760_v46, 0.0  ;;  %v1352_v42 = vadd.f32 %v1344_v9, %v3788_v19  ;;  %v1433_v48 = vadd.f32 %v1425_v40, %v3748_v7  ;;  %v3808_v55 = vpop.eup %2984  ;;  %v1393_v25 = vadd.f32 %v1385_v58, %v3788_v19 }
 0x1e3   : > { %1359 = vmax.xlane.f32.xlu0 %v1351_v13  ;;  %v3835_v31 = vpop.eup %2986  ;;  %v1345_v21 = vmul.f32 %v3743_v18, %v3858_v43  ;;  %v1638_v62 = vadd.f32 %v1630_v38, %v3748_v7  ;;  %v1427_v23 = vmul.f32 %v3781_v4, %v3858_v43  ;;  %v1631_v40 = vmul.f32 %v3850_v35, %v3764_v14 }
 0x1e4   : > { %1308 = vmatpush.msra.mxu2 %v1292_v52  ;;  %v3802_v52 = vperm.slane %v3737_v3, 3  ;;  %1361 = vmax.xlane.f32.xlu2 %v1352_v42  ;;  %v2989_v6 = vpop.eup %2988  ;;  %v1509_v53 = vmul.f32 %v3794_v59, %v3858_v43  ;;  %v1390_v60 = vmul.f32 %v3778_v45, %v3775_v8 }
 0x1e5   : > { %1441 = vmax.xlane.f32.xlu1 %v1433_v48  ;;  %v1639_v48 = vadd.f32 %v1631_v40, %v3788_v19 }
 0x1e6   : > { %1309 = vmatpush.msra.mxu2 %v1291_v54  ;;  %v1392_v54 = vadd.f32 %v1384_v39, %v3748_v7  ;;  %v1467_v61 = vmul.f32 %v3802_v52, %v3764_v14 }
 0x1e8   : > { %1310 = vmatpush.msra.mxu2 %v1290_v56  ;;  %v1475_v50 = vadd.f32 %v1467_v61, %v3788_v19  ;;  %v1678_v61 = vld [vmem:[%s4523_s9] sm:$0xff] }
 0x1e9   : > { %1719 = vmatpush.msrb.mxu0 %v1678_v61  ;;  %2814 = vmatpush.msra.mxu3 %v1678_v61 }
 0x1ea   : > { %1311 = vmatpush.msra.mxu2 %v1289_v57  ;;  %v1466_v57 = vmul.f32 %v3802_v52, %v3732_v1 }
 0x1eb   : > { %1400 = vmax.xlane.f32.xlu0 %v1392_v54 }
 0x1ec   : > { %1312 = vmatpush.msra.mxu2 %v1288_v20  ;;  %v1515_v20 = vadd.f32 %v1507_v26, %v3748_v7  ;;  %v1474_v17 = vadd.f32 %v1466_v57, %v3748_v7 }
 0x1ee   : > { %1313 = vmatpush.msra.mxu2 %v1287_v22  ;;  %v3827_v22 = vperm.slane %v3737_v3, 5  ;;  %1523 = vmax.xlane.f32.xlu2 %v1515_v20 }
 0x1ef   : > { %1482 = vmax.xlane.f32.xlu1 %v1474_v17 }
 0x1f0   : > { %1314 = vmatpush.msra.mxu2 %v1286_v29  ;;  %v3831_v29 = vperm.slane %v3737_v3, 6  ;;  %v1548_v27 = vmul.f32 %v3827_v22, %v3732_v1  ;;  %v1549_v3 = vmul.f32 %v3827_v22, %v3764_v14 }
 0x1f2   : > { %1315 = vmatpush.msra.mxu2 %v1285_v30  ;;  %v1426_v30 = vmul.f32 %v3781_v4, %v3764_v14  ;;  %v1590_v49 = vmul.f32 %v3831_v29, %v3764_v14  ;;  %v1591_v17 = vmul.f32 %v3831_v29, %v3858_v43  ;;  %v1594_v61 = vmul.f32 %v3831_v29, %v3728_v37 }
 0x1f3   : > { %1402 = vmax.xlane.f32.xlu0 %v1393_v25  ;;  %v1632_v25 = vmul.f32 %v3850_v35, %v3858_v43 }
 0x1f4   : > { %1316 = vmatpush.msra.mxu2 %v1284_v32  ;;  %v1589_v32 = vmul.f32 %v3831_v29, %v3732_v1  ;;  %v1434_v12 = vadd.f32 %v1426_v30, %v3788_v19  ;;  %v1508_v1 = vmul.f32 %v3794_v59, %v3764_v14  ;;  %v1598_v24 = vadd.f32 %v1590_v49, %v3788_v19 }
 0x1f5   : > { %2735 = vmatmul.msk.f32.vlgmr.msra.gmra.mxu2 %vm3701_vm12, %v2975_v11  ;;  %vm3810_vm12 = vmand %vm1215_vm10, %vm1223_vm11  ;;  %v1556_v11 = vadd.f32 %v1548_v27, %v3748_v7 }
 0x1f6   : > { %v1597_v36 = vadd.f32 %v1589_v32, %v3748_v7  ;;  %1443 = vmax.xlane.f32.xlu2 %v1434_v12  ;;  %v1516_v10 = vadd.f32 %v1508_v1, %v3788_v19  ;;  %v3906_v28 = vsel %vm3810_vm12, %v3808_v55, 0.0  ;;  %v1279_v42 = vsel %vm3810_vm12, 0.0, %v3187_v5 }
 0x1f7   : > { %1564 = vmax.xlane.f32.xlu1 %v1556_v11  ;;  %v1346_v39 = vmul.f32 %v3743_v18, %v3906_v28  ;;  %v1387_v14 = vmul.f32 %v3778_v45, %v3906_v28  ;;  %v1428_v56 = vmul.f32 %v3781_v4, %v3906_v28  ;;  %v1272_v12 = vsel %vm3837_vm15, %v3835_v31, 0.0 }
 0x1f8   : > { %v1388_v11 = vmul.f32 %v3778_v45, %v1272_v12  ;;  %v1633_v2 = vmul.f32 %v3850_v35, %v3906_v28  ;;  %v1511_v49 = vmul.f32 %v3794_v59, %v1272_v12 }
 0x1f9   : > { %v1354_v54 = vadd.f32 %v1346_v39, %v1279_v42  ;;  %v1395_v58 = vadd.f32 %v1387_v14, %v1279_v42  ;;  %v1436_v20 = vadd.f32 %v1428_v56, %v1279_v42  ;;  %v1282_v56 = vsel %vm3766_vm9, 0.0, %v3187_v5 }
 0x1fb   : > { %1605 = vmax.xlane.f32.xlu0 %v1597_v36  ;;  %v1280_v36 = vsel %vm3837_vm15, 0.0, %v3187_v5 }
 0x1fc   : > { %v1396_v38 = vadd.f32 %v1388_v11, %v1280_v36 }
 0x1fd   : > { %2736 = vmatmul.msk.f32.gmra.mxu2 %vm3713_vm2, %v2977_v34  ;;  %v1278_v34 = vsel %vm3755_vm8, 0.0, %v3187_v5  ;;  %vm1227_vm2 = vcmp.le.s32.totalorder %v1207_v51, %v4553_v33  ;;  %v1468_v33 = vmul.f32 %v3802_v52, %v3858_v43 }
 0x1fe   : > { %v1353_v0 = vadd.f32 %v1345_v21, %v1278_v34  ;;  %1646 = vmax.xlane.f32.xlu2 %v1638_v62  ;;  %vm3885_vm4 = vmand %vm1219_vm1, %vm1227_vm2  ;;  %v1517_v26 = vadd.f32 %v1509_v53, %v1278_v34  ;;  %v1599_v27 = vadd.f32 %v1591_v17, %v1278_v34  ;;  %v1640_v32 = vadd.f32 %v1632_v25, %v1278_v34 }
 0x1ff   : > { %1484 = vmax.xlane.f32.xlu1 %v1475_v50  ;;  %v3894_v13 = vsel %vm3885_vm4, %v2989_v6, 0.0  ;;  %v1476_v9 = vadd.f32 %v1468_v33, %v1278_v34  ;;  %v1510_v62 = vmul.f32 %v3794_v59, %v3906_v28  ;;  %v3950_v50 = vsel %vm3719_vm3, 0.0, %v3187_v5 }
 0x200   : > { %v1471_v33 = vmul.f32 %v3802_v52, %v3728_v37  ;;  %v1512_v53 = vmul.f32 %v3794_v59, %v3728_v37  ;;  %v1349_v17 = vmul.f32 %v3743_v18, %v3775_v8 }
 0x201   : > { %v1518_v51 = vadd.f32 %v1510_v62, %v1279_v42  ;;  %v1602_v62 = vadd.f32 %v1594_v61, %v3950_v50 }
 0x203   : > { %1363 = vmax.xlane.f32.xlu0 %v1353_v0  ;;  %v1429_v0 = vmul.f32 %v3781_v4, %v1272_v12 }
 0x205   : > { %2737 = vmatmul.msk.f32.gmra.mxu2 %vm3755_vm8, %v2981_v15  ;;  %v1557_v15 = vadd.f32 %v1549_v3, %v3788_v19  ;;  %v1469_v19 = vmul.f32 %v3802_v52, %v3906_v28  ;;  %v1437_v1 = vadd.f32 %v1429_v0, %v1280_v36  ;;  %v1470_v3 = vmul.f32 %v3802_v52, %v1272_v12 }
 0x207   : > { %1525 = vmax.xlane.f32.xlu1 %v1516_v10  ;;  %v1477_v30 = vadd.f32 %v1469_v19, %v1279_v42  ;;  %v1552_v10 = vmul.f32 %v3827_v22, %v1272_v12  ;;  %v1431_v19 = vmul.f32 %v3781_v4, %v3775_v8 }
 0x209   : > { %v1439_v25 = vadd.f32 %v1431_v19, %v1282_v56 }
 0x20b   : > { %1566 = vmax.xlane.f32.xlu0 %v1557_v15  ;;  %v1641_v15 = vadd.f32 %v1633_v2, %v1279_v42 }
 0x20d   : > { %2738 = vmatmul.msk.f32.gmra.mxu2 %vm3810_vm12, %v3808_v55  ;;  %v1550_v55 = vmul.f32 %v3827_v22, %v3858_v43 }
 0x20f   : > { %v1558_v57 = vadd.f32 %v1550_v55, %v1278_v34  ;;  %v1634_v55 = vmul.f32 %v3850_v35, %v1272_v12 }
 0x211   : > { %v1642_v14 = vadd.f32 %v1634_v55, %v1280_v36 }
 0x213   : > { %1486 = vmax.xlane.f32.xlu0 %v1476_v9 }
 0x215   : > { %2739 = vmatmul.msk.f32.gmra.mxu2 %vm3837_vm15, %v3835_v31  ;;  %v1592_v31 = vmul.f32 %v3831_v29, %v3906_v28 }
 0x217   : > { %v1600_v44 = vadd.f32 %v1592_v31, %v1279_v42 }
 0x21b   : > { %1527 = vmax.xlane.f32.xlu0 %v1517_v26 }
 0x21d   : > { %2740 = vmatmul.msk.f32.gmra.mxu2 %vm3719_vm3, %v3717_v63  ;;  %v1386_v63 = vmul.f32 %v3778_v45, %v3858_v43  ;;  %v1347_v43 = vmul.f32 %v3743_v18, %v1272_v12  ;;  %vm1679_vm3 = vcmask 64512  }
 0x21f   : > { %v1394_v7 = vadd.f32 %v1386_v63, %v1278_v34  ;;  %v1355_v21 = vadd.f32 %v1347_v43, %v1280_v36  ;;  %v1356_v63 = vadd.f32 %v1348_v41, %v3950_v50  ;;  %v1553_v43 = vmul.f32 %v3827_v22, %v3728_v37 }
 0x221   : > { %1404 = vmax.xlane.f32.xlu2 %v1394_v7  ;;  %v1478_v7 = vadd.f32 %v1470_v3, %v1280_v36  ;;  %v1561_v31 = vadd.f32 %v1553_v43, %v3950_v50  ;;  %v1555_v43 = vmul.f32 %v3827_v22, %v3894_v13 }
 0x223   : > { %1447 = vmax.xlane.f32.xlu0 %v1436_v20 }
 0x225   : > { %2741 = vmatmul.msk.f32.gmra.mxu2 %vm3766_vm9, %v3760_v46  ;;  %v1435_v46 = vadd.f32 %v1427_v23, %v1278_v34  ;;  %v1551_v34 = vmul.f32 %v3827_v22, %v3906_v28  ;;  %v1519_v23 = vadd.f32 %v1511_v49, %v1280_v36  ;;  %v1430_v28 = vmul.f32 %v3781_v4, %v3728_v37 }
 0x227   : > { %1445 = vmax.xlane.f32.xlu1 %v1435_v46  ;;  %v1559_v16 = vadd.f32 %v1551_v34, %v1279_v42  ;;  %v1479_v46 = vadd.f32 %v1471_v33, %v3950_v50  ;;  %v1438_v39 = vadd.f32 %v1430_v28, %v3950_v50  ;;  %v1472_v34 = vmul.f32 %v3802_v52, %v3775_v8 }
 0x228   : > { %v1432_v28 = vmul.f32 %v3781_v4, %v3894_v13 }
 0x229   : > { %1607 = vmax.xlane.f32.xlu2 %v1598_v24  ;;  %v1389_v24 = vmul.f32 %v3778_v45, %v3728_v37  ;;  %v1480_v47 = vadd.f32 %v1472_v34, %v1282_v56 }
 0x22b   : > { %1650 = vmax.xlane.f32.xlu0 %v1640_v32  ;;  %v1397_v9 = vadd.f32 %v1389_v24, %v3950_v50 }
 0x22d   : > { %2742 = vmatmul.msk.f32.gmra.mxu2 %vm3885_vm4, %v2989_v6  ;;  %v1560_v6 = vadd.f32 %v1552_v10, %v1280_v36 }
 0x22f   : > { %1648 = vmax.xlane.f32.xlu1 %v1639_v48  ;;  %v1520_v48 = vadd.f32 %v1512_v53, %v3950_v50 }
 0x231   : > { %1365 = vmax.xlane.f32.xlu2 %v1354_v54  ;;  %v1593_v54 = vmul.f32 %v3831_v29, %v1272_v12 }
 0x233   : > { %1408 = vmax.xlane.f32.xlu0 %v1396_v38  ;;  %v1601_v26 = vadd.f32 %v1593_v54, %v1280_v36  ;;  %v1635_v38 = vmul.f32 %v3850_v35, %v3728_v37  ;;  %v1595_v37 = vmul.f32 %v3831_v29, %v3775_v8 }
 0x237   : > { %1406 = vmax.xlane.f32.xlu1 %v1395_v58 }
 0x239   : > { %1568 = vmax.xlane.f32.xlu2 %v1558_v57 }
 0x23b   : > { %1611 = vmax.xlane.f32.xlu0 %v1600_v44  ;;  %v4011_v44 = vsel %vm3885_vm4, 0.0, %v3187_v5  ;;  %v1636_v5 = vmul.f32 %v3850_v35, %v3775_v8 }
 0x23c   : > { %v1563_v61 = vadd.f32 %v1555_v43, %v4011_v44 }
 0x23d   : > { %v1644_v3 = vadd.f32 %v1636_v5, %v1282_v56 }
 0x23f   : > { %1609 = vmax.xlane.f32.xlu1 %v1599_v27  ;;  %v1398_v27 = vadd.f32 %v1390_v60, %v1282_v56 }
 0x241   : > { %1488 = vmax.xlane.f32.xlu2 %v1477_v30  ;;  %v1357_v30 = vadd.f32 %v1349_v17, %v1282_v56 }
 0x243   : > { %1369 = vmax.xlane.f32.xlu0 %v1356_v63 }
 0x247   : > { %1367 = vmax.xlane.f32.xlu1 %v1355_v21  ;;  %v1643_v21 = vadd.f32 %v1635_v38, %v3950_v50  ;;  %v1554_v50 = vmul.f32 %v3827_v22, %v3775_v8  ;;  %v1637_v22 = vmul.f32 %v3850_v35, %v3894_v13 }
 0x249   : > { %1529 = vmax.xlane.f32.xlu2 %v1518_v51  ;;  %v1391_v51 = vmul.f32 %v3778_v45, %v3894_v13  ;;  %v1603_v45 = vadd.f32 %v1595_v37, %v1282_v56 }
 0x24b   : > { %1572 = vmax.xlane.f32.xlu0 %v1560_v6  ;;  %v1399_v2 = vadd.f32 %v1391_v51, %v4011_v44  ;;  %v1596_v51 = vmul.f32 %v3831_v29, %v3894_v13 }
 0x24d   : > { %v1604_v37 = vadd.f32 %v1596_v51, %v4011_v44  ;;  %v1671_v51 = vld [vmem:[%s3313_s30 + $0x8] sm:$0xff] }
 0x24f   : > { %1570 = vmax.xlane.f32.xlu1 %v1559_v16  ;;  %v1513_v16 = vmul.f32 %v3794_v59, %v3775_v8  ;;  %v1350_v8 = vmul.f32 %v3743_v18, %v3894_v13 }
 0x251   : > { %1449 = vmax.xlane.f32.xlu2 %v1437_v1  ;;  %v1521_v63 = vadd.f32 %v1513_v16, %v1282_v56  ;;  %v1562_v1 = vadd.f32 %v1554_v50, %v1282_v56  ;;  %v1358_v6 = vadd.f32 %v1350_v8, %v4011_v44 }
 0x253   : > { %1492 = vmax.xlane.f32.xlu0 %v1479_v46 }
 0x256   : > { %v3970_v42 = vpop.xlane.xlu0 %1359 }
 0x257   : > { %1490 = vmax.xlane.f32.xlu1 %v1478_v7  ;;  %v3995_v11 = vpop.xlane.xlu2 %1361 }
 0x258   : > { %v3984_v20 = vpop.xlane.xlu1 %1441 }
 0x259   : > { %1652 = vmax.xlane.f32.xlu2 %v1641_v15 }
 0x25b   : > { %1533 = vmax.xlane.f32.xlu0 %v1520_v48 }
 0x25e   : > { %v3981_v58 = vpop.xlane.xlu0 %1400 }
 0x25f   : > { %1531 = vmax.xlane.f32.xlu1 %v1519_v23 }
 0x261   : > { %1410 = vmax.xlane.f32.xlu2 %v1397_v9  ;;  %v4028_v7 = vpop.xlane.xlu2 %1523 }
 0x262   : > { %v3997_v36 = vpop.xlane.xlu1 %1482 }
 0x263   : > { %1453 = vmax.xlane.f32.xlu0 %v1439_v25 }
 0x266   : > { %v3992_v12 = vpop.xlane.xlu0 %1402 }
 0x267   : > { %1451 = vmax.xlane.f32.xlu1 %v1438_v39  ;;  %v1440_v39 = vadd.f32 %v1432_v28, %v4011_v44 }
 0x269   : > { %1613 = vmax.xlane.f32.xlu2 %v1601_v26  ;;  %v4039_v23 = vpop.xlane.xlu2 %1443  ;;  %v1473_v26 = vmul.f32 %v3802_v52, %v3894_v13 }
 0x26a   : > { %v4030_v10 = vpop.xlane.xlu1 %1564 }
 0x26b   : > { %1656 = vmax.xlane.f32.xlu0 %v1643_v21  ;;  %v1481_v4 = vadd.f32 %v1473_v26, %v4011_v44  ;;  %v1514_v21 = vmul.f32 %v3794_v59, %v3894_v13  ;;  %v1645_v59 = vadd.f32 %v1637_v22, %v4011_v44 }
 0x26e   : > { %v4025_v0 = vpop.xlane.xlu0 %1605 }
 0x26f   : > { %1654 = vmax.xlane.f32.xlu1 %v1642_v14 }
 0x271   : > { %1371 = vmax.xlane.f32.xlu2 %v1357_v30  ;;  %v4046_v18 = vpop.xlane.xlu2 %1646 }
 0x272   : > { %v4041_v33 = vpop.xlane.xlu1 %1484 }
 0x273   : > { %1414 = vmax.xlane.f32.xlu0 %v1399_v2 }
 0x276   : > { %v4036_v49 = vpop.xlane.xlu0 %1363 }
 0x277   : > { %1412 = vmax.xlane.f32.xlu1 %v1398_v27 }
 0x278   : > { %v1318_v40 = vpop.f32.mrf.mxu2 }
 0x279   : > { %2743 = vmatmul.msk.f32.vlgmr.msrb.gmra.mxu0 %vm1679_vm3, %v1318_v40  ;;  %1574 = vmax.xlane.f32.xlu2 %v1561_v31 }
 0x27a   : > { %v4048_v9 = vpop.xlane.xlu1 %1525 }
 0x27b   : > { %1617 = vmax.xlane.f32.xlu0 %v1603_v45 }
 0x27e   : > { %v4043_v46 = vpop.xlane.xlu0 %1566 }
 0x27f   : > { %1615 = vmax.xlane.f32.xlu1 %v1602_v62  ;;  %v1522_v62 = vadd.f32 %v1514_v21, %v4011_v44  ;;  %v1375_v44 = vmax.f32 %v3970_v42, -1e+30  ;;  %v1498_v42 = vmax.f32 %v3997_v36, -1e+30 }
 0x280   : > { %v1321_v57 = vpop.f32.mrf.mxu2 }
 0x281   : > { %2744 = vmatmul.msk.f32.gmra.mxu0 %vm1679_vm3, %v1321_v57  ;;  %1494 = vmax.xlane.f32.xlu2 %v1480_v47 }
 0x283   : > { %1658 = vmax.xlane.f32.xlu0 %v1644_v3  ;;  %v1416_v3 = vmax.f32 %v3981_v58, -1e+30  ;;  %v1376_v58 = vmax.f32 %v3995_v11, -1e+30  ;;  %v1580_v11 = vmax.f32 %v4030_v10, -1e+30 }
 0x284   : > { %v1499_v10 = vmax.f32 %v4041_v33, -1e+30 }
 0x286   : > { %v4053_v53 = vpop.xlane.xlu0 %1486 }
 0x287   : > { %1373 = vmax.xlane.f32.xlu1 %v1358_v6 }
 0x288   : > { %v1324_v32 = vpop.f32.mrf.mxu2 }
 0x289   : > { %2745 = vmatmul.msk.f32.gmra.mxu0 %vm1679_vm3, %v1324_v32  ;;  %1535 = vmax.xlane.f32.xlu2 %v1521_v63  ;;  %v1670_v63 = vld [vmem:[%s3313_s30] sm:$0xff] }
 0x28b   : > { %1619 = vmax.xlane.f32.xlu0 %v1604_v37 }
 0x28e   : > { %v4062_v55 = vpop.xlane.xlu0 %1527 }
 0x28f   : > { %1576 = vmax.xlane.f32.xlu1 %v1562_v1 }
 0x290   : > { %v1327_v41 = vpop.f32.mrf.mxu2 }
 0x291   : > { %2746 = vmatmul.msk.f32.gmra.mxu0 %vm1679_vm3, %v1327_v41  ;;  %1455 = vmax.xlane.f32.xlu2 %v1440_v39  ;;  %v1753_v41 = vld [vmem:[%s4524_s10] sm:$0xff] }
 0x292   : > { %v4121_v13 = vperm.slane %v1753_v41, 0  ;;  %v4125_v1 = vperm.slane %v1753_v41, 1  ;;  %v4142_v43 = vperm.slane %v1753_v41, 4  ;;  %v4150_v36 = vperm.slane %v1753_v41, 5 }
 0x294   : > { %v4056_v54 = vpop.xlane.xlu2 %1404  ;;  %v1755_v6 = vmul.f32 %v4121_v13, %v1375_v44  ;;  %v1772_v39 = vmul.f32 %v4125_v1, %v1416_v3  ;;  %v4154_v44 = vperm.slane %v1753_v41, 6 }
 0x296   : > { %v4070_v19 = vpop.xlane.xlu0 %1447 }
 0x297   : > { %1537 = vmax.xlane.f32.xlu1 %v1522_v62  ;;  %v1417_v62 = vmax.f32 %v3992_v12, -1e+30 }
 0x298   : > { %v1330_v15 = vpop.f32.mrf.mxu2 }
 0x299   : > { %2747 = vmatmul.msk.f32.gmra.mxu0 %vm1679_vm3, %v1330_v15  ;;  %1496 = vmax.xlane.f32.xlu2 %v1481_v4  ;;  %v4131_v15 = vperm.slane %v1753_v41, 2 }
 0x29a   : > { %v4058_v48 = vpop.xlane.xlu1 %1445 }
 0x29c   : > { %v4066_v56 = vpop.xlane.xlu2 %1607 }
 0x29e   : > { %v4076_v30 = vpop.xlane.xlu0 %1650 }
 0x2a0   : > { %v1333_v24 = vpop.f32.mrf.mxu2 }
 0x2a1   : > { %2748 = vmatmul.msk.f32.vlgmr.msra.gmra.mxu3 %vm1679_vm3, %v1333_v24  ;;  %1578 = vmax.xlane.f32.xlu2 %v1563_v61  ;;  %v1457_v24 = vmax.f32 %v3984_v20, -1e+30  ;;  %v1539_v61 = vmax.f32 %v4028_v7, -1e+30 }
 0x2a2   : > { %v4068_v57 = vpop.xlane.xlu1 %1648 }
 0x2a3   : > { %v1789_v4 = vmul.f32 %v4131_v15, %v1457_v24  ;;  %v1823_v3 = vmul.f32 %v4142_v43, %v1539_v61  ;;  %v1773_v24 = vmul.f32 %v4125_v1, %v1417_v62 }
 0x2a4   : > { %v4072_v17 = vpop.xlane.xlu2 %1365 }
 0x2a6   : > { %v4082_v27 = vpop.xlane.xlu0 %1408 }
 0x2a8   : > { %v1336_v40 = vpop.f32.mrf.mxu2 }
 0x2a9   : > { %2749 = vmatmul.msk.f32.gmra.mxu3 %vm1679_vm3, %v1336_v40  ;;  %1660 = vmax.xlane.f32.xlu2 %v1645_v59  ;;  %v4135_v40 = vperm.slane %v1753_v41, 3  ;;  %v1756_v59 = vmul.f32 %v4121_v13, %v1376_v58 }
 0x2aa   : > { %v4074_v25 = vpop.xlane.xlu1 %1406 }
 0x2ab   : > { %v1806_v37 = vmul.f32 %v4135_v40, %v1498_v42 }
 0x2ac   : > { %v4078_v52 = vpop.xlane.xlu2 %1568 }
 0x2ae   : > { %v4093_v31 = vpop.xlane.xlu0 %1611 }
 0x2b0   : > { %v1339_v14 = vpop.f32.mrf.mxu2 }
 0x2b1   : > { %2750 = vmatmul.msk.f32.gmra.mxu3 %vm1679_vm3, %v1339_v14 }
 0x2b2   : > { %v4080_v60 = vpop.xlane.xlu1 %1609 }
 0x2b4   : > { %v4084_v32 = vpop.xlane.xlu2 %1488 }
 0x2b6   : > { %v4106_v50 = vpop.xlane.xlu0 %1369 }
 0x2ba   : > { %v4086_v38 = vpop.xlane.xlu1 %1367 }
 0x2bc   : > { %v4098_v34 = vpop.xlane.xlu2 %1529 }
 0x2be   : > { %v4112_v29 = vpop.xlane.xlu0 %1572 }
 0x2c2   : > { %v4103_v16 = vpop.xlane.xlu1 %1570 }
 0x2c4   : > { %v4108_v5 = vpop.xlane.xlu2 %1449 }
 0x2c6   : > { %v4128_v8 = vpop.xlane.xlu0 %1492 }
 0x2ca   : > { %v4110_v47 = vpop.xlane.xlu1 %1490 }
 0x2cc   : > { %v4117_v45 = vpop.xlane.xlu2 %1652 }
 0x2ce   : > { %v4164_v42 = vpop.xlane.xlu0 %1533 }
 0x2d2   : > { %v4119_v35 = vpop.xlane.xlu1 %1531 }
 0x2d4   : > { %v4139_v14 = vpop.xlane.xlu2 %1410 }
 0x2da   : > { %v4145_v20 = vpop.xlane.xlu1 %1451 }
 0x2f6   : > { %v1721_v2 = vpop.f32.mrf.mxu0 }
 0x2f7   : > { %v1745_v28 = vadd.f32 %v1721_v2, %v1670_v63  ;;  %v1621_v63 = vmax.f32 %v4025_v0, -1e+30  ;;  %v1458_v2 = vmax.f32 %v4039_v23, -1e+30  ;;  %v1840_v0 = vmul.f32 %v4150_v36, %v1580_v11  ;;  %v1672_v11 = vld [vmem:[%s3313_s30 + $0x10] sm:$0xff] }
 0x2f8   : > { %v1540_v23 = vmax.f32 %v4048_v9, -1e+30  ;;  %v1500_v9 = vmax.f32 %v4053_v53, -1e+30 }
 0x2f9   : > { %v1763_v26 = vadd.f32 %v1755_v6, %v1745_v28  ;;  %v1377_v28 = vmax.f32 %v4036_v49, -1e+30  ;;  %v1857_v61 = vmul.f32 %v4154_v44, %v1621_v63 }
 0x2fb   : > { %v1780_v21 = vadd.f32 %v1772_v39, %v1763_v26  ;;  %v4162_v39 = vperm.slane %v1753_v41, 7  ;;  %v1662_v26 = vmax.f32 %v4046_v18, -1e+30  ;;  %v1757_v33 = vmul.f32 %v4121_v13, %v1377_v28  ;;  %v4176_v18 = vpop.xlane.xlu2 %1613 }
 0x2fc   : > { %v1807_v41 = vmul.f32 %v4135_v40, %v1499_v10 }
 0x2fd   : > { %v1797_v22 = vadd.f32 %v1789_v4, %v1780_v21  ;;  %v1790_v21 = vmul.f32 %v4131_v15, %v1458_v2  ;;  %v1459_v2 = vmax.f32 %v4058_v48, -1e+30 }
 0x2fe   : > { %v1724_v7 = vpop.f32.mrf.mxu0 }
 0x2ff   : > { %v1814_v12 = vadd.f32 %v1806_v37, %v1797_v22  ;;  %v1746_v6 = vadd.f32 %v1724_v7, %v1671_v51  ;;  %v1581_v51 = vmax.f32 %v4043_v46, -1e+30  ;;  %v1418_v37 = vmax.f32 %v4056_v54, -1e+30  ;;  %v4180_v7 = vpop.xlane.xlu1 %1654 }
 0x300   : > { %v1874_v22 = vmul.f32 %v4162_v39, %v1662_v26  ;;  %v1663_v54 = vmax.f32 %v4068_v57, -1e+30  ;;  %v1378_v26 = vmax.f32 %v4072_v17, -1e+30  ;;  %v1808_v57 = vmul.f32 %v4135_v40, %v1500_v9 }
 0x301   : > { %v1764_v58 = vadd.f32 %v1756_v59, %v1746_v6  ;;  %v1831_v4 = vadd.f32 %v1823_v3, %v1814_v12  ;;  %v1824_v3 = vmul.f32 %v4142_v43, %v1540_v23  ;;  %v1622_v12 = vmax.f32 %v4066_v56, -1e+30 }
 0x302   : > { %v1841_v53 = vmul.f32 %v4150_v36, %v1581_v51  ;;  %v1774_v10 = vmul.f32 %v4125_v1, %v1418_v37  ;;  %v1419_v23 = vmax.f32 %v4074_v25, -1e+30  ;;  %v1875_v17 = vmul.f32 %v4162_v39, %v1663_v54  ;;  %v1673_v51 = vld [vmem:[%s3313_s30 + $0x18] sm:$0xff] }
 0x303   : > { %v1781_v49 = vadd.f32 %v1773_v24, %v1764_v58  ;;  %v1848_v62 = vadd.f32 %v1840_v0, %v1831_v4  ;;  %v1541_v0 = vmax.f32 %v4062_v55, -1e+30  ;;  %v1791_v4 = vmul.f32 %v4131_v15, %v1459_v2 }
 0x304   : > { %v1858_v55 = vmul.f32 %v4154_v44, %v1622_v12  ;;  %v1758_v25 = vmul.f32 %v4121_v13, %v1378_v26  ;;  %v1664_v9 = vmax.f32 %v4076_v30, -1e+30  ;;  %v1379_v30 = vmax.f32 %v4086_v38, -1e+30 }
 0x305   : > { %v1798_v59 = vadd.f32 %v1790_v21, %v1781_v49  ;;  %v1865_v63 = vadd.f32 %v1857_v61, %v1848_v62  ;;  %v1582_v61 = vmax.f32 %v4078_v52, -1e+30  ;;  %v4198_v21 = vpop.xlane.xlu0 %1453  ;;  %v1825_v37 = vmul.f32 %v4142_v43, %v1541_v0 }
 0x306   : > { %v1727_v46 = vpop.f32.mrf.mxu0  ;;  %v1420_v0 = vmax.f32 %v4082_v27, -1e+30  ;;  %v1583_v26 = vmax.f32 %v4103_v16, -1e+30  ;;  %v1624_v38 = vmax.f32 %v4093_v31, -1e+30 }
 0x307   : > { %v1815_v6 = vadd.f32 %v1807_v41, %v1798_v59  ;;  %v1747_v24 = vadd.f32 %v1727_v46, %v1672_v11  ;;  %v4186_v28 = vadd.f32 %v1874_v22, %v1865_v63  ;;  %v1623_v41 = vmax.f32 %v4080_v60, -1e+30  ;;  %v4215_v46 = vpop.xlane.xlu1 %1412 }
 0x308   : > { %v1775_v22 = vmul.f32 %v4125_v1, %v1419_v23  ;;  %v1842_v59 = vmul.f32 %v4150_v36, %v1582_v61  ;;  %v1759_v61 = vmul.f32 %v4121_v13, %v1379_v30  ;;  %v1665_v31 = vmax.f32 %v4117_v45, -1e+30 }
 0x309   : > { %v1765_v48 = vadd.f32 %v1757_v33, %v1747_v24  ;;  %v1891_v56 = vsel %vm1890_vm5, %v4186_v28, 0.0  ;;  %v1832_v58 = vadd.f32 %v1824_v3, %v1815_v6  ;;  %v1460_v33 = vmax.f32 %v4070_v19, -1e+30  ;;  %v4210_v3 = vpop.xlane.xlu2 %1371 }
 0x30a   : > { %1892 = vadd.xlane.f32.xlu1 %v1891_v56  ;;  %v1501_v19 = vmax.f32 %v4084_v32, -1e+30  ;;  %v1859_v6 = vmul.f32 %v4154_v44, %v1623_v41  ;;  %v1542_v24 = vmax.f32 %v4098_v34, -1e+30  ;;  %v1461_v34 = vmax.f32 %v4108_v5, -1e+30 }
 0x30b   : > { %v1782_v49 = vadd.f32 %v1774_v10, %v1765_v48  ;;  %v1849_v62 = vadd.f32 %v1841_v53, %v1832_v58  ;;  %v1792_v54 = vmul.f32 %v4131_v15, %v1460_v33  ;;  %v1876_v48 = vmul.f32 %v4162_v39, %v1664_v9 }
 0x30c   : > { %v1809_v56 = vmul.f32 %v4135_v40, %v1501_v19  ;;  %v1826_v27 = vmul.f32 %v4142_v43, %v1542_v24  ;;  %v1877_v19 = vmul.f32 %v4162_v39, %v1665_v31  ;;  %v1380_v24 = vmax.f32 %v4106_v50, -1e+30  ;;  %v1675_v50 = vld [vmem:[%s3313_s30 + $0x28] sm:$0xff] }
 0x30d   : > { %v1799_v11 = vadd.f32 %v1791_v4, %v1782_v49  ;;  %v1866_v52 = vadd.f32 %v1858_v55, %v1849_v62  ;;  %v1674_v4 = vld [vmem:[%s3313_s30 + $0x20] sm:$0xff]  ;;  %v4230_v23 = vpop.xlane.xlu0 %1656  ;;  %v1843_v49 = vmul.f32 %v4150_v36, %v1583_v26  ;;  %v1502_v62 = vmax.f32 %v4110_v47, -1e+30 }
 0x30e   : > { %v1730_v63 = vpop.f32.mrf.mxu0  ;;  %v1421_v26 = vmax.f32 %v4139_v14, -1e+30  ;;  %v1503_v14 = vmax.f32 %v4128_v8, -1e+30  ;;  %v1422_v31 = vmax.f32 %v4215_v46, -1e+30 }
 0x30f   : > { %v1816_v2 = vadd.f32 %v1808_v57, %v1799_v11  ;;  %v1748_v60 = vadd.f32 %v1730_v63, %v1673_v51  ;;  %v4213_v12 = vadd.f32 %v1875_v17, %v1866_v52  ;;  %v1776_v17 = vmul.f32 %v4125_v1, %v1420_v0  ;;  %v4245_v47 = vpop.xlane.xlu1 %1615 }
 0x310   : > { %v1543_v52 = vmax.f32 %v4119_v35, -1e+30  ;;  %v1810_v45 = vmul.f32 %v4135_v40, %v1502_v62  ;;  %v1584_v63 = vmax.f32 %v4112_v29, -1e+30  ;;  %v1625_v35 = vmax.f32 %v4176_v18, -1e+30 }
 0x311   : > { %v1766_v53 = vadd.f32 %v1758_v25, %v1748_v60  ;;  %v1894_v10 = vsel %vm1890_vm5, %v4213_v12, 0.0  ;;  %v1833_v32 = vadd.f32 %v1825_v37, %v1816_v2  ;;  %v1860_v37 = vmul.f32 %v4154_v44, %v1624_v38  ;;  %v1575_v11 = vpop.xlane.xlu2 %1574 }
 0x312   : > { %1895 = vadd.xlane.f32.xlu1 %v1894_v10  ;;  %v1793_v25 = vmul.f32 %v4131_v15, %v1461_v34  ;;  %v1844_v10 = vmul.f32 %v4150_v36, %v1584_v63  ;;  %v1760_v38 = vmul.f32 %v4121_v13, %v1380_v24  ;;  %v1585_v8 = vmax.f32 %v1575_v11, -1e+30 }
 0x313   : > { %v1783_v58 = vadd.f32 %v1775_v22, %v1766_v53  ;;  %v1850_v57 = vadd.f32 %v1842_v59, %v1833_v32  ;;  %v1666_v32 = vmax.f32 %v4180_v7, -1e+30  ;;  %v1778_v46 = vmul.f32 %v4125_v1, %v1422_v31 }
 0x315   : > { %v1800_v55 = vadd.f32 %v1792_v54, %v1783_v58  ;;  %v1867_v16 = vadd.f32 %v1859_v6, %v1850_v57  ;;  %v1827_v54 = vmul.f32 %v4142_v43, %v1543_v52  ;;  %v4253_v53 = vpop.xlane.xlu0 %1414  ;;  %v1462_v58 = vmax.f32 %v4145_v20, -1e+30 }
 0x316   : > { %v1733_v33 = vpop.f32.mrf.mxu0  ;;  %v1878_v7 = vmul.f32 %v4162_v39, %v1666_v32  ;;  %v1544_v20 = vmax.f32 %v4164_v42, -1e+30  ;;  %v1463_v52 = vmax.f32 %v4198_v21, -1e+30  ;;  %v1676_v42 = vld [vmem:[%s3313_s30 + $0x30] sm:$0xff] }
 0x317   : > { %v1817_v41 = vadd.f32 %v1809_v56, %v1800_v55  ;;  %v1749_v5 = vadd.f32 %v1733_v33, %v1674_v4  ;;  %v4238_v51 = vadd.f32 %v1876_v48, %v1867_v16  ;;  %v1861_v48 = vmul.f32 %v4154_v44, %v1625_v35  ;;  %v1374_v4 = vpop.xlane.xlu1 %1373 }
 0x318   : > { %v1423_v32 = vmax.f32 %v4253_v53, -1e+30 }
 0x319   : > { %v1767_v22 = vadd.f32 %v1759_v61, %v1749_v5  ;;  %v1897_v9 = vsel %vm1890_vm5, %v4238_v51, 0.0  ;;  %v1834_v59 = vadd.f32 %v1826_v27, %v1817_v41  ;;  %v1495_v57 = vpop.xlane.xlu2 %1494  ;;  %v1777_v27 = vmul.f32 %v4125_v1, %v1421_v26 }
 0x31a   : > { %1898 = vadd.xlane.f32.xlu0 %v1897_v9  ;;  %v1811_v5 = vmul.f32 %v4135_v40, %v1503_v14 }
 0x31b   : > { %v1784_v2 = vadd.f32 %v1776_v17, %v1767_v22  ;;  %v1851_v60 = vadd.f32 %v1843_v49, %v1834_v59  ;;  %v1794_v17 = vmul.f32 %v4131_v15, %v1462_v58  ;;  %v1381_v49 = vmax.f32 %v4210_v3, -1e+30 }
 0x31c   : > { %v1626_v22 = vmax.f32 %v4245_v47, -1e+30  ;;  %v1828_v3 = vmul.f32 %v4142_v43, %v1544_v20 }
 0x31d   : > { %v1801_v6 = vadd.f32 %v1793_v25, %v1784_v2  ;;  %v1868_v30 = vadd.f32 %v1860_v37, %v1851_v60  ;;  %v1618_v41 = vpop.xlane.xlu0 %1617  ;;  %v1761_v9 = vmul.f32 %v4121_v13, %v1381_v49  ;;  %v1504_v60 = vmax.f32 %v1495_v57, -1e+30 }
 0x31e   : > { %v1862_v35 = vmul.f32 %v4154_v44, %v1626_v22 }
 0x31f   : > { %v1818_v29 = vadd.f32 %v1810_v45, %v1801_v6  ;;  %v4257_v0 = vadd.f32 %v1877_v19, %v1868_v30  ;;  %v1667_v45 = vmax.f32 %v4230_v23, -1e+30  ;;  %v1845_v19 = vmul.f32 %v4150_v36, %v1585_v8  ;;  %v1577_v47 = vpop.xlane.xlu1 %1576 }
 0x320   : > { %v1382_v30 = vmax.f32 %v1374_v4, -1e+30  ;;  %v1586_v23 = vmax.f32 %v1577_v47, -1e+30  ;;  %v1812_v26 = vmul.f32 %v4135_v40, %v1504_v60  ;;  %v1779_v4 = vmul.f32 %v4125_v1, %v1423_v32 }
 0x321   : > { %v1900_v18 = vsel %vm1890_vm5, %v4257_v0, 0.0  ;;  %v1835_v56 = vadd.f32 %v1827_v54, %v1818_v29  ;;  %v1536_v63 = vpop.xlane.xlu2 %1535  ;;  %v1795_v54 = vmul.f32 %v4131_v15, %v1463_v52  ;;  %v1879_v29 = vmul.f32 %v4162_v39, %v1667_v45 }
 0x322   : > { %1901 = vadd.xlane.f32.xlu1 %v1900_v18  ;;  %v1545_v24 = vmax.f32 %v1536_v63, -1e+30  ;;  %v1846_v53 = vmul.f32 %v4150_v36, %v1586_v23 }
 0x323   : > { %v1852_v34 = vadd.f32 %v1844_v10, %v1835_v56  ;;  %v1627_v56 = vmax.f32 %v1618_v41, -1e+30 }
 0x324   : > { %v1736_v61 = vpop.f32.mrf.mxu3 }
 0x325   : > { %v1750_v55 = vadd.f32 %v1736_v61, %v1675_v50  ;;  %v1869_v16 = vadd.f32 %v1861_v48, %v1852_v34  ;;  %v1659_v58 = vpop.xlane.xlu0 %1658  ;;  %v1677_v50 = vld [vmem:[%s3313_s30 + $0x38] sm:$0xff] }
 0x327   : > { %v1768_v62 = vadd.f32 %v1760_v38, %v1750_v55  ;;  %v4272_v33 = vadd.f32 %v1878_v7, %v1869_v16  ;;  %v1762_v38 = vmul.f32 %v4121_v13, %v1382_v30  ;;  %v1829_v7 = vmul.f32 %v4142_v43, %v1545_v24  ;;  %v1538_v45 = vpop.xlane.xlu1 %1537 }
 0x328   : > { %v1668_v55 = vmax.f32 %v1659_v58, -1e+30  ;;  %v1546_v60 = vmax.f32 %v1538_v45, -1e+30 }
 0x329   : > { %v1785_v37 = vadd.f32 %v1777_v27, %v1768_v62  ;;  %v1903_v25 = vsel %vm1890_vm5, %v4272_v33, 0.0 }
 0x32a   : > { %1904 = vadd.xlane.f32.xlu2 %v1903_v25  ;;  %v1880_v31 = vmul.f32 %v4162_v39, %v1668_v55  ;;  %v3188_v25 = vmov 32.0  }
 0x32b   : > { %v1802_v59 = vadd.f32 %v1794_v17, %v1785_v37  ;;  %v1863_v17 = vmul.f32 %v4154_v44, %v1627_v56  ;;  %v1456_v37 = vpop.xlane.xlu2 %1455  ;;  %2990 = vrcp.f32 %v3188_v25 }
 0x32c   : > { %v1739_v11 = vpop.f32.mrf.mxu3 }
 0x32d   : > { %v1819_v2 = vadd.f32 %v1811_v5, %v1802_v59  ;;  %v1751_v21 = vadd.f32 %v1739_v11, %v1676_v42 }
 0x32f   : > { %v1769_v6 = vadd.f32 %v1761_v9, %v1751_v21  ;;  %v1836_v10 = vadd.f32 %v1828_v3, %v1819_v2  ;;  %v1464_v3 = vmax.f32 %v1456_v37, -1e+30 }
 0x331   : > { %v1786_v48 = vadd.f32 %v1778_v46, %v1769_v6  ;;  %v1853_v18 = vadd.f32 %v1845_v19, %v1836_v10  ;;  %v2991_v52 = vpop.eup %2990  ;;  %v1796_v59 = vmul.f32 %v4131_v15, %v1464_v3  ;;  %v1620_v6 = vpop.xlane.xlu0 %1619  ;;  %v2076_v3 = vld [vmem:[%s4525_s11 + $0x10] sm:$0xff] }
 0x332   : > { %v1916_v42 = vmul.f32 32.0, %v2991_v52  ;;  %vm1920_vm6 = vweird.f32 %v2991_v52  ;;  %v1628_v10 = vmax.f32 %v1620_v6, -1e+30 }
 0x333   : > { %v1803_v57 = vadd.f32 %v1795_v54, %v1786_v48  ;;  %v1870_v34 = vadd.f32 %v1862_v35, %v1853_v18  ;;  %v1497_v22 = vpop.xlane.xlu2 %1496  ;;  %v1830_v35 = vmul.f32 %v4142_v43, %v1546_v60 }
 0x334   : > { %v1742_v61 = vpop.f32.mrf.mxu3  ;;  %v1917_v9 = vsub.f32 1.0, %v1916_v42  ;;  %v1505_v46 = vmax.f32 %v1497_v22, -1e+30 }
 0x335   : > { %v1820_v14 = vadd.f32 %v1812_v26, %v1803_v57  ;;  %v4296_v27 = vadd.f32 %v1879_v29, %v1870_v34  ;;  %v1752_v16 = vadd.f32 %v1742_v61, %v1677_v50 }
 0x336   : > { %v1918_v63 = vmul.f32 %v2991_v52, %v1917_v9  ;;  %v1813_v19 = vmul.f32 %v4135_v40, %v1505_v46  ;;  %v1864_v40 = vmul.f32 %v4154_v44, %v1628_v10  ;;  %v2074_v9 = vld [vmem:[%s4525_s11] sm:$0xff] }
 0x337   : > { %v1837_v20 = vadd.f32 %v1829_v7, %v1820_v14  ;;  %v1906_v49 = vsel %vm1890_vm5, %v4296_v27, 0.0  ;;  %v1770_v13 = vadd.f32 %v1762_v38, %v1752_v16 }
 0x338   : > { %1907 = vadd.xlane.f32.xlu0 %v1906_v49  ;;  %v1919_v21 = vadd.f32 %v2991_v52, %v1918_v63 }
 0x339   : > { %v1854_v62 = vadd.f32 %v1846_v53, %v1837_v20  ;;  %v1787_v1 = vadd.f32 %v1779_v4, %v1770_v13 }
 0x33a   : > { %v4309_v30 = vsel %vm1920_vm6, %v2991_v52, %v1919_v21 }
 0x33b   : > { %v1871_v41 = vadd.f32 %v1863_v17, %v1854_v62  ;;  %v1579_v11 = vpop.xlane.xlu2 %1578  ;;  %v1804_v2 = vadd.f32 %v1796_v59, %v1787_v1 }
 0x33c   : > { %v1587_v47 = vmax.f32 %v1579_v11, -1e+30 }
 0x33d   : > { %v4302_v5 = vadd.f32 %v1880_v31, %v1871_v41  ;;  %v1821_v54 = vadd.f32 %v1813_v19, %v1804_v2 }
 0x33e   : > { %v1847_v24 = vmul.f32 %v4150_v36, %v1587_v47 }
 0x33f   : > { %v1909_v8 = vsel %vm1890_vm5, %v4302_v5, 0.0  ;;  %v1838_v15 = vadd.f32 %v1830_v35, %v1821_v54 }
 0x340   : > { %1910 = vadd.xlane.f32.xlu2 %v1909_v8 }
 0x341   : > { %v1855_v18 = vadd.f32 %v1847_v24, %v1838_v15 }
 0x343   : > { %v1661_v32 = vpop.xlane.xlu2 %1660  ;;  %v1872_v58 = vadd.f32 %v1864_v40, %v1855_v18 }
 0x344   : > { %v1669_v26 = vmax.f32 %v1661_v32, -1e+30 }
 0x346   : > { %v1881_v56 = vmul.f32 %v4162_v39, %v1669_v26 }
 0x348   : > { %v1889_v44 = vadd.f32 %v1881_v56, %v1872_v58 }
 0x34a   : > { %v1912_v34 = vsel %vm1890_vm5, %v1889_v44, 0.0 }
 0x37d   : > { %v1893_v23 = vpop.xlane.xlu1 %1892 }
 0x37e   : > { %v1922_v29 = vmul.f32 %v4309_v30, %v1893_v23 }
 0x380   : > { %v4315_v48 = vsub.f32 %v4186_v28, %v1922_v29 }
 0x382   : > { %v1938_v43 = vmul.f32 %v4315_v48, %v4315_v48 }
 0x384   : > { %v1946_v36 = vsel %vm1890_vm5, %v1938_v43, 0.0 }
 0x385   : > { %v1896_v50 = vpop.xlane.xlu1 %1895  ;;  %1947 = vadd.xlane.f32.xlu1 %v1946_v36 }
 0x386   : > { %v1923_v57 = vmul.f32 %v4309_v30, %v1896_v50 }
 0x388   : > { %v4323_v38 = vsub.f32 %v4213_v12, %v1923_v57 }
 0x38a   : > { %v1939_v28 = vmul.f32 %v4323_v38, %v4323_v38 }
 0x38c   : > { %v1949_v7 = vsel %vm1890_vm5, %v1939_v28, 0.0 }
 0x38d   : > { %1950 = vadd.xlane.f32.xlu0 %v1949_v7  ;;  %1913 = vadd.xlane.f32.xlu1 %v1912_v34  ;;  %v1899_v39 = vpop.xlane.xlu0 %1898 }
 0x38e   : > { %v1924_v4 = vmul.f32 %v4309_v30, %v1899_v39 }
 0x390   : > { %v4331_v53 = vsub.f32 %v4238_v51, %v1924_v4 }
 0x392   : > { %v1940_v12 = vmul.f32 %v4331_v53, %v4331_v53 }
 0x394   : > { %v1952_v61 = vsel %vm1890_vm5, %v1940_v12, 0.0 }
 0x395   : > { %v1902_v14 = vpop.xlane.xlu1 %1901  ;;  %1953 = vadd.xlane.f32.xlu2 %v1952_v61 }
 0x396   : > { %v1925_v55 = vmul.f32 %v4309_v30, %v1902_v14 }
 0x398   : > { %v4338_v16 = vsub.f32 %v4257_v0, %v1925_v55 }
 0x39a   : > { %v1941_v17 = vmul.f32 %v4338_v16, %v4338_v16 }
 0x39c   : > { %v1955_v20 = vsel %vm1890_vm5, %v1941_v17, 0.0 }
 0x39d   : > { %v1905_v49 = vpop.xlane.xlu2 %1904  ;;  %1956 = vadd.xlane.f32.xlu0 %v1955_v20 }
 0x39e   : > { %v1926_v51 = vmul.f32 %v4309_v30, %v1905_v49 }
 0x3a0   : > { %v4345_v13 = vsub.f32 %v4272_v33, %v1926_v51 }
 0x3a2   : > { %v1942_v62 = vmul.f32 %v4345_v13, %v4345_v13 }
 0x3a4   : > { %v1958_v31 = vsel %vm1890_vm5, %v1942_v62, 0.0 }
 0x3a5   : > { %1959 = vadd.xlane.f32.xlu1 %v1958_v31 }
 0x3ab   : > { %v1908_v0 = vpop.xlane.xlu0 %1907 }
 0x3ac   : > { %v1927_v1 = vmul.f32 %v4309_v30, %v1908_v0 }
 0x3ae   : > { %v4352_v41 = vsub.f32 %v4296_v27, %v1927_v1  ;;  %v2077_v27 = vld [vmem:[%s4525_s11 + $0x18] sm:$0xff] }
 0x3af   : > { %2118 = vmatpush.msrb.mxu3 %v2077_v27 }
 0x3b0   : > { %v1943_v8 = vmul.f32 %v4352_v41, %v4352_v41 }
 0x3b1   : > { %2119 = vmatpush.msrb.mxu3 %v2076_v3 }
 0x3b2   : > { %v1961_v37 = vsel %vm1890_vm5, %v1943_v8, 0.0 }
 0x3b3   : > { %v1911_v25 = vpop.xlane.xlu2 %1910  ;;  %1962 = vadd.xlane.f32.xlu2 %v1961_v37 }
 0x3b4   : > { %v1928_v33 = vmul.f32 %v4309_v30, %v1911_v25 }
 0x3b6   : > { %v4359_v52 = vsub.f32 %v4302_v5, %v1928_v33  ;;  %v2075_v5 = vld [vmem:[%s4525_s11 + $0x8] sm:$0xff] }
 0x3b7   : > { %2120 = vmatpush.msrb.mxu3 %v2075_v5 }
 0x3b8   : > { %v1944_v22 = vmul.f32 %v4359_v52, %v4359_v52 }
 0x3b9   : > { %2121 = vmatpush.msrb.mxu3 %v2074_v9 }
 0x3ba   : > { %v1964_v42 = vsel %vm1890_vm5, %v1944_v22, 0.0 }
 0x3bb   : > { %1965 = vadd.xlane.f32.xlu0 %v1964_v42 }
 0x3f8   : > { %v1948_v59 = vpop.xlane.xlu1 %1947 }
 0x3f9   : > { %v1970_v46 = vmul.f32 %v1948_v59, %v4309_v30 }
 0x3fb   : > { %v1978_v45 = vadd.f32 1e-05, %v1970_v46 }
 0x3fd   : > { %2992 = vrsqrt.f32 %v1978_v45  ;;  %vm1992_vm8 = vweird.f32 %v1978_v45 }
 0x400   : > { %v1914_v11 = vpop.xlane.xlu1 %1913  ;;  %v1951_v63 = vpop.xlane.xlu0 %1950 }
 0x401   : > { %v1929_v19 = vmul.f32 %v4309_v30, %v1914_v11  ;;  %v1971_v2 = vmul.f32 %v1951_v63, %v4309_v30 }
 0x403   : > { %v2993_v60 = vpop.eup %2992  ;;  %v4379_v21 = vsub.f32 %v1889_v44, %v1929_v19  ;;  %v1979_v47 = vadd.f32 1e-05, %v1971_v2 }
 0x404   : > { %v1987_v54 = vmul.f32 %v2993_v60, %v1978_v45  ;;  %vm1993_vm7 = vweird.f32 %v2993_v60 }
 0x405   : > { %2994 = vrsqrt.f32 %v1979_v47  ;;  %v1945_v35 = vmul.f32 %v4379_v21, %v4379_v21  ;;  %vm1994_vm9 = vmor %vm1992_vm8, %vm1993_vm7  ;;  %vm2002_vm11 = vweird.f32 %v1979_v47 }
 0x406   : > { %v1988_v6 = vmul.f32 %v2993_v60, %v1987_v54 }
 0x407   : > { %v1967_v24 = vsel %vm1890_vm5, %v1945_v35, 0.0 }
 0x408   : > { %v1989_v15 = vmul.f32 0.5, %v1988_v6  ;;  %1968 = vadd.xlane.f32.xlu1 %v1967_v24  ;;  %v1954_v10 = vpop.xlane.xlu2 %1953 }
 0x409   : > { %v1972_v32 = vmul.f32 %v1954_v10, %v4309_v30 }
 0x40a   : > { %v1990_v23 = vsub.f32 1.5, %v1989_v15 }
 0x40b   : > { %v2995_v29 = vpop.eup %2994  ;;  %v1980_v40 = vadd.f32 1e-05, %v1972_v32 }
 0x40c   : > { %v1991_v26 = vmul.f32 %v2993_v60, %v1990_v23  ;;  %v1997_v18 = vmul.f32 %v2995_v29, %v1979_v47  ;;  %vm2003_vm10 = vweird.f32 %v2995_v29 }
 0x40d   : > { %2996 = vrsqrt.f32 %v1980_v40  ;;  %vm2004_vm12 = vmor %vm2002_vm11, %vm2003_vm10  ;;  %vm2012_vm14 = vweird.f32 %v1980_v40 }
 0x40e   : > { %v1998_v43 = vmul.f32 %v2995_v29, %v1997_v18  ;;  %v1995_v56 = vsel %vm1994_vm9, %v2993_v60, %v1991_v26 }
 0x40f   : > { %v2066_v36 = vmul.f32 %v1995_v56, %v4315_v48 }
 0x410   : > { %v1999_v58 = vmul.f32 0.5, %v1998_v43  ;;  %v1957_v50 = vpop.xlane.xlu0 %1956 }
 0x411   : > { %v1973_v57 = vmul.f32 %v1957_v50, %v4309_v30  ;;  %2751 = vmatmul.msk.f32.vlgmr.msrb.gmra.mxu3 %vm1890_vm5, %v2066_v36 }
 0x412   : > { %v2000_v44 = vsub.f32 1.5, %v1999_v58  ;;  %v2195_v58 = vld [vmem:[%s4527_s13] sm:$0xff] }
 0x413   : > { %v2997_v28 = vpop.eup %2996  ;;  %v1981_v7 = vadd.f32 1e-05, %v1973_v57 }
 0x414   : > { %v2007_v34 = vmul.f32 %v2997_v28, %v1980_v40  ;;  %v2001_v39 = vmul.f32 %v2995_v29, %v2000_v44  ;;  %vm2013_vm13 = vweird.f32 %v2997_v28 }
 0x415   : > { %2998 = vrsqrt.f32 %v1981_v7  ;;  %vm2014_vm15 = vmor %vm2012_vm14, %vm2013_vm13  ;;  %vm2022_vm2 = vweird.f32 %v1981_v7 }
 0x416   : > { %v2008_v4 = vmul.f32 %v2997_v28, %v2007_v34  ;;  %v2005_v12 = vsel %vm2004_vm12, %v2995_v29, %v2001_v39 }
 0x417   : > { %v2067_v61 = vmul.f32 %v2005_v12, %v4323_v38 }
 0x418   : > { %v2009_v48 = vmul.f32 0.5, %v2008_v4  ;;  %v1960_v14 = vpop.xlane.xlu1 %1959 }
 0x419   : > { %v1974_v55 = vmul.f32 %v1960_v14, %v4309_v30  ;;  %2752 = vmatmul.msk.f32.gmra.mxu3 %vm1890_vm5, %v2067_v61 }
 0x41a   : > { %v2010_v17 = vsub.f32 1.5, %v2009_v48 }
 0x41b   : > { %v2999_v20 = vpop.eup %2998  ;;  %v1982_v49 = vadd.f32 1e-05, %v1974_v55 }
 0x41c   : > { %v2017_v51 = vmul.f32 %v2999_v20, %v1981_v7  ;;  %v2011_v62 = vmul.f32 %v2997_v28, %v2010_v17  ;;  %vm2023_vm1 = vweird.f32 %v2999_v20  ;;  %v4413_v7 = vld [vmem:[%s4526_s12] ss:$0 sm:$0xff] }
 0x41d   : > { %3000 = vrsqrt.f32 %v1982_v49  ;;  %vm2024_vm4 = vmor %vm2022_vm2, %vm2023_vm1  ;;  %vm2032_vm6 = vweird.f32 %v1982_v49 }
 0x41e   : > { %v2018_v31 = vmul.f32 %v2999_v20, %v2017_v51  ;;  %v2015_v0 = vsel %vm2014_vm15, %v2997_v28, %v2011_v62 }
 0x41f   : > { %v2068_v1 = vmul.f32 %v2015_v0, %v4331_v53 }
 0x420   : > { %v2019_v38 = vmul.f32 0.5, %v2018_v31 }
 0x421   : > { %2753 = vmatmul.msk.f32.gmra.mxu3 %vm1890_vm5, %v2068_v1 }
 0x422   : > { %v2020_v8 = vsub.f32 1.5, %v2019_v38 }
 0x423   : > { %v3001_v37 = vpop.eup %3000 }
 0x424   : > { %v2027_v25 = vmul.f32 %v3001_v37, %v1982_v49  ;;  %v2021_v33 = vmul.f32 %v2999_v20, %v2020_v8  ;;  %vm2033_vm3 = vweird.f32 %v3001_v37 }
 0x425   : > { %vm2034_vm7 = vmor %vm2032_vm6, %vm2033_vm3 }
 0x426   : > { %v2028_v22 = vmul.f32 %v3001_v37, %v2027_v25  ;;  %v1963_v42 = vpop.xlane.xlu2 %1962  ;;  %v2025_v27 = vsel %vm2024_vm4, %v2999_v20, %v2021_v33 }
 0x427   : > { %v1975_v3 = vmul.f32 %v1963_v42, %v4309_v30  ;;  %v2069_v5 = vmul.f32 %v2025_v27, %v4338_v16 }
 0x428   : > { %v2029_v9 = vmul.f32 0.5, %v2028_v22 }
 0x429   : > { %v1983_v59 = vadd.f32 1e-05, %v1975_v3  ;;  %2754 = vmatmul.msk.f32.gmra.mxu3 %vm1890_vm5, %v2069_v5 }
 0x42a   : > { %v2030_v53 = vsub.f32 1.5, %v2029_v9 }
 0x42b   : > { %3002 = vrsqrt.f32 %v1983_v59  ;;  %vm2042_vm9 = vweird.f32 %v1983_v59 }
 0x42c   : > { %v2031_v46 = vmul.f32 %v3001_v37, %v2030_v53 }
 0x42e   : > { %v1966_v45 = vpop.xlane.xlu0 %1965  ;;  %v2035_v11 = vsel %vm2034_vm7, %v3001_v37, %v2031_v46 }
 0x42f   : > { %v1976_v63 = vmul.f32 %v1966_v45, %v4309_v30  ;;  %v2070_v19 = vmul.f32 %v2035_v11, %v4345_v13 }
 0x431   : > { %v3003_v2 = vpop.eup %3002  ;;  %v1984_v60 = vadd.f32 1e-05, %v1976_v63  ;;  %2755 = vmatmul.msk.f32.gmra.mxu3 %vm1890_vm5, %v2070_v19 }
 0x432   : > { %v2037_v16 = vmul.f32 %v3003_v2, %v1983_v59  ;;  %vm2043_vm8 = vweird.f32 %v3003_v2 }
 0x433   : > { %3004 = vrsqrt.f32 %v1984_v60  ;;  %vm2044_vm10 = vmor %vm2042_vm9, %vm2043_vm8  ;;  %vm2052_vm12 = vweird.f32 %v1984_v60  ;;  %vm2372_vm9 = vcmask 1043456  }
 0x434   : > { %v2038_v47 = vmul.f32 %v3003_v2, %v2037_v16 }
 0x436   : > { %v2039_v54 = vmul.f32 0.5, %v2038_v47 }
 0x438   : > { %v2040_v35 = vsub.f32 1.5, %v2039_v54 }
 0x439   : > { %v3005_v6 = vpop.eup %3004 }
 0x43a   : > { %v2047_v24 = vmul.f32 %v3005_v6, %v1984_v60  ;;  %v2041_v15 = vmul.f32 %v3003_v2, %v2040_v35  ;;  %vm2053_vm11 = vweird.f32 %v3005_v6 }
 0x43b   : > { %vm2054_vm13 = vmor %vm2052_vm12, %vm2053_vm11  ;;  %vm2277_vm11 = vcmask 105472   ;;  %vm2347_vm12 = vcmask 31744  }
 0x43c   : > { %v2048_v10 = vmul.f32 %v3005_v6, %v2047_v24  ;;  %v2045_v32 = vsel %vm2044_vm10, %v3003_v2, %v2041_v15  ;;  %vm2302_vm10 = vcmask 1044480  }
 0x43d   : > { %v2071_v23 = vmul.f32 %v2045_v32, %v4352_v41  ;;  %v2196_v41 = vld [vmem:[%s4527_s13 + $0x8] sm:$0xff] }
 0x43e   : > { %v2049_v13 = vmul.f32 0.5, %v2048_v10  ;;  %2239 = vmatpush.msra.mxu0 %v2196_v41  ;;  %v2267_v41 = vld [vmem:[%s3318_s22 + $0x8] sm:$0xff] }
 0x43f   : > { %2756 = vmatmul.msk.f32.gmra.mxu3 %vm1890_vm5, %v2071_v23 }
 0x440   : > { %v2050_v29 = vsub.f32 1.5, %v2049_v13  ;;  %2240 = vmatpush.msra.mxu0 %v2195_v58 }
 0x442   : > { %v2051_v40 = vmul.f32 %v3005_v6, %v2050_v29 }
 0x444   : > { %v2055_v26 = vsel %vm2054_vm13, %v3005_v6, %v2051_v40 }
 0x445   : > { %v2072_v18 = vmul.f32 %v2055_v26, %v4359_v52 }
 0x447   : > { %2757 = vmatmul.msk.f32.gmra.mxu3 %vm1890_vm5, %v2072_v18  ;;  %v2274_v18 = vld [vmem:[%s4529_s15] sm:$0xf] }
 0x448   : > { %2784 = vmatpush.msk.msrb.mxu2 %vm2372_vm9, %v2274_v18 }
 0x47b   : > { %v1969_v43 = vpop.xlane.xlu1 %1968 }
 0x47c   : > { %v1977_v56 = vmul.f32 %v1969_v43, %v4309_v30  ;;  %v2276_v43 = vld [vmem:[%s4530_s16 + $0x8] sm:$0x1f] }
 0x47d   : > { %2775 = vmatpush.msk.msra.mxu1 %vm2302_vm10, %v2276_v43 }
 0x47e   : > { %v1985_v36 = vadd.f32 1e-05, %v1977_v56  ;;  %v2275_v56 = vld [vmem:[%s4530_s16] sm:$0xff] }
 0x47f   : > { %2321 = vmatpush.msra.mxu1 %v2275_v56 }
 0x480   : > { %3006 = vrsqrt.f32 %v1985_v36  ;;  %vm2062_vm15 = vweird.f32 %v1985_v36 }
 0x486   : > { %v3007_v50 = vpop.eup %3006 }
 0x487   : > { %v2057_v57 = vmul.f32 %v3007_v50, %v1985_v36  ;;  %vm2063_vm14 = vweird.f32 %v3007_v50  ;;  %v2266_v36 = vld [vmem:[%s3318_s22] sm:$0xff] }
 0x488   : > { %vm2064_vm1 = vmor %vm2062_vm15, %vm2063_vm14  ;;  %2776 = vmatmul.msk.f32.vlgmr.msra.gmra.mxu1 %vm2277_vm11, %v2266_v36 }
 0x489   : > { %v2058_v52 = vmul.f32 %v3007_v50, %v2057_v57 }
 0x48b   : > { %v2059_v44 = vmul.f32 0.5, %v2058_v52  ;;  %v2268_v52 = vld [vmem:[%s3318_s22 + $0x10] sm:$0xff] }
 0x48d   : > { %v2060_v28 = vsub.f32 1.5, %v2059_v44 }
 0x48f   : > { %v2061_v30 = vmul.f32 %v3007_v50, %v2060_v28  ;;  %v2971_v28 = vld [vmem:[%s4528_s14] ss:$0 sm:$0xff] }
 0x490   : > { %2777 = vmatmul.msk.f32.gmra.mxu1 %vm2277_vm11, %v2267_v41 }
 0x491   : > { %v2065_v34 = vsel %vm2064_vm1, %v3007_v50, %v2061_v30 }
 0x492   : > { %v2073_v39 = vmul.f32 %v2065_v34, %v4379_v21  ;;  %v2269_v34 = vld [vmem:[%s3318_s22 + $0x18] sm:$0xff] }
 0x494   : > { %v2123_v4 = vpop.f32.mrf.mxu3  ;;  %2758 = vmatmul.msk.f32.gmra.mxu3 %vm1890_vm5, %v2073_v39 }
 0x495   : > { %v2124_v12 = vadd.f32 %v4413_v7, %v2123_v4 }
 0x497   : > { %v2155_v61 = vmin.f32 %v2124_v12, 0.0  ;;  %vm2147_vm2 = vcmp.gt.f32.partialorder %v2124_v12, 0.0 }
 0x498   : > { %2778 = vmatmul.msk.f32.gmra.mxu1 %vm2277_vm11, %v2268_v52 }
 0x499   : > { %v2163_v48 = vmul.f32 1.442695, %v2155_v61  ;;  %v2270_v61 = vld [vmem:[%s3318_s22 + $0x20] sm:$0xff] }
 0x49b   : > { %3008 = vpow2.f32 %v2163_v48 }
 0x49c   : > { %v2126_v14 = vpop.f32.mrf.mxu3 }
 0x49d   : > { %v2127_v55 = vadd.f32 %v4413_v7, %v2126_v14 }
 0x49f   : > { %v2156_v17 = vmin.f32 %v2127_v55, 0.0  ;;  %vm2148_vm5 = vcmp.gt.f32.partialorder %v2127_v55, 0.0 }
 0x4a0   : > { %2779 = vmatmul.msk.f32.gmra.mxu1 %vm2277_vm11, %v2269_v34 }
 0x4a1   : > { %v3009_v20 = vpop.eup %3008  ;;  %v2165_v49 = vmul.f32 1.442695, %v2156_v17 }
 0x4a2   : > { %v2759_v51 = vadd.f32 -1.0, %v3009_v20  ;;  %v2271_v20 = vld [vmem:[%s3318_s22 + $0x28] sm:$0xff] }
 0x4a3   : > { %3010 = vpow2.f32 %v2165_v49 }
 0x4a4   : > { %v2129_v62 = vpop.f32.mrf.mxu3  ;;  %v2187_v31 = vsel %vm2147_vm2, %v2124_v12, %v2759_v51 }
 0x4a5   : > { %v2130_v21 = vadd.f32 %v4413_v7, %v2129_v62  ;;  %2767 = vmatmul.msk.f32.vlgmr.msra.gmra.mxu0 %vm725_vm0, %v2187_v31  ;;  %v2272_v62 = vld [vmem:[%s3318_s22 + $0x30] sm:$0xff] }
 0x4a7   : > { %v2157_v0 = vmin.f32 %v2130_v21, 0.0  ;;  %vm2149_vm4 = vcmp.gt.f32.partialorder %v2130_v21, 0.0 }
 0x4a8   : > { %2780 = vmatmul.msk.f32.gmra.mxu1 %vm2277_vm11, %v2270_v61 }
 0x4a9   : > { %v3011_v1 = vpop.eup %3010  ;;  %v2167_v38 = vmul.f32 1.442695, %v2157_v0 }
 0x4aa   : > { %v2760_v8 = vadd.f32 -1.0, %v3011_v1 }
 0x4ab   : > { %3012 = vpow2.f32 %v2167_v38 }
 0x4ac   : > { %v2132_v37 = vpop.f32.mrf.mxu3  ;;  %v2188_v25 = vsel %vm2148_vm5, %v2127_v55, %v2760_v8 }
 0x4ad   : > { %v2133_v33 = vadd.f32 %v4413_v7, %v2132_v37  ;;  %2768 = vmatmul.msk.f32.gmra.mxu0 %vm725_vm0, %v2188_v25  ;;  %v2273_v37 = vld [vmem:[%s3318_s22 + $0x38] sm:$0xff]  ;;  %v2477_v25 = vld [vmem:[%s4532_s18] sm:$0xf] }
 0x4ae   : > { %2801 = vmatpush.msk.msra.mxu3 %vm2372_vm9, %v2477_v25 }
 0x4af   : > { %v2158_v22 = vmin.f32 %v2133_v33, 0.0  ;;  %vm2150_vm3 = vcmp.gt.f32.partialorder %v2133_v33, 0.0 }
 0x4b0   : > { %2781 = vmatmul.msk.f32.gmra.mxu1 %vm2277_vm11, %v2271_v20 }
 0x4b1   : > { %v3013_v42 = vpop.eup %3012  ;;  %v2169_v27 = vmul.f32 1.442695, %v2158_v22 }
 0x4b2   : > { %v2761_v3 = vadd.f32 -1.0, %v3013_v42 }
 0x4b3   : > { %3014 = vpow2.f32 %v2169_v27  ;;  %v4476_v27 = vld [vmem:[%s4531_s17] ss:$0 sm:$0xff] }
 0x4b4   : > { %v2135_v5 = vpop.f32.mrf.mxu3  ;;  %v2189_v9 = vsel %vm2149_vm4, %v2130_v21, %v2761_v3 }
 0x4b5   : > { %v2136_v59 = vadd.f32 %v4413_v7, %v2135_v5  ;;  %2769 = vmatmul.msk.f32.gmra.mxu0 %vm725_vm0, %v2189_v9 }
 0x4b7   : > { %v2159_v53 = vmin.f32 %v2136_v59, 0.0  ;;  %vm2151_vm6 = vcmp.gt.f32.partialorder %v2136_v59, 0.0 }
 0x4b8   : > { %2782 = vmatmul.msk.f32.gmra.mxu1 %vm2277_vm11, %v2272_v62 }
 0x4b9   : > { %v3015_v46 = vpop.eup %3014  ;;  %v2171_v45 = vmul.f32 1.442695, %v2159_v53 }
 0x4ba   : > { %v2762_v11 = vadd.f32 -1.0, %v3015_v46 }
 0x4bb   : > { %3016 = vpow2.f32 %v2171_v45 }
 0x4bc   : > { %v2190_v63 = vsel %vm2150_vm3, %v2133_v33, %v2762_v11 }
 0x4bd   : > { %2770 = vmatmul.msk.f32.gmra.mxu0 %vm725_vm0, %v2190_v63 }
 0x4c0   : > { %2783 = vmatmul.msk.f32.gmra.mxu1 %vm2277_vm11, %v2273_v37 }
 0x4c1   : > { %v3017_v19 = vpop.eup %3016 }
 0x4c2   : > { %v2138_v2 = vpop.f32.mrf.mxu3  ;;  %v2763_v60 = vadd.f32 -1.0, %v3017_v19 }
 0x4c3   : > { %v2139_v16 = vadd.f32 %v4413_v7, %v2138_v2 }
 0x4c4   : > { %v2191_v47 = vsel %vm2151_vm6, %v2136_v59, %v2763_v60  ;;  %vm2550_vm6 = vcmask 7168  }
 0x4c5   : > { %v2160_v54 = vmin.f32 %v2139_v16, 0.0  ;;  %2771 = vmatmul.msk.f32.gmra.mxu0 %vm725_vm0, %v2191_v47  ;;  %vm2152_vm7 = vcmp.gt.f32.partialorder %v2139_v16, 0.0 }
 0x4c7   : > { %v2173_v35 = vmul.f32 1.442695, %v2160_v54 }
 0x4c9   : > { %3018 = vpow2.f32 %v2173_v35 }
 0x4ca   : > { %v2141_v6 = vpop.f32.mrf.mxu3 }
 0x4cb   : > { %v2142_v24 = vadd.f32 %v4413_v7, %v2141_v6 }
 0x4cd   : > { %v2161_v15 = vmin.f32 %v2142_v24, 0.0  ;;  %vm2153_vm8 = vcmp.gt.f32.partialorder %v2142_v24, 0.0 }
 0x4cf   : > { %v3019_v10 = vpop.eup %3018  ;;  %v2175_v32 = vmul.f32 1.442695, %v2161_v15 }
 0x4d0   : > { %v2764_v23 = vadd.f32 -1.0, %v3019_v10 }
 0x4d1   : > { %3020 = vpow2.f32 %v2175_v32 }
 0x4d2   : > { %v2192_v13 = vsel %vm2152_vm7, %v2139_v16, %v2764_v23 }
 0x4d3   : > { %2772 = vmatmul.msk.f32.gmra.mxu0 %vm725_vm0, %v2192_v13 }
 0x4d7   : > { %v3021_v29 = vpop.eup %3020 }
 0x4d8   : > { %v2765_v40 = vadd.f32 -1.0, %v3021_v29 }
 0x4da   : > { %v2193_v26 = vsel %vm2153_vm8, %v2142_v24, %v2765_v40 }
 0x4db   : > { %2773 = vmatmul.msk.f32.gmra.mxu0 %vm725_vm0, %v2193_v26 }
 0x505   : > { %v2323_v33 = vpop.f32.mrf.mxu1 }
 0x50d   : > { %v2326_v5 = vpop.f32.mrf.mxu1 }
 0x515   : > { %v2329_v63 = vpop.f32.mrf.mxu1 }
 0x517   : > { %v2144_v58 = vpop.f32.mrf.mxu3 }
 0x518   : > { %v2145_v50 = vadd.f32 %v4413_v7, %v2144_v58 }
 0x51a   : > { %v2162_v57 = vmin.f32 %v2145_v50, 0.0  ;;  %vm2154_vm13 = vcmp.gt.f32.partialorder %v2145_v50, 0.0 }
 0x51c   : > { %v2177_v44 = vmul.f32 1.442695, %v2162_v57 }
 0x51d   : > { %v2332_v15 = vpop.f32.mrf.mxu1 }
 0x51e   : > { %3022 = vpow2.f32 %v2177_v44 }
 0x522   : > { %v2242_v30 = vpop.f32.mrf.mxu0 }
 0x523   : > { %v2243_v39 = vadd.f32 %v2971_v28, %v2242_v30 }
 0x524   : > { %v3023_v4 = vpop.eup %3022 }
 0x525   : > { %2785 = vmatmul.msk.f32.vlgmr.msrb.gmra.mxu2 %vm2347_vm12, %v2243_v39  ;;  %v2766_v7 = vadd.f32 -1.0, %v3023_v4  ;;  %v2335_v56 = vpop.f32.mrf.mxu1 }
 0x527   : > { %v2194_v12 = vsel %vm2154_vm13, %v2145_v50, %v2766_v7 }
 0x528   : > { %2774 = vmatmul.msk.f32.gmra.mxu0 %vm725_vm0, %v2194_v12 }
 0x52a   : > { %v2245_v48 = vpop.f32.mrf.mxu0 }
 0x52b   : > { %v2246_v14 = vadd.f32 %v2971_v28, %v2245_v48 }
 0x52d   : > { %2786 = vmatmul.msk.f32.gmra.mxu2 %vm2347_vm12, %v2246_v14  ;;  %v2338_v7 = vpop.f32.mrf.mxu1 }
 0x532   : > { %v2248_v55 = vpop.f32.mrf.mxu0 }
 0x533   : > { %v2249_v17 = vadd.f32 %v2971_v28, %v2248_v55 }
 0x535   : > { %2787 = vmatmul.msk.f32.gmra.mxu2 %vm2347_vm12, %v2249_v17 }
 0x53a   : > { %v2251_v49 = vpop.f32.mrf.mxu0 }
 0x53b   : > { %v2252_v51 = vadd.f32 %v2971_v28, %v2251_v49  ;;  %v2341_v49 = vpop.f32.mrf.mxu1 }
 0x53d   : > { %2788 = vmatmul.msk.f32.gmra.mxu2 %vm2347_vm12, %v2252_v51 }
 0x542   : > { %v2254_v31 = vpop.f32.mrf.mxu0 }
 0x543   : > { %v2255_v21 = vadd.f32 %v2971_v28, %v2254_v31 }
 0x545   : > { %2789 = vmatmul.msk.f32.gmra.mxu2 %vm2347_vm12, %v2255_v21 }
 0x550   : > { %v2257_v0 = vpop.f32.mrf.mxu0 }
 0x551   : > { %v2258_v1 = vadd.f32 %v2971_v28, %v2257_v0 }
 0x553   : > { %2790 = vmatmul.msk.f32.gmra.mxu2 %vm2347_vm12, %v2258_v1 }
 0x558   : > { %v2260_v38 = vpop.f32.mrf.mxu0 }
 0x559   : > { %v2261_v8 = vadd.f32 %v2971_v28, %v2260_v38 }
 0x55b   : > { %2791 = vmatmul.msk.f32.gmra.mxu2 %vm2347_vm12, %v2261_v8 }
 0x5a5   : > { %v2263_v22 = vpop.f32.mrf.mxu0 }
 0x5a6   : > { %v2264_v42 = vadd.f32 %v2971_v28, %v2263_v22 }
 0x5a8   : > { %v2393_v3 = vpop.f32.mrf.mxu2  ;;  %2792 = vmatmul.msk.f32.gmra.mxu2 %vm2347_vm12, %v2264_v42  ;;  %v2344_v42 = vpop.f32.mrf.mxu1 }
 0x5a9   : > { %v2394_v9 = vadd.f32 %v2393_v3, %v2323_v33 }
 0x5ab   : > { %v2421_v59 = vadd.f32 %v4476_v27, %v2394_v9 }
 0x5ad   : > { %v2437_v53 = vmin.f32 %v2421_v59, 0.0  ;;  %vm2429_vm0 = vcmp.gt.f32.partialorder %v2421_v59, 0.0 }
 0x5af   : > { %v2445_v46 = vmul.f32 1.442695, %v2437_v53 }
 0x5b0   : > { %v2396_v45 = vpop.f32.mrf.mxu2 }
 0x5b1   : > { %3024 = vpow2.f32 %v2445_v46  ;;  %v2397_v11 = vadd.f32 %v2396_v45, %v2326_v5  ;;  %v2973_v45 = vld [vmem:[#allocation3] ss:$0 sm:$0xff] }
 0x5b3   : > { %v2422_v19 = vadd.f32 %v4476_v27, %v2397_v11 }
 0x5b5   : > { %v2438_v2 = vmin.f32 %v2422_v19, 0.0  ;;  %vm2430_vm14 = vcmp.gt.f32.partialorder %v2422_v19, 0.0 }
 0x5b7   : > { %v3025_v60 = vpop.eup %3024  ;;  %v2447_v16 = vmul.f32 1.442695, %v2438_v2 }
 0x5b8   : > { %v2793_v47 = vadd.f32 -1.0, %v3025_v60  ;;  %v2399_v54 = vpop.f32.mrf.mxu2 }
 0x5b9   : > { %v2400_v35 = vadd.f32 %v2399_v54, %v2329_v63  ;;  %3026 = vpow2.f32 %v2447_v16 }
 0x5ba   : > { %v2469_v6 = vsel %vm2429_vm0, %v2421_v59, %v2793_v47 }
 0x5bb   : > { %v2423_v24 = vadd.f32 %v4476_v27, %v2400_v35  ;;  %2802 = vmatmul.msk.f32.vlgmr.msra.gmra.mxu3 %vm2347_vm12, %v2469_v6 }
 0x5bd   : > { %v2439_v10 = vmin.f32 %v2423_v24, 0.0  ;;  %vm2431_vm15 = vcmp.gt.f32.partialorder %v2423_v24, 0.0 }
 0x5bf   : > { %v3027_v32 = vpop.eup %3026  ;;  %v2449_v23 = vmul.f32 1.442695, %v2439_v10 }
 0x5c0   : > { %v2402_v13 = vpop.f32.mrf.mxu2  ;;  %v2794_v29 = vadd.f32 -1.0, %v3027_v32 }
 0x5c1   : > { %v2403_v40 = vadd.f32 %v2402_v13, %v2332_v15  ;;  %3028 = vpow2.f32 %v2449_v23 }
 0x5c2   : > { %v2470_v26 = vsel %vm2430_vm14, %v2422_v19, %v2794_v29 }
 0x5c3   : > { %v2424_v18 = vadd.f32 %v4476_v27, %v2403_v40  ;;  %2803 = vmatmul.msk.f32.gmra.mxu3 %vm2347_vm12, %v2470_v26 }
 0x5c5   : > { %v2440_v43 = vmin.f32 %v2424_v18, 0.0  ;;  %vm2432_vm1 = vcmp.gt.f32.partialorder %v2424_v18, 0.0 }
 0x5c7   : > { %v3029_v36 = vpop.eup %3028  ;;  %v2451_v41 = vmul.f32 1.442695, %v2440_v43 }
 0x5c8   : > { %v2405_v58 = vpop.f32.mrf.mxu2  ;;  %v2795_v50 = vadd.f32 -1.0, %v3029_v36 }
 0x5c9   : > { %v2406_v57 = vadd.f32 %v2405_v58, %v2335_v56  ;;  %3030 = vpow2.f32 %v2451_v41 }
 0x5ca   : > { %v2471_v52 = vsel %vm2431_vm15, %v2423_v24, %v2795_v50 }
 0x5cb   : > { %v2425_v44 = vadd.f32 %v4476_v27, %v2406_v57  ;;  %2804 = vmatmul.msk.f32.gmra.mxu3 %vm2347_vm12, %v2471_v52 }
 0x5cd   : > { %v2441_v28 = vmin.f32 %v2425_v44, 0.0  ;;  %vm2433_vm2 = vcmp.gt.f32.partialorder %v2425_v44, 0.0 }
 0x5cf   : > { %v3031_v30 = vpop.eup %3030  ;;  %v2453_v34 = vmul.f32 1.442695, %v2441_v28 }
 0x5d0   : > { %v2796_v39 = vadd.f32 -1.0, %v3031_v30 }
 0x5d1   : > { %3032 = vpow2.f32 %v2453_v34 }
 0x5d2   : > { %v2472_v4 = vsel %vm2432_vm1, %v2424_v18, %v2796_v39 }
 0x5d3   : > { %2805 = vmatmul.msk.f32.gmra.mxu3 %vm2347_vm12, %v2472_v4 }
 0x5d6   : > { %v2408_v12 = vpop.f32.mrf.mxu2 }
 0x5d7   : > { %v3033_v61 = vpop.eup %3032  ;;  %v2409_v48 = vadd.f32 %v2408_v12, %v2338_v7 }
 0x5d8   : > { %v2797_v14 = vadd.f32 -1.0, %v3033_v61 }
 0x5d9   : > { %v2426_v55 = vadd.f32 %v4476_v27, %v2409_v48 }
 0x5da   : > { %v2473_v17 = vsel %vm2433_vm2, %v2425_v44, %v2797_v14 }
 0x5db   : > { %v2442_v20 = vmin.f32 %v2426_v55, 0.0  ;;  %2806 = vmatmul.msk.f32.gmra.mxu3 %vm2347_vm12, %v2473_v17  ;;  %vm2434_vm5 = vcmp.gt.f32.partialorder %v2426_v55, 0.0 }
 0x5dd   : > { %v2455_v51 = vmul.f32 1.442695, %v2442_v20 }
 0x5de   : > { %v2411_v62 = vpop.f32.mrf.mxu2 }
 0x5df   : > { %v2412_v31 = vadd.f32 %v2411_v62, %v2341_v49  ;;  %3034 = vpow2.f32 %v2455_v51 }
 0x5e1   : > { %v2427_v21 = vadd.f32 %v4476_v27, %v2412_v31 }
 0x5e3   : > { %v2443_v0 = vmin.f32 %v2427_v21, 0.0  ;;  %vm2435_vm4 = vcmp.gt.f32.partialorder %v2427_v21, 0.0 }
 0x5e5   : > { %v3035_v1 = vpop.eup %3034  ;;  %v2457_v38 = vmul.f32 1.442695, %v2443_v0 }
 0x5e6   : > { %v2798_v8 = vadd.f32 -1.0, %v3035_v1 }
 0x5e7   : > { %3036 = vpow2.f32 %v2457_v38 }
 0x5e8   : > { %v2474_v37 = vsel %vm2434_vm5, %v2426_v55, %v2798_v8 }
 0x5e9   : > { %2807 = vmatmul.msk.f32.gmra.mxu3 %vm2347_vm12, %v2474_v37 }
 0x5ed   : > { %v3037_v25 = vpop.eup %3036 }
 0x5ee   : > { %v2799_v33 = vadd.f32 -1.0, %v3037_v25 }
 0x5f0   : > { %v2475_v22 = vsel %vm2435_vm4, %v2427_v21, %v2799_v33 }
 0x5f1   : > { %2808 = vmatmul.msk.f32.gmra.mxu3 %vm2347_vm12, %v2475_v22 }
 0x62b   : > { %v2414_v3 = vpop.f32.mrf.mxu2 }
 0x62c   : > { %v2415_v5 = vadd.f32 %v2414_v3, %v2344_v42 }
 0x62e   : > { %v2428_v9 = vadd.f32 %v4476_v27, %v2415_v5 }
 0x630   : > { %v2444_v59 = vmin.f32 %v2428_v9, 0.0  ;;  %vm2436_vm3 = vcmp.gt.f32.partialorder %v2428_v9, 0.0 }
 0x632   : > { %v2459_v53 = vmul.f32 1.442695, %v2444_v59 }
 0x634   : > { %3038 = vpow2.f32 %v2459_v53 }
 0x63a   : > { %v3039_v46 = vpop.eup %3038 }
 0x63b   : > { %v2800_v11 = vadd.f32 -1.0, %v3039_v46 }
 0x63d   : > { %v2476_v63 = vsel %vm2436_vm3, %v2428_v9, %v2800_v11 }
 0x63e   : > { %v2526_v19 = vpop.f32.mrf.mxu3  ;;  %2809 = vmatmul.msk.f32.gmra.mxu3 %vm2347_vm12, %v2476_v63 }
 0x63f   : > { %v2527_v2 = vadd.f32 %v2973_v45, %v2526_v19 }
 0x641   : > { %2551 = vst.msk [vmem:[%s3323_s25] sm:$0xff] %vm2550_vm6, %v2527_v2 }
 0x646   : > { %v2529_v27 = vpop.f32.mrf.mxu3 }
 0x647   : > { %v2530_v60 = vadd.f32 %v2973_v45, %v2529_v27 }
 0x649   : > { %2552 = vst.msk [vmem:[%s3323_s25 + $0x8] sm:$0xff] %vm2550_vm6, %v2530_v60 }
 0x64e   : > { %v2532_v16 = vpop.f32.mrf.mxu3 }
 0x64f   : > { %v2533_v47 = vadd.f32 %v2973_v45, %v2532_v16 }
 0x651   : > { %2553 = vst.msk [vmem:[%s3323_s25 + $0x10] sm:$0xff] %vm2550_vm6, %v2533_v47 }
 0x656   : > { %v2535_v54 = vpop.f32.mrf.mxu3 }
 0x657   : > { %v2536_v35 = vadd.f32 %v2973_v45, %v2535_v54 }
 0x659   : > { %2554 = vst.msk [vmem:[%s3323_s25 + $0x18] sm:$0xff] %vm2550_vm6, %v2536_v35 }
 0x65e   : > { %v2538_v6 = vpop.f32.mrf.mxu3 }
 0x65f   : > { %v2539_v24 = vadd.f32 %v2973_v45, %v2538_v6 }
 0x661   : > { %2555 = vst.msk [vmem:[%s3323_s25 + $0x20] sm:$0xff] %vm2550_vm6, %v2539_v24 }
 0x66c   : > { %v2541_v15 = vpop.f32.mrf.mxu3 }
 0x66d   : > { %v2542_v10 = vadd.f32 %v2973_v45, %v2541_v15 }
 0x66f   : > { %2556 = vst.msk [vmem:[%s3323_s25 + $0x28] sm:$0xff] %vm2550_vm6, %v2542_v10 }
 0x674   : > { %v2544_v32 = vpop.f32.mrf.mxu3 }
 0x675   : > { %v2545_v23 = vadd.f32 %v2973_v45, %v2544_v32 }
 0x677   : > { %2557 = vst.msk [vmem:[%s3323_s25 + $0x30] sm:$0xff] %vm2550_vm6, %v2545_v23 }
 0x6c1   : > { %v2547_v13 = vpop.f32.mrf.mxu3 }
 0x6c2   : > { %v2548_v29 = vadd.f32 %v2973_v45, %v2547_v13 }
 0x6c4   : > { %2558 = vst.msk [vmem:[%s3323_s25 + $0x38] sm:$0xff] %vm2550_vm6, %v2548_v29 }
 0x6c5 PF: > { %s32_s23 = sadd.s32 1, %s3114_s23  }
 0x6c6   : > { %p29_p5 = scmp.ge.s32.totalorder %s32_s23, 4  }
 0x6c8   :  { %31 = sbr.rel (!%p29_p5) target bundleno = 6 (0x6), region = 157 }

</bundles_post_ra>
